<compile_context>
chip_gen: v6e
topology: v6e:2x2x1
jax: 0.10.0
libtpu: 0.0.40
codegen_flags: <defaults>
</compile_context>

<pallas_src>
import functools

import jax
import jax.numpy as jnp
import numpy as np
from jax.experimental import pallas as pl
from jax.experimental.pallas import tpu as pltpu


# ----------------------------------------------------------------------------
# Wrapper-side weight / index-matrix preprocessing (pure XLA layout plumbing)
# ----------------------------------------------------------------------------
def _col_embedded_conv2d_matrix(w, win, stride=2):
    """w: (kh, kw, cin, cout) -> M: (kh*win*cin, wout*cout) embedding the valid
    stride-2 column taps + channel mixing.  M[(di, w, ci), (j, co)] =
    w[di, w - 2j, ci, co] when 0 <= w - 2j < kw, else 0."""
    kh, kw, cin, cout = w.shape
    wout = (win - kw) // stride + 1
    wi = jnp.arange(win)[:, None]
    jo = jnp.arange(wout)[None, :]
    dj = wi - stride * jo                                   # (win, wout)
    valid = (dj >= 0) & (dj < kw)
    g = w[:, jnp.clip(dj, 0, kw - 1), :, :]                 # (kh, win, wout, cin, cout)
    g = jnp.where(valid[None, :, :, None, None], g, 0.0)
    g = jnp.transpose(g, (0, 1, 3, 2, 4))                   # (kh, win, cin, wout, cout)
    return g.reshape(kh * win * cin, wout * cout), wout


def _row_select_2d(hin, hout, batch, kh, out_order, stride=2):
    """0/1 matrix (kh*batch*hout, batch*hin): tap di selects input row
    (b, stride*i + di) from input rows ordered (b, h).  Output rows ordered
    (b, i) for out_order='bi' or (i, b) for 'ib'."""
    n_in, n_out = batch * hin, batch * hout
    cb = jnp.arange(n_in) // hin
    ch = jnp.arange(n_in) % hin
    if out_order == "bi":
        rb = jnp.arange(n_out) // hout
        ri = jnp.arange(n_out) % hout
    else:  # "ib"
        rb = jnp.arange(n_out) % batch
        ri = jnp.arange(n_out) // batch
    blocks = [(rb[:, None] == cb[None, :]) &
              (ch[None, :] == stride * ri[:, None] + di) for di in range(kh)]
    return jnp.concatenate(blocks, axis=0).astype(jnp.float32)


def _row_select_dm(lin, lout, batch, k, stride):
    """0/1 matrix (k*lout*batch, lin*batch) for the stride-2 1-D conv: tap d
    selects input row (l = stride*j + d, b); rows ordered (l, b) on both sides."""
    n_in, n_out = lin * batch, lout * batch
    cl = jnp.arange(n_in) // batch
    cb = jnp.arange(n_in) % batch
    rl = jnp.arange(n_out) // batch
    rb = jnp.arange(n_out) % batch
    blocks = [(rb[:, None] == cb[None, :]) &
              (cl[None, :] == stride * rl[:, None] + d) for d in range(k)]
    return jnp.concatenate(blocks, axis=0).astype(jnp.float32)


# ----------------------------------------------------------------------------
# Kernel 1: three feature branches, one "parallel" grid program each
# ----------------------------------------------------------------------------
def _branches_kernel(x2d_ref, r1_ref, r2_ref, r3_ref,
                     m1_ref, b1_ref, m2_ref, b2_ref, m3_ref, b3_ref,
                     dm_ref, rdm2_ref, dw1_ref, db1_ref, dw2_ref, db2_ref,
                     dw3_ref, db3_ref, o_ref, *, batch, h3, w3, c3,
                     dm_k, dm_lout):
    pid = pl.program_id(0)

    @pl.when(pid < 2)
    def _branch2d():
        # a: rows = (b, h), lanes = (w, c); layer 3 output rows = (i3, b).
        a = x2d_ref[0]                                     # (B*H, W)
        for r_ref, m_ref, bias_ref in ((r1_ref, m1_ref, b1_ref),
                                       (r2_ref, m2_ref, b2_ref),
                                       (r3_ref, m3_ref, b3_ref)):
            r = r_ref[...]                                 # (4*n_out, n_in) 0/1
            n_out = r.shape[0] // 4
            taps = jnp.dot(r, a, preferred_element_type=jnp.float32)
            lhs = jnp.concatenate(
                [taps[di * n_out:(di + 1) * n_out, :] for di in range(4)], axis=1)
            a = jnp.maximum(
                jnp.dot(lhs, m_ref[0], preferred_element_type=jnp.float32)
                + bias_ref[0], 0.0)                        # (n_out, wout*cout)
        # Fused global max pool: lanes are (j3, c3), rows are (i3, b).
        mm = a[:, :c3]
        for j in range(1, w3):
            mm = jnp.maximum(mm, a[:, j * c3:(j + 1) * c3])
        feat = mm[:batch]
        for i in range(1, h3):
            feat = jnp.maximum(feat, mm[i * batch:(i + 1) * batch])
        o_ref[...] = feat[None]                            # (1, B, 64)

    @pl.when(pid == 2)
    def _branch_dm():
        l1, l2, l3 = dm_lout
        k1, k2, k3 = dm_k
        a = dm_ref[...]                                    # (L*B, 1), rows (l, b)
        # conv1: stride 1, k=16, cin=1 -> taps are contiguous row slices.
        lhs = jnp.concatenate(
            [a[d * batch:(d + l1) * batch, :] for d in range(k1)], axis=1)
        a = jnp.maximum(jnp.dot(lhs, dw1_ref[...],
                                preferred_element_type=jnp.float32)
                        + db1_ref[...], 0.0)               # (L1*B, 16)
        # conv2: stride 2 -> 0/1 row-selection matmul, then one flat matmul.
        n2 = l2 * batch
        taps = jnp.dot(rdm2_ref[...], a, preferred_element_type=jnp.float32)
        lhs = jnp.concatenate(
            [taps[d * n2:(d + 1) * n2, :] for d in range(k2)], axis=1)
        a = jnp.maximum(jnp.dot(lhs, dw2_ref[...],
                                preferred_element_type=jnp.float32)
                        + db2_ref[...], 0.0)               # (L2*B, 32)
        # conv3: stride 1, k=8 -> contiguous row slices again.
        lhs = jnp.concatenate(
            [a[d * batch:(d + l3) * batch, :] for d in range(k3)], axis=1)
        a = jnp.maximum(jnp.dot(lhs, dw3_ref[...],
                                preferred_element_type=jnp.float32)
                        + db3_ref[...], 0.0)               # (L3*B, 64)
        feat = a[:batch]
        for l in range(1, l3):
            feat = jnp.maximum(feat, a[l * batch:(l + 1) * batch])
        o_ref[...] = feat[None]                            # (1, B, 64)


# ----------------------------------------------------------------------------
# Kernel 2: dense head (Linear+ReLU, Linear+Sigmoid)
# ----------------------------------------------------------------------------
def _head_kernel(f_ref, wd1_ref, bd1_ref, wd2_ref, bd2_ref, o_ref):
    h = jnp.dot(f_ref[0], wd1_ref[0], preferred_element_type=jnp.float32)
    h = h + jnp.dot(f_ref[1], wd1_ref[1], preferred_element_type=jnp.float32)
    h = h + jnp.dot(f_ref[2], wd1_ref[2], preferred_element_type=jnp.float32)
    h = jnp.maximum(h + bd1_ref[...], 0.0)
    z = jnp.dot(h, wd2_ref[...], preferred_element_type=jnp.float32)
    o_ref[...] = jax.nn.sigmoid(z + bd2_ref[...])


# ----------------------------------------------------------------------------
# pallas_call wrappers
# ----------------------------------------------------------------------------
def _branches_call(p, x2d, dm0, B, H, W, L):
    H1 = (H - 4) // 2 + 1; H2 = (H1 - 4) // 2 + 1; H3 = (H2 - 4) // 2 + 1
    W1 = (W - 4) // 2 + 1; W2 = (W1 - 4) // 2 + 1; W3 = (W2 - 4) // 2 + 1
    assert H3 >= 1 and W3 >= 1, "spatial input too small for three 4x4/s2 convs"
    L1 = L - 15; L2 = (L1 - 16) // 2 + 1; L3 = L2 - 7
    assert L3 >= 1, "DM sequence too short for the three 1-D convs"

    # Row-selection matrices (shared by the Sub and Time programs).
    r1 = _row_select_2d(H, H1, B, 4, "bi")
    r2 = _row_select_2d(H1, H2, B, 4, "bi")
    r3 = _row_select_2d(H2, H3, B, 4, "ib")     # layer-3 rows ordered (i3, b)

    # Column-embedded conv weights + tiled biases, stacked (0=Sub, 1=Time).
    m1s, b1s, m2s, b2s, m3s, b3s = [], [], [], [], [], []
    for pre in ("s", "t"):
        m1_, w1o = _col_embedded_conv2d_matrix(p[pre + "1_w"], W)
        m2_, w2o = _col_embedded_conv2d_matrix(p[pre + "2_w"], W1)
        m3_, w3o = _col_embedded_conv2d_matrix(p[pre + "3_w"], W2)
        assert (w1o, w2o, w3o) == (W1, W2, W3)
        m1s.append(m1_); m2s.append(m2_); m3s.append(m3_)
        b1s.append(jnp.tile(p[pre + "1_b"], W1)[None])
        b2s.append(jnp.tile(p[pre + "2_b"], W2)[None])
        b3s.append(jnp.tile(p[pre + "3_b"], W3)[None])
    m1 = jnp.stack(m1s); m2 = jnp.stack(m2s); m3 = jnp.stack(m3s)
    b1 = jnp.stack(b1s); b2 = jnp.stack(b2s); b3 = jnp.stack(b3s)

    # DM branch: raw (flattened) weights; only the stride-2 layer needs a
    # row-selection matrix.
    rdm2 = _row_select_dm(L1, L2, B, 16, 2)
    dw1 = p["dm1_w"].reshape(16, 16)
    dw2 = p["dm2_w"].reshape(16 * 16, 32)
    dw3 = p["dm3_w"].reshape(8 * 32, 64)
    db1 = p["dm1_b"][None]; db2 = p["dm2_b"][None]; db3 = p["dm3_b"][None]

    kernel = functools.partial(
        _branches_kernel, batch=B, h3=H3, w3=W3, c3=64,
        dm_k=(16, 16, 8), dm_lout=(L1, L2, L3))

    lead2 = lambda i: (jnp.minimum(i, 1), 0, 0)   # program 2 harmlessly re-reads slab 1
    def full(shape):
        n = len(shape)
        return pl.BlockSpec(shape, lambda i, _n=n: (0,) * _n)

    mm = lambda m_, k_, n_: 2 * m_ * k_ * n_
    flops = 0
    for (hin, hout, win, cin, cout) in ((H, H1, W, 1, 16),
                                        (H1, H2, W1, 16, 32),
                                        (H2, H3, W2, 32, 64)):
        wout = (win - 4) // 2 + 1
        flops += 2 * (mm(4 * B * hout, B * hin, win * cin)
                      + mm(B * hout, 4 * win * cin, wout * cout))
    flops += (mm(L1 * B, 16, 16) + mm(16 * L2 * B, L1 * B, 16)
              + mm(L2 * B, 256, 32) + mm(L3 * B, 256, 64))

    operands = (x2d, r1, r2, r3, m1, b1, m2, b2, m3, b3,
                dm0, rdm2, dw1, db1, dw2, db2, dw3, db3)
    bytes_accessed = 4 * (sum(int(np.prod(o.shape)) for o in operands) + 3 * B * 64)

    in_specs = [
        pl.BlockSpec((1, B * H, W), lead2),
        full(r1.shape), full(r2.shape), full(r3.shape),
        pl.BlockSpec((1,) + m1.shape[1:], lead2),
        pl.BlockSpec((1,) + b1.shape[1:], lead2),
        pl.BlockSpec((1,) + m2.shape[1:], lead2),
        pl.BlockSpec((1,) + b2.shape[1:], lead2),
        pl.BlockSpec((1,) + m3.shape[1:], lead2),
        pl.BlockSpec((1,) + b3.shape[1:], lead2),
        full(dm0.shape), full(rdm2.shape),
        full(dw1.shape), full(db1.shape),
        full(dw2.shape), full(db2.shape),
        full(dw3.shape), full(db3.shape),
    ]

    return pl.pallas_call(
        kernel,
        out_shape=jax.ShapeDtypeStruct((3, B, 64), jnp.float32),
        grid=(3,),
        in_specs=in_specs,
        out_specs=pl.BlockSpec((1, B, 64), lambda i: (i, 0, 0)),
        compiler_params=pltpu.CompilerParams(
            dimension_semantics=("parallel",)),
        cost_estimate=pl.CostEstimate(flops=int(flops), transcendentals=0,
                                      bytes_accessed=int(bytes_accessed)),
    )(*operands)


def _head_call(p, feats, B):
    wd1 = p["d1_w"].reshape(3, 64, 32)     # blocks: [Sub, Time, DM] rows of dense1
    bd1 = p["d1_b"][None]
    wd2 = p["d2_w"]
    bd2 = p["d2_b"][None]
    operands = (feats, wd1, bd1, wd2, bd2)
    in_specs = [pl.BlockSpec(o.shape, lambda i, _n=o.ndim: (0,) * _n)
                for o in operands]
    flops = 2 * B * (192 * 32 + 32)
    bytes_accessed = 4 * (sum(int(np.prod(o.shape)) for o in operands) + B)
    return pl.pallas_call(
        _head_kernel,
        out_shape=jax.ShapeDtypeStruct((B, 1), jnp.float32),
        grid=(1,),
        in_specs=in_specs,
        out_specs=pl.BlockSpec((B, 1), lambda i: (0, 0)),
        compiler_params=pltpu.CompilerParams(
            dimension_semantics=("arbitrary",)),
        cost_estimate=pl.CostEstimate(flops=int(flops), transcendentals=int(B),
                                      bytes_accessed=int(bytes_accessed)),
    )(*operands)


# ----------------------------------------------------------------------------
# Forward pass (matches VCCNN.forward; inputs are PyTorch-style NCHW / NCL)
# ----------------------------------------------------------------------------
def vccnn_forward(p, Sub_x, Time_x, DM_x):
    B = Sub_x.shape[0]
    H, W = Sub_x.shape[2], Sub_x.shape[3]
    L = DM_x.shape[-1]
    # Boundary layout glue only (free reshapes / tiny transposes):
    sub = Sub_x.astype(jnp.float32).reshape(B * H, W)      # rows (b, h), lanes w
    tim = Time_x.astype(jnp.float32).reshape(B * H, W)
    x2d = jnp.stack([sub, tim])                            # (2, B*H, W)
    dm0 = jnp.transpose(DM_x.astype(jnp.float32)[:, 0, :],
                        (1, 0)).reshape(L * B, 1)          # rows (l, b)
    feats = _branches_call(p, x2d, dm0, B, H, W, L)        # (3, B, 64)
    return _head_call(p, feats, B)                         # (B, 1)


# ----------------------------------------------------------------------------
# Deterministic parameter init (PyTorch-style U(-1/sqrt(fan_in), 1/sqrt(fan_in)))
# ----------------------------------------------------------------------------
def _uniform(key, shape, fan_in):
    bound = 1.0 / float(fan_in) ** 0.5
    return jax.random.uniform(key, shape, jnp.float32, -bound, bound)


def init_params(key):
    keys = iter(jax.random.split(key, 32))
    p = {}

    def conv1d_p(name, k, cin, cout):
        fan = cin * k
        p[name + "_w"] = _uniform(next(keys), (k, cin, cout), fan)
        p[name + "_b"] = _uniform(next(keys), (cout,), fan)

    def conv2d_p(name, kh, kw, cin, cout):
        fan = cin * kh * kw
        p[name + "_w"] = _uniform(next(keys), (kh, kw, cin, cout), fan)
        p[name + "_b"] = _uniform(next(keys), (cout,), fan)

    def linear_p(name, cin, cout):
        p[name + "_w"] = _uniform(next(keys), (cin, cout), cin)
        p[name + "_b"] = _uniform(next(keys), (cout,), cin)

    conv1d_p("dm1", 16, 1, 16)
    conv1d_p("dm2", 16, 16, 32)
    conv1d_p("dm3", 8, 32, 64)
    conv2d_p("t1", 4, 4, 1, 16)
    conv2d_p("t2", 4, 4, 16, 32)
    conv2d_p("t3", 4, 4, 32, 64)
    conv2d_p("s1", 4, 4, 1, 16)
    conv2d_p("s2", 4, 4, 16, 32)
    conv2d_p("s3", 4, 4, 32, 64)
    linear_p("d1", 192, 32)
    linear_p("d2", 32, 1)
    return p


# ----------------------------------------------------------------------------
# Pure-JAX reference (lax convs) for correctness checking
# ----------------------------------------------------------------------------
def _ref_forward(p, Sub_x, Time_x, DM_x):
    def conv2d(x, w, b, stride):
        y = jax.lax.conv_general_dilated(
            x, w, (stride, stride), "VALID",
            dimension_numbers=("NCHW", "HWIO", "NCHW"))
        return jax.nn.relu(y + b.reshape(1, -1, 1, 1))

    def conv1d(x, w, b, stride):
        y = jax.lax.conv_general_dilated(
            x, w, (stride,), "VALID",
            dimension_numbers=("NCH", "HIO", "NCH"))
        return jax.nn.relu(y + b.reshape(1, -1, 1))

    d = conv1d(DM_x.astype(jnp.float32), p["dm1_w"], p["dm1_b"], 1)
    d = conv1d(d, p["dm2_w"], p["dm2_b"], 2)
    d = conv1d(d, p["dm3_w"], p["dm3_b"], 1)
    d = jnp.max(d, axis=-1)

    t = conv2d(Time_x.astype(jnp.float32), p["t1_w"], p["t1_b"], 2)
    t = conv2d(t, p["t2_w"], p["t2_b"], 2)
    t = conv2d(t, p["t3_w"], p["t3_b"], 2)
    t = jnp.max(t, axis=(2, 3))

    s = conv2d(Sub_x.astype(jnp.float32), p["s1_w"], p["s1_b"], 2)
    s = conv2d(s, p["s2_w"], p["s2_b"], 2)
    s = conv2d(s, p["s3_w"], p["s3_b"], 2)
    s = jnp.max(s, axis=(2, 3))

    m = jnp.concatenate([s, t, d], axis=1)
    h = jax.nn.relu(m @ p["d1_w"] + p["d1_b"])
    return jax.nn.sigmoid(h @ p["d2_w"] + p["d2_b"])


if __name__ == "__main__":
    key = jax.random.PRNGKey(0)
    kp, k1, k2, k3 = jax.random.split(key, 4)
    params = init_params(kp)

    # Shapes consistent with the conv chains:
    #   2-D: 32x32 -> 15 -> 6 -> 2 -> global max -> 64 feats
    #   DM : L=64  -> 49 -> 17 -> 10 -> global max -> 64 feats
    Sub_x = jax.random.normal(k1, (2, 1, 32, 32), jnp.float32)
    Time_x = jax.random.normal(k2, (2, 1, 32, 32), jnp.float32)
    DM_x = jax.random.normal(k3, (2, 1, 64), jnp.float32)

    fwd = jax.jit(vccnn_forward)
    out = fwd(params, Sub_x, Time_x, DM_x)
    jax.block_until_ready(out)
    assert out.shape == (2, 1), out.shape

    ref = jax.jit(_ref_forward)(params, Sub_x, Time_x, DM_x)
    np.testing.assert_allclose(np.asarray(out), np.asarray(ref),
                               rtol=5e-4, atol=1e-5)
    assert bool(jnp.all((out >= 0.0) & (out <= 1.0)))
    print("KERNEL_OK")
</pallas_src>

<mosaic_0001>
module attributes {stable_mosaic.version = 11 : i64} {
  func.func @_branches_kernel(%arg0: i32, %arg1: memref<1x64x32xf32, #tpu.memory_space<vmem>>, %arg2: memref<120x64xf32, #tpu.memory_space<vmem>>, %arg3: memref<48x30xf32, #tpu.memory_space<vmem>>, %arg4: memref<16x12xf32, #tpu.memory_space<vmem>>, %arg5: memref<1x128x240xf32, #tpu.memory_space<vmem>>, %arg6: memref<1x1x240xf32, #tpu.memory_space<vmem>>, %arg7: memref<1x960x192xf32, #tpu.memory_space<vmem>>, %arg8: memref<1x1x192xf32, #tpu.memory_space<vmem>>, %arg9: memref<1x768x128xf32, #tpu.memory_space<vmem>>, %arg10: memref<1x1x128xf32, #tpu.memory_space<vmem>>, %arg11: memref<128x1xf32, #tpu.memory_space<vmem>>, %arg12: memref<544x98xf32, #tpu.memory_space<vmem>>, %arg13: memref<16x16xf32, #tpu.memory_space<vmem>>, %arg14: memref<1x16xf32, #tpu.memory_space<vmem>>, %arg15: memref<256x32xf32, #tpu.memory_space<vmem>>, %arg16: memref<1x32xf32, #tpu.memory_space<vmem>>, %arg17: memref<256x64xf32, #tpu.memory_space<vmem>>, %arg18: memref<1x64xf32, #tpu.memory_space<vmem>>, %arg19: memref<1x2x64xf32, #tpu.memory_space<vmem>>) attributes {dimension_semantics = [#tpu.dimension_semantics<parallel>], iteration_bounds = array<i64: 3>, scalar_prefetch = 0 : i64, scratch_operands = 0 : i64, tpu.core_type = #tpu.core_type<tc>, window_params = [{transform_indices = @transform_0, window_bounds = array<i64: 1, 64, 32>}, {pipeline_mode = #tpu.pipeline_mode<synchronous>, transform_indices = @transform_1, window_bounds = array<i64: 120, 64>}, {pipeline_mode = #tpu.pipeline_mode<synchronous>, transform_indices = @transform_2, window_bounds = array<i64: 48, 30>}, {pipeline_mode = #tpu.pipeline_mode<synchronous>, transform_indices = @transform_3, window_bounds = array<i64: 16, 12>}, {transform_indices = @transform_4, window_bounds = array<i64: 1, 128, 240>}, {transform_indices = @transform_5, window_bounds = array<i64: 1, 1, 240>}, {transform_indices = @transform_6, window_bounds = array<i64: 1, 960, 192>}, {transform_indices = @transform_7, window_bounds = array<i64: 1, 1, 192>}, {transform_indices = @transform_8, window_bounds = array<i64: 1, 768, 128>}, {transform_indices = @transform_9, window_bounds = array<i64: 1, 1, 128>}, {pipeline_mode = #tpu.pipeline_mode<synchronous>, transform_indices = @transform_10, window_bounds = array<i64: 128, 1>}, {pipeline_mode = #tpu.pipeline_mode<synchronous>, transform_indices = @transform_11, window_bounds = array<i64: 544, 98>}, {pipeline_mode = #tpu.pipeline_mode<synchronous>, transform_indices = @transform_12, window_bounds = array<i64: 16, 16>}, {pipeline_mode = #tpu.pipeline_mode<synchronous>, transform_indices = @transform_13, window_bounds = array<i64: 1, 16>}, {pipeline_mode = #tpu.pipeline_mode<synchronous>, transform_indices = @transform_14, window_bounds = array<i64: 256, 32>}, {pipeline_mode = #tpu.pipeline_mode<synchronous>, transform_indices = @transform_15, window_bounds = array<i64: 1, 32>}, {pipeline_mode = #tpu.pipeline_mode<synchronous>, transform_indices = @transform_16, window_bounds = array<i64: 256, 64>}, {pipeline_mode = #tpu.pipeline_mode<synchronous>, transform_indices = @transform_17, window_bounds = array<i64: 1, 64>}, {transform_indices = @transform_18, window_bounds = array<i64: 1, 2, 64>}]} {
    %c2_i32 = arith.constant 2 : i32
    %0 = arith.cmpi slt, %arg0, %c2_i32 : i32
    %1 = arith.extui %0 : i1 to i32
    %c0_i32 = arith.constant 0 : i32
    %2 = arith.cmpi ne, %1, %c0_i32 : i32
    scf.if %2 {
      %c0 = arith.constant 0 : index
      %c0_2 = arith.constant 0 : index
      %c0_3 = arith.constant 0 : index
      %6 = vector.load %arg1[%c0, %c0_2, %c0_3] : memref<1x64x32xf32, #tpu.memory_space<vmem>>, vector<1x64x32xf32>
      %7 = vector.shape_cast %6 : vector<1x64x32xf32> to vector<64x32xf32>
      %c0_4 = arith.constant 0 : index
      %c0_5 = arith.constant 0 : index
      %8 = vector.load %arg2[%c0_4, %c0_5] : memref<120x64xf32, #tpu.memory_space<vmem>>, vector<120x64xf32>
      %cst = arith.constant dense<0.000000e+00> : vector<120x32xf32>
      %9 = tpu.matmul %8, %7, %cst {dimension_numbers = #tpu.dot_dimension_numbers<[1], [0], [0], [1], [0, 0, 1, 1], [], []>} : vector<120x64xf32>, vector<64x32xf32>, vector<120x32xf32> -> vector<120x32xf32>
      %10 = vector.extract_strided_slice %9 {offsets = [0, 0], sizes = [30, 32], strides = [1, 1]} : vector<120x32xf32> to vector<30x32xf32>
      %11 = vector.extract_strided_slice %9 {offsets = [30, 0], sizes = [30, 32], strides = [1, 1]} : vector<120x32xf32> to vector<30x32xf32>
      %12 = vector.extract_strided_slice %9 {offsets = [60, 0], sizes = [30, 32], strides = [1, 1]} : vector<120x32xf32> to vector<30x32xf32>
      %13 = vector.extract_strided_slice %9 {offsets = [90, 0], sizes = [30, 32], strides = [1, 1]} : vector<120x32xf32> to vector<30x32xf32>
      %14 = tpu.concatenate %10, %11, %12, %13 in 1 : vector<30x32xf32>, vector<30x32xf32>, vector<30x32xf32>, vector<30x32xf32> -> vector<30x128xf32>
      %c0_6 = arith.constant 0 : index
      %c0_7 = arith.constant 0 : index
      %c0_8 = arith.constant 0 : index
      %15 = vector.load %arg5[%c0_6, %c0_7, %c0_8] : memref<1x128x240xf32, #tpu.memory_space<vmem>>, vector<1x128x240xf32>
      %16 = vector.shape_cast %15 : vector<1x128x240xf32> to vector<128x240xf32>
      %cst_9 = arith.constant dense<0.000000e+00> : vector<30x240xf32>
      %17 = tpu.matmul %14, %16, %cst_9 {dimension_numbers = #tpu.dot_dimension_numbers<[1], [0], [0], [1], [0, 0, 1, 1], [], []>} : vector<30x128xf32>, vector<128x240xf32>, vector<30x240xf32> -> vector<30x240xf32>
      %c0_10 = arith.constant 0 : index
      %c0_11 = arith.constant 0 : index
      %c0_12 = arith.constant 0 : index
      %18 = vector.load %arg6[%c0_10, %c0_11, %c0_12] : memref<1x1x240xf32, #tpu.memory_space<vmem>>, vector<1x1x240xf32>
      %19 = vector.shape_cast %18 : vector<1x1x240xf32> to vector<1x240xf32>
      %20 = vector.broadcast %19 : vector<1x240xf32> to vector<30x240xf32>
      %21 = arith.addf %17, %20 : vector<30x240xf32>
      %cst_13 = arith.constant 0.000000e+00 : f32
      %22 = vector.broadcast %cst_13 : f32 to vector<30x240xf32>
      %23 = arith.maximumf %21, %22 : vector<30x240xf32>
      %c0_14 = arith.constant 0 : index
      %c0_15 = arith.constant 0 : index
      %24 = vector.load %arg3[%c0_14, %c0_15] : memref<48x30xf32, #tpu.memory_space<vmem>>, vector<48x30xf32>
      %cst_16 = arith.constant dense<0.000000e+00> : vector<48x240xf32>
      %25 = tpu.matmul %24, %23, %cst_16 {dimension_numbers = #tpu.dot_dimension_numbers<[1], [0], [0], [1], [0, 0, 1, 1], [], []>} : vector<48x30xf32>, vector<30x240xf32>, vector<48x240xf32> -> vector<48x240xf32>
      %26 = vector.extract_strided_slice %25 {offsets = [0, 0], sizes = [12, 240], strides = [1, 1]} : vector<48x240xf32> to vector<12x240xf32>
      %27 = vector.extract_strided_slice %25 {offsets = [12, 0], sizes = [12, 240], strides = [1, 1]} : vector<48x240xf32> to vector<12x240xf32>
      %28 = vector.extract_strided_slice %25 {offsets = [24, 0], sizes = [12, 240], strides = [1, 1]} : vector<48x240xf32> to vector<12x240xf32>
      %29 = vector.extract_strided_slice %25 {offsets = [36, 0], sizes = [12, 240], strides = [1, 1]} : vector<48x240xf32> to vector<12x240xf32>
      %30 = tpu.concatenate %26, %27, %28, %29 in 1 : vector<12x240xf32>, vector<12x240xf32>, vector<12x240xf32>, vector<12x240xf32> -> vector<12x960xf32>
      %c0_17 = arith.constant 0 : index
      %c0_18 = arith.constant 0 : index
      %c0_19 = arith.constant 0 : index
      %31 = vector.load %arg7[%c0_17, %c0_18, %c0_19] : memref<1x960x192xf32, #tpu.memory_space<vmem>>, vector<1x960x192xf32>
      %32 = vector.shape_cast %31 : vector<1x960x192xf32> to vector<960x192xf32>
      %cst_20 = arith.constant dense<0.000000e+00> : vector<12x192xf32>
      %33 = tpu.matmul %30, %32, %cst_20 {dimension_numbers = #tpu.dot_dimension_numbers<[1], [0], [0], [1], [0, 0, 1, 1], [], []>} : vector<12x960xf32>, vector<960x192xf32>, vector<12x192xf32> -> vector<12x192xf32>
      %c0_21 = arith.constant 0 : index
      %c0_22 = arith.constant 0 : index
      %c0_23 = arith.constant 0 : index
      %34 = vector.load %arg8[%c0_21, %c0_22, %c0_23] : memref<1x1x192xf32, #tpu.memory_space<vmem>>, vector<1x1x192xf32>
      %35 = vector.shape_cast %34 : vector<1x1x192xf32> to vector<1x192xf32>
      %36 = vector.broadcast %35 : vector<1x192xf32> to vector<12x192xf32>
      %37 = arith.addf %33, %36 : vector<12x192xf32>
      %cst_24 = arith.constant 0.000000e+00 : f32
      %38 = vector.broadcast %cst_24 : f32 to vector<12x192xf32>
      %39 = arith.maximumf %37, %38 : vector<12x192xf32>
      %c0_25 = arith.constant 0 : index
      %c0_26 = arith.constant 0 : index
      %40 = vector.load %arg4[%c0_25, %c0_26] : memref<16x12xf32, #tpu.memory_space<vmem>>, vector<16x12xf32>
      %cst_27 = arith.constant dense<0.000000e+00> : vector<16x192xf32>
      %41 = tpu.matmul %40, %39, %cst_27 {dimension_numbers = #tpu.dot_dimension_numbers<[1], [0], [0], [1], [0, 0, 1, 1], [], []>} : vector<16x12xf32>, vector<12x192xf32>, vector<16x192xf32> -> vector<16x192xf32>
      %42 = vector.extract_strided_slice %41 {offsets = [0, 0], sizes = [4, 192], strides = [1, 1]} : vector<16x192xf32> to vector<4x192xf32>
      %43 = vector.extract_strided_slice %41 {offsets = [4, 0], sizes = [4, 192], strides = [1, 1]} : vector<16x192xf32> to vector<4x192xf32>
      %44 = vector.extract_strided_slice %41 {offsets = [8, 0], sizes = [4, 192], strides = [1, 1]} : vector<16x192xf32> to vector<4x192xf32>
      %45 = vector.extract_strided_slice %41 {offsets = [12, 0], sizes = [4, 192], strides = [1, 1]} : vector<16x192xf32> to vector<4x192xf32>
      %46 = tpu.concatenate %42, %43, %44, %45 in 1 : vector<4x192xf32>, vector<4x192xf32>, vector<4x192xf32>, vector<4x192xf32> -> vector<4x768xf32>
      %c0_28 = arith.constant 0 : index
      %c0_29 = arith.constant 0 : index
      %c0_30 = arith.constant 0 : index
      %47 = vector.load %arg9[%c0_28, %c0_29, %c0_30] : memref<1x768x128xf32, #tpu.memory_space<vmem>>, vector<1x768x128xf32>
      %48 = vector.shape_cast %47 : vector<1x768x128xf32> to vector<768x128xf32>
      %cst_31 = arith.constant dense<0.000000e+00> : vector<4x128xf32>
      %49 = tpu.matmul %46, %48, %cst_31 {dimension_numbers = #tpu.dot_dimension_numbers<[1], [0], [0], [1], [0, 0, 1, 1], [], []>} : vector<4x768xf32>, vector<768x128xf32>, vector<4x128xf32> -> vector<4x128xf32>
      %c0_32 = arith.constant 0 : index
      %c0_33 = arith.constant 0 : index
      %c0_34 = arith.constant 0 : index
      %50 = vector.load %arg10[%c0_32, %c0_33, %c0_34] : memref<1x1x128xf32, #tpu.memory_space<vmem>>, vector<1x1x128xf32>
      %51 = vector.shape_cast %50 : vector<1x1x128xf32> to vector<1x128xf32>
      %52 = vector.broadcast %51 : vector<1x128xf32> to vector<4x128xf32>
      %53 = arith.addf %49, %52 : vector<4x128xf32>
      %cst_35 = arith.constant 0.000000e+00 : f32
      %54 = vector.broadcast %cst_35 : f32 to vector<4x128xf32>
      %55 = arith.maximumf %53, %54 : vector<4x128xf32>
      %56 = vector.extract_strided_slice %55 {offsets = [0, 0], sizes = [4, 64], strides = [1, 1]} : vector<4x128xf32> to vector<4x64xf32>
      %57 = vector.extract_strided_slice %55 {offsets = [0, 64], sizes = [4, 64], strides = [1, 1]} : vector<4x128xf32> to vector<4x64xf32>
      %58 = arith.maximumf %56, %57 : vector<4x64xf32>
      %59 = vector.extract_strided_slice %58 {offsets = [0, 0], sizes = [2, 64], strides = [1, 1]} : vector<4x64xf32> to vector<2x64xf32>
      %60 = vector.extract_strided_slice %58 {offsets = [2, 0], sizes = [2, 64], strides = [1, 1]} : vector<4x64xf32> to vector<2x64xf32>
      %61 = arith.maximumf %59, %60 : vector<2x64xf32>
      %62 = vector.shape_cast %61 : vector<2x64xf32> to vector<1x2x64xf32>
      %c0_36 = arith.constant 0 : index
      %c0_37 = arith.constant 0 : index
      %c0_38 = arith.constant 0 : index
      %63 = vector.load %arg19[%c0_36, %c0_37, %c0_38] : memref<1x2x64xf32, #tpu.memory_space<vmem>>, vector<1x2x64xf32>
      tpu.vector_store %arg19[%c0_36, %c0_37, %c0_38], %62 {strides = array<i32>} : memref<1x2x64xf32, #tpu.memory_space<vmem>>, vector<1x2x64xf32>,
    } else {
    }
    %c2_i32_0 = arith.constant 2 : i32
    %3 = arith.cmpi eq, %arg0, %c2_i32_0 : i32
    %4 = arith.extui %3 : i1 to i32
    %c0_i32_1 = arith.constant 0 : i32
    %5 = arith.cmpi ne, %4, %c0_i32_1 : i32
    scf.if %5 {
      %c0 = arith.constant 0 : index
      %c0_2 = arith.constant 0 : index
      %6 = vector.load %arg11[%c0, %c0_2] : memref<128x1xf32, #tpu.memory_space<vmem>>, vector<128x1xf32>
      %7 = vector.extract_strided_slice %6 {offsets = [0, 0], sizes = [98, 1], strides = [1, 1]} : vector<128x1xf32> to vector<98x1xf32>
      %8 = vector.extract_strided_slice %6 {offsets = [2, 0], sizes = [98, 1], strides = [1, 1]} : vector<128x1xf32> to vector<98x1xf32>
      %9 = vector.extract_strided_slice %6 {offsets = [4, 0], sizes = [98, 1], strides = [1, 1]} : vector<128x1xf32> to vector<98x1xf32>
      %10 = vector.extract_strided_slice %6 {offsets = [6, 0], sizes = [98, 1], strides = [1, 1]} : vector<128x1xf32> to vector<98x1xf32>
      %11 = vector.extract_strided_slice %6 {offsets = [8, 0], sizes = [98, 1], strides = [1, 1]} : vector<128x1xf32> to vector<98x1xf32>
      %12 = vector.extract_strided_slice %6 {offsets = [10, 0], sizes = [98, 1], strides = [1, 1]} : vector<128x1xf32> to vector<98x1xf32>
      %13 = vector.extract_strided_slice %6 {offsets = [12, 0], sizes = [98, 1], strides = [1, 1]} : vector<128x1xf32> to vector<98x1xf32>
      %14 = vector.extract_strided_slice %6 {offsets = [14, 0], sizes = [98, 1], strides = [1, 1]} : vector<128x1xf32> to vector<98x1xf32>
      %15 = vector.extract_strided_slice %6 {offsets = [16, 0], sizes = [98, 1], strides = [1, 1]} : vector<128x1xf32> to vector<98x1xf32>
      %16 = vector.extract_strided_slice %6 {offsets = [18, 0], sizes = [98, 1], strides = [1, 1]} : vector<128x1xf32> to vector<98x1xf32>
      %17 = vector.extract_strided_slice %6 {offsets = [20, 0], sizes = [98, 1], strides = [1, 1]} : vector<128x1xf32> to vector<98x1xf32>
      %18 = vector.extract_strided_slice %6 {offsets = [22, 0], sizes = [98, 1], strides = [1, 1]} : vector<128x1xf32> to vector<98x1xf32>
      %19 = vector.extract_strided_slice %6 {offsets = [24, 0], sizes = [98, 1], strides = [1, 1]} : vector<128x1xf32> to vector<98x1xf32>
      %20 = vector.extract_strided_slice %6 {offsets = [26, 0], sizes = [98, 1], strides = [1, 1]} : vector<128x1xf32> to vector<98x1xf32>
      %21 = vector.extract_strided_slice %6 {offsets = [28, 0], sizes = [98, 1], strides = [1, 1]} : vector<128x1xf32> to vector<98x1xf32>
      %22 = vector.extract_strided_slice %6 {offsets = [30, 0], sizes = [98, 1], strides = [1, 1]} : vector<128x1xf32> to vector<98x1xf32>
      %23 = tpu.concatenate %7, %8, %9, %10, %11, %12, %13, %14, %15, %16, %17, %18, %19, %20, %21, %22 in 1 : vector<98x1xf32>, vector<98x1xf32>, vector<98x1xf32>, vector<98x1xf32>, vector<98x1xf32>, vector<98x1xf32>, vector<98x1xf32>, vector<98x1xf32>, vector<98x1xf32>, vector<98x1xf32>, vector<98x1xf32>, vector<98x1xf32>, vector<98x1xf32>, vector<98x1xf32>, vector<98x1xf32>, vector<98x1xf32> -> vector<98x16xf32>
      %c0_3 = arith.constant 0 : index
      %c0_4 = arith.constant 0 : index
      %24 = vector.load %arg13[%c0_3, %c0_4] : memref<16x16xf32, #tpu.memory_space<vmem>>, vector<16x16xf32>
      %cst = arith.constant dense<0.000000e+00> : vector<98x16xf32>
      %25 = tpu.matmul %23, %24, %cst {dimension_numbers = #tpu.dot_dimension_numbers<[1], [0], [0], [1], [0, 0, 1, 1], [], []>} : vector<98x16xf32>, vector<16x16xf32>, vector<98x16xf32> -> vector<98x16xf32>
      %c0_5 = arith.constant 0 : index
      %c0_6 = arith.constant 0 : index
      %26 = vector.load %arg14[%c0_5, %c0_6] : memref<1x16xf32, #tpu.memory_space<vmem>>, vector<1x16xf32>
      %27 = vector.broadcast %26 : vector<1x16xf32> to vector<98x16xf32>
      %28 = arith.addf %25, %27 : vector<98x16xf32>
      %cst_7 = arith.constant 0.000000e+00 : f32
      %29 = vector.broadcast %cst_7 : f32 to vector<98x16xf32>
      %30 = arith.maximumf %28, %29 : vector<98x16xf32>
      %c0_8 = arith.constant 0 : index
      %c0_9 = arith.constant 0 : index
      %31 = vector.load %arg12[%c0_8, %c0_9] : memref<544x98xf32, #tpu.memory_space<vmem>>, vector<544x98xf32>
      %cst_10 = arith.constant dense<0.000000e+00> : vector<544x16xf32>
      %32 = tpu.matmul %31, %30, %cst_10 {dimension_numbers = #tpu.dot_dimension_numbers<[1], [0], [0], [1], [0, 0, 1, 1], [], []>} : vector<544x98xf32>, vector<98x16xf32>, vector<544x16xf32> -> vector<544x16xf32>
      %33 = vector.extract_strided_slice %32 {offsets = [0, 0], sizes = [34, 16], strides = [1, 1]} : vector<544x16xf32> to vector<34x16xf32>
      %34 = vector.extract_strided_slice %32 {offsets = [34, 0], sizes = [34, 16], strides = [1, 1]} : vector<544x16xf32> to vector<34x16xf32>
      %35 = vector.extract_strided_slice %32 {offsets = [68, 0], sizes = [34, 16], strides = [1, 1]} : vector<544x16xf32> to vector<34x16xf32>
      %36 = vector.extract_strided_slice %32 {offsets = [102, 0], sizes = [34, 16], strides = [1, 1]} : vector<544x16xf32> to vector<34x16xf32>
      %37 = vector.extract_strided_slice %32 {offsets = [136, 0], sizes = [34, 16], strides = [1, 1]} : vector<544x16xf32> to vector<34x16xf32>
      %38 = vector.extract_strided_slice %32 {offsets = [170, 0], sizes = [34, 16], strides = [1, 1]} : vector<544x16xf32> to vector<34x16xf32>
      %39 = vector.extract_strided_slice %32 {offsets = [204, 0], sizes = [34, 16], strides = [1, 1]} : vector<544x16xf32> to vector<34x16xf32>
      %40 = vector.extract_strided_slice %32 {offsets = [238, 0], sizes = [34, 16], strides = [1, 1]} : vector<544x16xf32> to vector<34x16xf32>
      %41 = vector.extract_strided_slice %32 {offsets = [272, 0], sizes = [34, 16], strides = [1, 1]} : vector<544x16xf32> to vector<34x16xf32>
      %42 = vector.extract_strided_slice %32 {offsets = [306, 0], sizes = [34, 16], strides = [1, 1]} : vector<544x16xf32> to vector<34x16xf32>
      %43 = vector.extract_strided_slice %32 {offsets = [340, 0], sizes = [34, 16], strides = [1, 1]} : vector<544x16xf32> to vector<34x16xf32>
      %44 = vector.extract_strided_slice %32 {offsets = [374, 0], sizes = [34, 16], strides = [1, 1]} : vector<544x16xf32> to vector<34x16xf32>
      %45 = vector.extract_strided_slice %32 {offsets = [408, 0], sizes = [34, 16], strides = [1, 1]} : vector<544x16xf32> to vector<34x16xf32>
      %46 = vector.extract_strided_slice %32 {offsets = [442, 0], sizes = [34, 16], strides = [1, 1]} : vector<544x16xf32> to vector<34x16xf32>
      %47 = vector.extract_strided_slice %32 {offsets = [476, 0], sizes = [34, 16], strides = [1, 1]} : vector<544x16xf32> to vector<34x16xf32>
      %48 = vector.extract_strided_slice %32 {offsets = [510, 0], sizes = [34, 16], strides = [1, 1]} : vector<544x16xf32> to vector<34x16xf32>
      %49 = tpu.concatenate %33, %34, %35, %36, %37, %38, %39, %40, %41, %42, %43, %44, %45, %46, %47, %48 in 1 : vector<34x16xf32>, vector<34x16xf32>, vector<34x16xf32>, vector<34x16xf32>, vector<34x16xf32>, vector<34x16xf32>, vector<34x16xf32>, vector<34x16xf32>, vector<34x16xf32>, vector<34x16xf32>, vector<34x16xf32>, vector<34x16xf32>, vector<34x16xf32>, vector<34x16xf32>, vector<34x16xf32>, vector<34x16xf32> -> vector<34x256xf32>
      %c0_11 = arith.constant 0 : index
      %c0_12 = arith.constant 0 : index
      %50 = vector.load %arg15[%c0_11, %c0_12] : memref<256x32xf32, #tpu.memory_space<vmem>>, vector<256x32xf32>
      %cst_13 = arith.constant dense<0.000000e+00> : vector<34x32xf32>
      %51 = tpu.matmul %49, %50, %cst_13 {dimension_numbers = #tpu.dot_dimension_numbers<[1], [0], [0], [1], [0, 0, 1, 1], [], []>} : vector<34x256xf32>, vector<256x32xf32>, vector<34x32xf32> -> vector<34x32xf32>
      %c0_14 = arith.constant 0 : index
      %c0_15 = arith.constant 0 : index
      %52 = vector.load %arg16[%c0_14, %c0_15] : memref<1x32xf32, #tpu.memory_space<vmem>>, vector<1x32xf32>
      %53 = vector.broadcast %52 : vector<1x32xf32> to vector<34x32xf32>
      %54 = arith.addf %51, %53 : vector<34x32xf32>
      %cst_16 = arith.constant 0.000000e+00 : f32
      %55 = vector.broadcast %cst_16 : f32 to vector<34x32xf32>
      %56 = arith.maximumf %54, %55 : vector<34x32xf32>
      %57 = vector.extract_strided_slice %56 {offsets = [0, 0], sizes = [20, 32], strides = [1, 1]} : vector<34x32xf32> to vector<20x32xf32>
      %58 = vector.extract_strided_slice %56 {offsets = [2, 0], sizes = [20, 32], strides = [1, 1]} : vector<34x32xf32> to vector<20x32xf32>
      %59 = vector.extract_strided_slice %56 {offsets = [4, 0], sizes = [20, 32], strides = [1, 1]} : vector<34x32xf32> to vector<20x32xf32>
      %60 = vector.extract_strided_slice %56 {offsets = [6, 0], sizes = [20, 32], strides = [1, 1]} : vector<34x32xf32> to vector<20x32xf32>
      %61 = vector.extract_strided_slice %56 {offsets = [8, 0], sizes = [20, 32], strides = [1, 1]} : vector<34x32xf32> to vector<20x32xf32>
      %62 = vector.extract_strided_slice %56 {offsets = [10, 0], sizes = [20, 32], strides = [1, 1]} : vector<34x32xf32> to vector<20x32xf32>
      %63 = vector.extract_strided_slice %56 {offsets = [12, 0], sizes = [20, 32], strides = [1, 1]} : vector<34x32xf32> to vector<20x32xf32>
      %64 = vector.extract_strided_slice %56 {offsets = [14, 0], sizes = [20, 32], strides = [1, 1]} : vector<34x32xf32> to vector<20x32xf32>
      %65 = tpu.concatenate %57, %58, %59, %60, %61, %62, %63, %64 in 1 : vector<20x32xf32>, vector<20x32xf32>, vector<20x32xf32>, vector<20x32xf32>, vector<20x32xf32>, vector<20x32xf32>, vector<20x32xf32>, vector<20x32xf32> -> vector<20x256xf32>
      %c0_17 = arith.constant 0 : index
      %c0_18 = arith.constant 0 : index
      %66 = vector.load %arg17[%c0_17, %c0_18] : memref<256x64xf32, #tpu.memory_space<vmem>>, vector<256x64xf32>
      %cst_19 = arith.constant dense<0.000000e+00> : vector<20x64xf32>
      %67 = tpu.matmul %65, %66, %cst_19 {dimension_numbers = #tpu.dot_dimension_numbers<[1], [0], [0], [1], [0, 0, 1, 1], [], []>} : vector<20x256xf32>, vector<256x64xf32>, vector<20x64xf32> -> vector<20x64xf32>
      %c0_20 = arith.constant 0 : index
      %c0_21 = arith.constant 0 : index
      %68 = vector.load %arg18[%c0_20, %c0_21] : memref<1x64xf32, #tpu.memory_space<vmem>>, vector<1x64xf32>
      %69 = vector.broadcast %68 : vector<1x64xf32> to vector<20x64xf32>
      %70 = arith.addf %67, %69 : vector<20x64xf32>
      %cst_22 = arith.constant 0.000000e+00 : f32
      %71 = vector.broadcast %cst_22 : f32 to vector<20x64xf32>
      %72 = arith.maximumf %70, %71 : vector<20x64xf32>
      %73 = vector.extract_strided_slice %72 {offsets = [0, 0], sizes = [2, 64], strides = [1, 1]} : vector<20x64xf32> to vector<2x64xf32>
      %74 = vector.extract_strided_slice %72 {offsets = [2, 0], sizes = [2, 64], strides = [1, 1]} : vector<20x64xf32> to vector<2x64xf32>
      %75 = arith.maximumf %73, %74 : vector<2x64xf32>
      %76 = vector.extract_strided_slice %72 {offsets = [4, 0], sizes = [2, 64], strides = [1, 1]} : vector<20x64xf32> to vector<2x64xf32>
      %77 = arith.maximumf %75, %76 : vector<2x64xf32>
      %78 = vector.extract_strided_slice %72 {offsets = [6, 0], sizes = [2, 64], strides = [1, 1]} : vector<20x64xf32> to vector<2x64xf32>
      %79 = arith.maximumf %77, %78 : vector<2x64xf32>
      %80 = vector.extract_strided_slice %72 {offsets = [8, 0], sizes = [2, 64], strides = [1, 1]} : vector<20x64xf32> to vector<2x64xf32>
      %81 = arith.maximumf %79, %80 : vector<2x64xf32>
      %82 = vector.extract_strided_slice %72 {offsets = [10, 0], sizes = [2, 64], strides = [1, 1]} : vector<20x64xf32> to vector<2x64xf32>
      %83 = arith.maximumf %81, %82 : vector<2x64xf32>
      %84 = vector.extract_strided_slice %72 {offsets = [12, 0], sizes = [2, 64], strides = [1, 1]} : vector<20x64xf32> to vector<2x64xf32>
      %85 = arith.maximumf %83, %84 : vector<2x64xf32>
      %86 = vector.extract_strided_slice %72 {offsets = [14, 0], sizes = [2, 64], strides = [1, 1]} : vector<20x64xf32> to vector<2x64xf32>
      %87 = arith.maximumf %85, %86 : vector<2x64xf32>
      %88 = vector.extract_strided_slice %72 {offsets = [16, 0], sizes = [2, 64], strides = [1, 1]} : vector<20x64xf32> to vector<2x64xf32>
      %89 = arith.maximumf %87, %88 : vector<2x64xf32>
      %90 = vector.extract_strided_slice %72 {offsets = [18, 0], sizes = [2, 64], strides = [1, 1]} : vector<20x64xf32> to vector<2x64xf32>
      %91 = arith.maximumf %89, %90 : vector<2x64xf32>
      %92 = vector.shape_cast %91 : vector<2x64xf32> to vector<1x2x64xf32>
      %c0_23 = arith.constant 0 : index
      %c0_24 = arith.constant 0 : index
      %c0_25 = arith.constant 0 : index
      %93 = vector.load %arg19[%c0_23, %c0_24, %c0_25] : memref<1x2x64xf32, #tpu.memory_space<vmem>>, vector<1x2x64xf32>
      tpu.vector_store %arg19[%c0_23, %c0_24, %c0_25], %92 {strides = array<i32>} : memref<1x2x64xf32, #tpu.memory_space<vmem>>, vector<1x2x64xf32>,
    } else {
    }
    return
  }
  func.func @transform_0(%arg0: i32) -> (i32, i32, i32) {
    %c1_i32 = arith.constant 1 : i32
    %0 = arith.minsi %arg0, %c1_i32 : i32
    %c0_i32 = arith.constant 0 : i32
    %c0_i32_0 = arith.constant 0 : i32
    %c0_i32_1 = arith.constant 0 : i32
    return %0, %c0_i32, %c0_i32_0 : i32, i32, i32
  }
  func.func @transform_1(%arg0: i32) -> (i32, i32) {
    %c0_i32 = arith.constant 0 : i32
    %c0_i32_0 = arith.constant 0 : i32
    %c0_i32_1 = arith.constant 0 : i32
    return %c0_i32, %c0_i32_0 : i32, i32
  }
  func.func @transform_2(%arg0: i32) -> (i32, i32) {
    %c0_i32 = arith.constant 0 : i32
    %c0_i32_0 = arith.constant 0 : i32
    %c0_i32_1 = arith.constant 0 : i32
    return %c0_i32, %c0_i32_0 : i32, i32
  }
  func.func @transform_3(%arg0: i32) -> (i32, i32) {
    %c0_i32 = arith.constant 0 : i32
    %c0_i32_0 = arith.constant 0 : i32
    %c0_i32_1 = arith.constant 0 : i32
    return %c0_i32, %c0_i32_0 : i32, i32
  }
  func.func @transform_4(%arg0: i32) -> (i32, i32, i32) {
    %c1_i32 = arith.constant 1 : i32
    %0 = arith.minsi %arg0, %c1_i32 : i32
    %c0_i32 = arith.constant 0 : i32
    %c0_i32_0 = arith.constant 0 : i32
    %c0_i32_1 = arith.constant 0 : i32
    return %0, %c0_i32, %c0_i32_0 : i32, i32, i32
  }
  func.func @transform_5(%arg0: i32) -> (i32, i32, i32) {
    %c1_i32 = arith.constant 1 : i32
    %0 = arith.minsi %arg0, %c1_i32 : i32
    %c0_i32 = arith.constant 0 : i32
    %c0_i32_0 = arith.constant 0 : i32
    %c0_i32_1 = arith.constant 0 : i32
    return %0, %c0_i32, %c0_i32_0 : i32, i32, i32
  }
  func.func @transform_6(%arg0: i32) -> (i32, i32, i32) {
    %c1_i32 = arith.constant 1 : i32
    %0 = arith.minsi %arg0, %c1_i32 : i32
    %c0_i32 = arith.constant 0 : i32
    %c0_i32_0 = arith.constant 0 : i32
    %c0_i32_1 = arith.constant 0 : i32
    return %0, %c0_i32, %c0_i32_0 : i32, i32, i32
  }
  func.func @transform_7(%arg0: i32) -> (i32, i32, i32) {
    %c1_i32 = arith.constant 1 : i32
    %0 = arith.minsi %arg0, %c1_i32 : i32
    %c0_i32 = arith.constant 0 : i32
    %c0_i32_0 = arith.constant 0 : i32
    %c0_i32_1 = arith.constant 0 : i32
    return %0, %c0_i32, %c0_i32_0 : i32, i32, i32
  }
  func.func @transform_8(%arg0: i32) -> (i32, i32, i32) {
    %c1_i32 = arith.constant 1 : i32
    %0 = arith.minsi %arg0, %c1_i32 : i32
    %c0_i32 = arith.constant 0 : i32
    %c0_i32_0 = arith.constant 0 : i32
    %c0_i32_1 = arith.constant 0 : i32
    return %0, %c0_i32, %c0_i32_0 : i32, i32, i32
  }
  func.func @transform_9(%arg0: i32) -> (i32, i32, i32) {
    %c1_i32 = arith.constant 1 : i32
    %0 = arith.minsi %arg0, %c1_i32 : i32
    %c0_i32 = arith.constant 0 : i32
    %c0_i32_0 = arith.constant 0 : i32
    %c0_i32_1 = arith.constant 0 : i32
    return %0, %c0_i32, %c0_i32_0 : i32, i32, i32
  }
  func.func @transform_10(%arg0: i32) -> (i32, i32) {
    %c0_i32 = arith.constant 0 : i32
    %c0_i32_0 = arith.constant 0 : i32
    %c0_i32_1 = arith.constant 0 : i32
    return %c0_i32, %c0_i32_0 : i32, i32
  }
  func.func @transform_11(%arg0: i32) -> (i32, i32) {
    %c0_i32 = arith.constant 0 : i32
    %c0_i32_0 = arith.constant 0 : i32
    %c0_i32_1 = arith.constant 0 : i32
    return %c0_i32, %c0_i32_0 : i32, i32
  }
  func.func @transform_12(%arg0: i32) -> (i32, i32) {
    %c0_i32 = arith.constant 0 : i32
    %c0_i32_0 = arith.constant 0 : i32
    %c0_i32_1 = arith.constant 0 : i32
    return %c0_i32, %c0_i32_0 : i32, i32
  }
  func.func @transform_13(%arg0: i32) -> (i32, i32) {
    %c0_i32 = arith.constant 0 : i32
    %c0_i32_0 = arith.constant 0 : i32
    %c0_i32_1 = arith.constant 0 : i32
    return %c0_i32, %c0_i32_0 : i32, i32
  }
  func.func @transform_14(%arg0: i32) -> (i32, i32) {
    %c0_i32 = arith.constant 0 : i32
    %c0_i32_0 = arith.constant 0 : i32
    %c0_i32_1 = arith.constant 0 : i32
    return %c0_i32, %c0_i32_0 : i32, i32
  }
  func.func @transform_15(%arg0: i32) -> (i32, i32) {
    %c0_i32 = arith.constant 0 : i32
    %c0_i32_0 = arith.constant 0 : i32
    %c0_i32_1 = arith.constant 0 : i32
    return %c0_i32, %c0_i32_0 : i32, i32
  }
  func.func @transform_16(%arg0: i32) -> (i32, i32) {
    %c0_i32 = arith.constant 0 : i32
    %c0_i32_0 = arith.constant 0 : i32
    %c0_i32_1 = arith.constant 0 : i32
    return %c0_i32, %c0_i32_0 : i32, i32
  }
  func.func @transform_17(%arg0: i32) -> (i32, i32) {
    %c0_i32 = arith.constant 0 : i32
    %c0_i32_0 = arith.constant 0 : i32
    %c0_i32_1 = arith.constant 0 : i32
    return %c0_i32, %c0_i32_0 : i32, i32
  }
  func.func @transform_18(%arg0: i32) -> (i32, i32, i32) {
    %c0_i32 = arith.constant 0 : i32
    %c0_i32_0 = arith.constant 0 : i32
    %c0_i32_1 = arith.constant 0 : i32
    return %arg0, %c0_i32, %c0_i32_0 : i32, i32, i32
  }
}

module attributes {stable_mosaic.version = 11 : i64} {
  func.func @_head_kernel(%arg0: i32, %arg1: memref<3x2x64xf32, #tpu.memory_space<vmem>>, %arg2: memref<3x64x32xf32, #tpu.memory_space<vmem>>, %arg3: memref<1x32xf32, #tpu.memory_space<vmem>>, %arg4: memref<32x1xf32, #tpu.memory_space<vmem>>, %arg5: memref<1x1xf32, #tpu.memory_space<vmem>>, %arg6: memref<2x1xf32, #tpu.memory_space<vmem>>) attributes {dimension_semantics = [#tpu.dimension_semantics<arbitrary>], iteration_bounds = array<i64: 1>, scalar_prefetch = 0 : i64, scratch_operands = 0 : i64, tpu.core_type = #tpu.core_type<tc>, window_params = [{pipeline_mode = #tpu.pipeline_mode<synchronous>, transform_indices = @transform_0, window_bounds = array<i64: 3, 2, 64>}, {pipeline_mode = #tpu.pipeline_mode<synchronous>, transform_indices = @transform_1, window_bounds = array<i64: 3, 64, 32>}, {pipeline_mode = #tpu.pipeline_mode<synchronous>, transform_indices = @transform_2, window_bounds = array<i64: 1, 32>}, {pipeline_mode = #tpu.pipeline_mode<synchronous>, transform_indices = @transform_3, window_bounds = array<i64: 32, 1>}, {pipeline_mode = #tpu.pipeline_mode<synchronous>, transform_indices = @transform_4, window_bounds = array<i64: 1, 1>}, {pipeline_mode = #tpu.pipeline_mode<synchronous>, transform_indices = @transform_5, window_bounds = array<i64: 2, 1>}]} {
    %c0 = arith.constant 0 : index
    %c0_0 = arith.constant 0 : index
    %c0_1 = arith.constant 0 : index
    %0 = vector.load %arg1[%c0, %c0_0, %c0_1] : memref<3x2x64xf32, #tpu.memory_space<vmem>>, vector<1x2x64xf32>
    %1 = vector.shape_cast %0 : vector<1x2x64xf32> to vector<2x64xf32>
    %c0_2 = arith.constant 0 : index
    %c0_3 = arith.constant 0 : index
    %c0_4 = arith.constant 0 : index
    %2 = vector.load %arg2[%c0_2, %c0_3, %c0_4] : memref<3x64x32xf32, #tpu.memory_space<vmem>>, vector<1x64x32xf32>
    %3 = vector.shape_cast %2 : vector<1x64x32xf32> to vector<64x32xf32>
    %cst = arith.constant dense<0.000000e+00> : vector<2x32xf32>
    %4 = tpu.matmul %1, %3, %cst {dimension_numbers = #tpu.dot_dimension_numbers<[1], [0], [0], [1], [0, 0, 1, 1], [], []>} : vector<2x64xf32>, vector<64x32xf32>, vector<2x32xf32> -> vector<2x32xf32>
    %c1 = arith.constant 1 : index
    %c0_5 = arith.constant 0 : index
    %c0_6 = arith.constant 0 : index
    %5 = vector.load %arg1[%c1, %c0_5, %c0_6] : memref<3x2x64xf32, #tpu.memory_space<vmem>>, vector<1x2x64xf32>
    %6 = vector.shape_cast %5 : vector<1x2x64xf32> to vector<2x64xf32>
    %c1_7 = arith.constant 1 : index
    %c0_8 = arith.constant 0 : index
    %c0_9 = arith.constant 0 : index
    %7 = vector.load %arg2[%c1_7, %c0_8, %c0_9] : memref<3x64x32xf32, #tpu.memory_space<vmem>>, vector<1x64x32xf32>
    %8 = vector.shape_cast %7 : vector<1x64x32xf32> to vector<64x32xf32>
    %cst_10 = arith.constant dense<0.000000e+00> : vector<2x32xf32>
    %9 = tpu.matmul %6, %8, %cst_10 {dimension_numbers = #tpu.dot_dimension_numbers<[1], [0], [0], [1], [0, 0, 1, 1], [], []>} : vector<2x64xf32>, vector<64x32xf32>, vector<2x32xf32> -> vector<2x32xf32>
    %10 = arith.addf %4, %9 : vector<2x32xf32>
    %c2 = arith.constant 2 : index
    %c0_11 = arith.constant 0 : index
    %c0_12 = arith.constant 0 : index
    %11 = vector.load %arg1[%c2, %c0_11, %c0_12] : memref<3x2x64xf32, #tpu.memory_space<vmem>>, vector<1x2x64xf32>
    %12 = vector.shape_cast %11 : vector<1x2x64xf32> to vector<2x64xf32>
    %c2_13 = arith.constant 2 : index
    %c0_14 = arith.constant 0 : index
    %c0_15 = arith.constant 0 : index
    %13 = vector.load %arg2[%c2_13, %c0_14, %c0_15] : memref<3x64x32xf32, #tpu.memory_space<vmem>>, vector<1x64x32xf32>
    %14 = vector.shape_cast %13 : vector<1x64x32xf32> to vector<64x32xf32>
    %cst_16 = arith.constant dense<0.000000e+00> : vector<2x32xf32>
    %15 = tpu.matmul %12, %14, %cst_16 {dimension_numbers = #tpu.dot_dimension_numbers<[1], [0], [0], [1], [0, 0, 1, 1], [], []>} : vector<2x64xf32>, vector<64x32xf32>, vector<2x32xf32> -> vector<2x32xf32>
    %16 = arith.addf %10, %15 : vector<2x32xf32>
    %c0_17 = arith.constant 0 : index
    %c0_18 = arith.constant 0 : index
    %17 = vector.load %arg3[%c0_17, %c0_18] : memref<1x32xf32, #tpu.memory_space<vmem>>, vector<1x32xf32>
    %18 = vector.broadcast %17 : vector<1x32xf32> to vector<2x32xf32>
    %19 = arith.addf %16, %18 : vector<2x32xf32>
    %cst_19 = arith.constant 0.000000e+00 : f32
    %20 = vector.broadcast %cst_19 : f32 to vector<2x32xf32>
    %21 = arith.maximumf %19, %20 : vector<2x32xf32>
    %c0_20 = arith.constant 0 : index
    %c0_21 = arith.constant 0 : index
    %22 = vector.load %arg4[%c0_20, %c0_21] : memref<32x1xf32, #tpu.memory_space<vmem>>, vector<32x1xf32>
    %cst_22 = arith.constant dense<0.000000e+00> : vector<2x1xf32>
    %23 = tpu.matmul %21, %22, %cst_22 {dimension_numbers = #tpu.dot_dimension_numbers<[1], [0], [0], [1], [0, 0, 1, 1], [], []>} : vector<2x32xf32>, vector<32x1xf32>, vector<2x1xf32> -> vector<2x1xf32>
    %c0_23 = arith.constant 0 : index
    %c0_24 = arith.constant 0 : index
    %24 = vector.load %arg5[%c0_23, %c0_24] : memref<1x1xf32, #tpu.memory_space<vmem>>, vector<1x1xf32>
    %25 = vector.broadcast %24 : vector<1x1xf32> to vector<2x1xf32>
    %26 = arith.addf %23, %25 : vector<2x1xf32>
    %27 = arith.negf %26 : vector<2x1xf32>
    %28 = math.exp %27 : vector<2x1xf32>
    %cst_25 = arith.constant 1.000000e+00 : f32
    %29 = vector.broadcast %cst_25 : f32 to vector<2x1xf32>
    %30 = arith.addf %29, %28 : vector<2x1xf32>
    %31 = arith.divf %29, %30 : vector<2x1xf32>
    %c0_26 = arith.constant 0 : index
    %c0_27 = arith.constant 0 : index
    %32 = vector.load %arg6[%c0_26, %c0_27] : memref<2x1xf32, #tpu.memory_space<vmem>>, vector<2x1xf32>
    tpu.vector_store %arg6[%c0_26, %c0_27], %31 {strides = array<i32>} : memref<2x1xf32, #tpu.memory_space<vmem>>, vector<2x1xf32>,
    return
  }
  func.func @transform_0(%arg0: i32) -> (i32, i32, i32) {
    %c0_i32 = arith.constant 0 : i32
    %c0_i32_0 = arith.constant 0 : i32
    %c0_i32_1 = arith.constant 0 : i32
    %c0_i32_2 = arith.constant 0 : i32
    return %c0_i32, %c0_i32_0, %c0_i32_1 : i32, i32, i32
  }
  func.func @transform_1(%arg0: i32) -> (i32, i32, i32) {
    %c0_i32 = arith.constant 0 : i32
    %c0_i32_0 = arith.constant 0 : i32
    %c0_i32_1 = arith.constant 0 : i32
    %c0_i32_2 = arith.constant 0 : i32
    return %c0_i32, %c0_i32_0, %c0_i32_1 : i32, i32, i32
  }
  func.func @transform_2(%arg0: i32) -> (i32, i32) {
    %c0_i32 = arith.constant 0 : i32
    %c0_i32_0 = arith.constant 0 : i32
    %c0_i32_1 = arith.constant 0 : i32
    return %c0_i32, %c0_i32_0 : i32, i32
  }
  func.func @transform_3(%arg0: i32) -> (i32, i32) {
    %c0_i32 = arith.constant 0 : i32
    %c0_i32_0 = arith.constant 0 : i32
    %c0_i32_1 = arith.constant 0 : i32
    return %c0_i32, %c0_i32_0 : i32, i32
  }
  func.func @transform_4(%arg0: i32) -> (i32, i32) {
    %c0_i32 = arith.constant 0 : i32
    %c0_i32_0 = arith.constant 0 : i32
    %c0_i32_1 = arith.constant 0 : i32
    return %c0_i32, %c0_i32_0 : i32, i32
  }
  func.func @transform_5(%arg0: i32) -> (i32, i32) {
    %c0_i32 = arith.constant 0 : i32
    %c0_i32_0 = arith.constant 0 : i32
    %c0_i32_1 = arith.constant 0 : i32
    return %c0_i32, %c0_i32_0 : i32, i32
  }
}

</mosaic_0001>

<bundles_post_ra>
// kernel: tile.33
= control target key start
LH: loop header
LB: loop body
LE: loop exit
PB: predicated region body
PF: predicated region fallthrough
CT: control target
= control target key end

     0   :  { %s28_s0 = inlined_call_operand.vmem [shape: f32[16], index: 0, kind: input, shape index: {}]   ;;  %s29_s1 = inlined_call_operand.vmem [shape: f32[15,16], index: 1, kind: output, shape index: {}]  }
   0x1   :  { %v4_v0 = vld [vmem:[%s28_s0] ss:$0 sm:$0xff] }
   0x2   :  { %5 = vst [vmem:[%s29_s1] sm:$0xff] %v4_v0  ;;  %8 = vst [vmem:[%s29_s1 + $0x8] sm:$0xff] %v4_v0 }

// kernel: tile.54
= control target key start
LH: loop header
LB: loop body
LE: loop exit
PB: predicated region body
PF: predicated region fallthrough
CT: control target
= control target key end

     0   :  { %s20_s8 = smov 3  ;;  %s83_s9 = smov 112   ;;  %vm4_vm0 = vcmask 130048   ;;  %vm10_vm1 = vcmask 1048448   ;;  %vm17_vm2 = vcmask 917248   ;;  %vm24_vm3 = vcmask 786048   ;;  %s130_s0 = inlined_call_operand.vmem [shape: f32[15,16], index: 0, kind: input, shape index: {}]   ;;  %s131_s1 = inlined_call_operand.vmem [shape: f32[1,1,240], index: 1, kind: output, shape index: {}]  }
   0x1   :  { %v68_v0 = vld [vmem:[%s130_s0 + $0x7] sm:$0x1]   ;;  %v70_v1 = vld [vmem:[%s130_s0 + $0x5] ss:$8 sm:%s20_s8]   ;;  %s13_s12 = smov 3  ;;  %s84_s13 = smov 80  }
   0x2   :  { %8 = vrot.lane.b32.xlu0 %v68_v0, %s83_s9  ;;  %22 = vrot.lane.b32.xlu1 %v70_v1, %s84_s13  ;;  %v69_v2 = vld [vmem:[%s130_s0 + $0x6] ss:$8 sm:%s13_s12]   ;;  %s27_s16 = smov 3  ;;  %s34_s19 = smov 3  ;;  %vm31_vm4 = vcmask 654848   ;;  %vm38_vm5 = vcmask 523648  }
   0x3   :  { %v71_v3 = vld [vmem:[%s130_s0 + $0x4] ss:$8 sm:%s27_s16]   ;;  %s41_s20 = smov 3  ;;  %s85_s21 = smov 96   ;;  %v72_v4 = vld [vmem:[%s130_s0 + $0x3] ss:$8 sm:%s34_s19]  }
   0x4   :  { %s86_s22 = smov 64   ;;  %s2_s25 = smov 3  ;;  %v73_v5 = vld [vmem:[%s130_s0 + $0x2] ss:$8 sm:%s41_s20]   ;;  %vm45_vm6 = vcmask 392448   ;;  %vm52_vm7 = vcmask 261248  }
   0x5   :  { %s48_s28 = smov 3  ;;  %v3_v6 = vld [vmem:[%s130_s0] ss:$8 sm:%s2_s25]   ;;  %s87_s2 = smov 48  }
   0x6   :  { %15 = vrot.lane.b32.xlu0 %v69_v2, %s85_s21  ;;  %29 = vrot.lane.b32.xlu1 %v71_v3, %s86_s22  ;;  %5 = vst.msk [vmem:[#allocation0] ss:$8 sm:$0x3] %vm4_vm0, %v3_v6   ;;  %s88_s3 = smov 32   ;;  %v74_v7 = vld [vmem:[%s130_s0 + $0x1] ss:$8 sm:%s48_s28]  }
   0x7   :  { %s89_s0 = smov 16  }
   0xa   :  { %36 = vrot.lane.b32.xlu0 %v72_v4, %s87_s2  ;;  %43 = vrot.lane.b32.xlu1 %v73_v5, %s88_s3 }
   0xe   :  { %50 = vrot.lane.b32.xlu0 %v74_v7, %s89_s0 }
  0x74   :  { %v9_v8 = vpop.permute.xlu0 %8   ;;  %v23_v9 = vpop.permute.xlu1 %22  }
  0x75   :  { %11 = vst.msk [vmem:[#allocation0] sm:$0x1] %vm10_vm1, %v9_v8  }
  0x78   :  { %v16_v10 = vpop.permute.xlu0 %15   ;;  %v30_v11 = vpop.permute.xlu1 %29  }
  0x79   :  { %18 = vst.msk [vmem:[#allocation0] ss:$8 sm:$0x3] %vm17_vm2, %v16_v10  }
  0x7a   :  { %25 = vst.msk [vmem:[#allocation0] ss:$8 sm:$0x3] %vm24_vm3, %v23_v9  }
  0x7b   :  { %32 = vst.msk [vmem:[#allocation0] ss:$8 sm:$0x3] %vm31_vm4, %v30_v11  }
  0x7c   :  { %v37_v12 = vpop.permute.xlu0 %36   ;;  %v44_v13 = vpop.permute.xlu1 %43  }
  0x7d   :  { %39 = vst.msk [vmem:[#allocation0] ss:$8 sm:$0x3] %vm38_vm5, %v37_v12  }
  0x7e   :  { %46 = vst.msk [vmem:[#allocation0] ss:$8 sm:$0x3] %vm45_vm6, %v44_v13  }
  0x80   :  { %v51_v14 = vpop.permute.xlu0 %50  }
  0x81   :  { %53 = vst.msk [vmem:[#allocation0] ss:$8 sm:$0x3] %vm52_vm7, %v51_v14  }
  0x88   :  { %v58_v15 = vld [vmem:[#allocation0] sm:$0x1]  ;;  %v63_v16 = vld [vmem:[#allocation0 + $0x8] sm:$0x1] }
  0x89   :  { %61 = vst [vmem:[%s131_s1] sm:$0x1] %v58_v15  ;;  %75 = vst [vmem:[%s131_s1 + $0x1] sm:$0x1] %v63_v16 }

// kernel: tile.37
= control target key start
LH: loop header
LB: loop body
LE: loop exit
PB: predicated region body
PF: predicated region fallthrough
CT: control target
= control target key end

     0   :  { %s22_s0 = inlined_call_operand.vmem [shape: f32[32], index: 0, kind: input, shape index: {}]   ;;  %s23_s1 = inlined_call_operand.vmem [shape: f32[6,32], index: 1, kind: output, shape index: {}]  }
   0x1   :  { %v4_v0 = vld [vmem:[%s22_s0] ss:$0 sm:$0xff] }
   0x2   :  { %5 = vst [vmem:[%s23_s1] sm:$0xff] %v4_v0 }

// kernel: tile.56
= control target key start
LH: loop header
LB: loop body
LE: loop exit
PB: predicated region body
PF: predicated region fallthrough
CT: control target
= control target key end

     0   :  { %s46_s8 = smov 96   ;;  %s19_s9 = smov 3  ;;  %vm4_vm0 = vcmask 261120   ;;  %vm10_vm1 = vcmask 1048320   ;;  %vm16_vm2 = vcmask 785920   ;;  %vm23_vm3 = vcmask 523520   ;;  %s77_s0 = inlined_call_operand.vmem [shape: f32[6,32], index: 0, kind: input, shape index: {}]   ;;  %s78_s1 = inlined_call_operand.vmem [shape: f32[1,1,192], index: 1, kind: output, shape index: {}]  }
   0x1   :  { %v39_v0 = vld [vmem:[%s77_s0 + $0x3] sm:$0x1]   ;;  %v40_v1 = vld [vmem:[%s77_s0 + $0x2] sm:$0x1]   ;;  %v41_v2 = vld [vmem:[%s77_s0 + $0x1] ss:$4 sm:%s19_s9]  }
   0x2   :  { %8 = vrot.lane.b32.xlu0 %v39_v0, %s46_s8  ;;  %s2_s14 = smov 3  ;;  %s47_s15 = smov 32  }
   0x3   :  { %21 = vrot.lane.b32.xlu1 %v41_v2, %s47_s15  ;;  %v3_v3 = vld [vmem:[%s77_s0] ss:$4 sm:%s2_s14]   ;;  %s48_s0 = smov 64  }
   0x4   :  { %5 = vst.msk [vmem:[#allocation0] ss:$8 sm:$0x3] %vm4_vm0, %v3_v3  }
   0x6   :  { %14 = vrot.lane.b32.xlu0 %v40_v1, %s48_s0 }
  0x74   :  { %v9_v4 = vpop.permute.xlu0 %8  }
  0x75   :  { %11 = vst.msk [vmem:[#allocation0] sm:$0x1] %vm10_vm1, %v9_v4   ;;  %v22_v5 = vpop.permute.xlu1 %21  }
  0x78   :  { %v15_v6 = vpop.permute.xlu0 %14  }
  0x79   :  { %17 = vst.msk [vmem:[#allocation0] sm:$0x1] %vm16_vm2, %v15_v6  }
  0x7a   :  { %24 = vst.msk [vmem:[#allocation0] ss:$8 sm:$0x3] %vm23_vm3, %v22_v5  }
  0x81   :  { %v29_v7 = vld [vmem:[#allocation0] sm:$0x1]  ;;  %v34_v8 = vld [vmem:[#allocation0 + $0x8] sm:$0x1] }
  0x82   :  { %32 = vst [vmem:[%s78_s1] sm:$0x1] %v29_v7  ;;  %42 = vst [vmem:[%s78_s1 + $0x1] sm:$0x1] %v34_v8 }

// kernel: tile.41
= control target key start
LH: loop header
LB: loop body
LE: loop exit
PB: predicated region body
PF: predicated region fallthrough
CT: control target
= control target key end

     0   :  { %s22_s0 = inlined_call_operand.vmem [shape: f32[64], index: 0, kind: input, shape index: {}]   ;;  %s23_s1 = inlined_call_operand.vmem [shape: f32[2,64], index: 1, kind: output, shape index: {}]  }
   0x1   :  { %v4_v0 = vld [vmem:[%s22_s0] ss:$0 sm:$0xff] }
   0x2   :  { %5 = vst [vmem:[%s23_s1] sm:$0x3] %v4_v0 }

// kernel: tile.58
= control target key start
LH: loop header
LB: loop body
LE: loop exit
PB: predicated region body
PF: predicated region fallthrough
CT: control target
= control target key end

     0   :  { %vm8_vm0 = vcmask 523264   ;;  %vm14_vm1 = vcmask 1048064   ;;  %s42_s0 = inlined_call_operand.vmem [shape: f32[2,64], index: 0, kind: input, shape index: {}]   ;;  %s43_s1 = inlined_call_operand.vmem [shape: f32[1,1,128], index: 1, kind: output, shape index: {}]  }
   0x1   :  { %v5_v0 = vld [vmem:[%s42_s0] sm:$0x3]  ;;  %s25_s0 = smov 64  }
   0x2   :  { %6 = vst [vmem:[#allocation1] sm:$0x3] %v5_v0 }
   0x9   :  { %v11_v1 = vld [vmem:[#allocation1 + $0x1] sm:$0x1]   ;;  %v7_v2 = vld [vmem:[#allocation1] sm:$0x1]  }
   0xa   :  { %12 = vrot.lane.b32.xlu0 %v11_v1, %s25_s0  ;;  %9 = vst.msk [vmem:[#allocation0] sm:$0x1] %vm8_vm0, %v7_v2  }
  0x7c   :  { %v13_v3 = vpop.permute.xlu0 %12  }
  0x7d   :  { %15 = vst.msk [vmem:[#allocation0] sm:$0x1] %vm14_vm1, %v13_v3  }
  0x84   :  { %v20_v4 = vld [vmem:[#allocation0] sm:$0x1] }
  0x85   :  { %23 = vst [vmem:[%s43_s1] sm:$0x1] %v20_v4 }

// kernel: vccnn_forward.3
= control target key start
LH: loop header
LB: loop body
LE: loop exit
PB: predicated region body
PF: predicated region fallthrough
CT: control target
= control target key end

     0   :  { %v511_v0 = vmov 0.0   ;;  %vm42_vm0 = vcmask 523264   ;;  %vm512_vm1 = vmmov 0   ;;  %vm294_vm2 = vcmask 261120   ;;  %s684_s1 = inlined_call_operand.vmem [shape: f32[3,64,32], index: 1, kind: input, shape index: {}]   ;;  %s685_s0 = inlined_call_operand.vmem [shape: f32[3,2,64], index: 0, kind: input, shape index: {}]   ;;  %s686_s3 = inlined_call_operand.vmem [shape: f32[32,1], index: 3, kind: input, shape index: {}]   ;;  %s687_s4 = inlined_call_operand.<no memory space> [shape: f32[1,1], index: 4, kind: input, shape index: {}]   ;;  %s688_s2 = inlined_call_operand.vmem [shape: f32[1,32], index: 2, kind: input, shape index: {}]   ;;  %s689_s5 = inlined_call_operand.vmem [shape: f32[2,1], index: 5, kind: output, shape index: {}]  }
   0x1   :  { %437 = vmatprep.subr.mxu0 %v511_v0  ;;  %v388_v1 = vld [vmem:[%s684_s1 + $0x78] sm:$0xff]  ;;  %456 = vmatprep.subr.mxu1 %v511_v0  ;;  %v387_v3 = vld [vmem:[%s684_s1 + $0x70] sm:$0xff]  ;;  %v386_v5 = vld [vmem:[%s684_s1 + $0x68] sm:$0xff]  ;;  %v10_v32 = vstv %s687_s4  ;;  %vm374_vm3 = vcmask 1024  }
   0x2   :  { %v30_v2 = vld [vmem:[%s684_s1 + $0x38] sm:$0xff]  ;;  %438 = vmatpush3.msra.mxu0 %v388_v1  ;;  %v29_v4 = vld [vmem:[%s684_s1 + $0x30] sm:$0xff]  ;;  %v28_v6 = vld [vmem:[%s684_s1 + $0x28] sm:$0xff]  ;;  %453 = vmatprep.mubr.msk.f32.mxu0 %vm512_vm1, %v511_v0  ;;  %11 = vst [vmem:[#allocation2] sm:$0x1] %v10_v32 }
   0x3   :  { %457 = vmatpush3.msra.mxu1 %v30_v2  ;;  %439 = vmatprep.subr.mxu0 %v511_v0  ;;  %v385_v7 = vld [vmem:[%s684_s1 + $0x60] sm:$0xff]  ;;  %v384_v9 = vld [vmem:[%s684_s1 + $0x58] sm:$0xff]  ;;  %v383_v11 = vld [vmem:[%s684_s1 + $0x50] sm:$0xff] }
   0x4   :  { %458 = vmatprep.subr.mxu1 %v511_v0  ;;  %440 = vmatpush3.msra.mxu0 %v387_v3  ;;  %v27_v8 = vld [vmem:[%s684_s1 + $0x20] sm:$0xff]  ;;  %v26_v10 = vld [vmem:[%s684_s1 + $0x18] sm:$0xff]  ;;  %v25_v12 = vld [vmem:[%s684_s1 + $0x10] sm:$0xff] }
   0x5   :  { %459 = vmatpush3.msra.mxu1 %v29_v4  ;;  %441 = vmatprep.subr.mxu0 %v511_v0  ;;  %v382_v13 = vld [vmem:[%s684_s1 + $0x48] sm:$0xff]  ;;  %v381_v15 = vld [vmem:[%s684_s1 + $0x40] sm:$0xff]  ;;  %v399_v19 = vld [vmem:[%s684_s1 + $0xb8] sm:$0xff] }
   0x6   :  { %460 = vmatprep.subr.mxu1 %v511_v0  ;;  %442 = vmatpush3.msra.mxu0 %v386_v5  ;;  %v24_v14 = vld [vmem:[%s684_s1 + $0x8] sm:$0xff]  ;;  %v380_v16 = vld [vmem:[%s685_s0 + $0x2] sm:$0x3]  ;;  %v22_v18 = vld [vmem:[%s685_s0] sm:$0x3] }
   0x7   :  { %461 = vmatpush3.msra.mxu1 %v28_v6  ;;  %443 = vmatprep.subr.mxu0 %v511_v0  ;;  %v23_v17 = vld [vmem:[%s684_s1] sm:$0xff]  ;;  %v398_v20 = vld [vmem:[%s684_s1 + $0xb0] sm:$0xff]  ;;  %v397_v21 = vld [vmem:[%s684_s1 + $0xa8] sm:$0xff] }
   0x8   :  { %462 = vmatprep.subr.mxu1 %v511_v0  ;;  %444 = vmatpush3.msra.mxu0 %v385_v7  ;;  %v396_v22 = vld [vmem:[%s684_s1 + $0xa0] sm:$0xff]  ;;  %v395_v23 = vld [vmem:[%s684_s1 + $0x98] sm:$0xff]  ;;  %v394_v24 = vld [vmem:[%s684_s1 + $0x90] sm:$0xff] }
   0x9   :  { %463 = vmatpush3.msra.mxu1 %v27_v8  ;;  %445 = vmatprep.subr.mxu0 %v511_v0  ;;  %v393_v25 = vld [vmem:[%s684_s1 + $0x88] sm:$0xff]  ;;  %v392_v26 = vld [vmem:[%s684_s1 + $0x80] sm:$0xff]  ;;  %v286_v28 = vld [vmem:[%s686_s3 + $0x18] sm:$0xff] }
   0xa   :  { %464 = vmatprep.subr.mxu1 %v511_v0  ;;  %446 = vmatpush3.msra.mxu0 %v384_v9  ;;  %v391_v27 = vld [vmem:[%s685_s0 + $0x4] sm:$0x3]  ;;  %v285_v29 = vld [vmem:[%s686_s3 + $0x10] sm:$0xff]  ;;  %v284_v30 = vld [vmem:[%s686_s3 + $0x8] sm:$0xff] }
   0xb   :  { %465 = vmatpush3.msra.mxu1 %v26_v10  ;;  %447 = vmatprep.subr.mxu0 %v511_v0  ;;  %v283_v31 = vld [vmem:[%s686_s3] sm:$0xff] }
   0xc   :  { %466 = vmatprep.subr.mxu1 %v511_v0  ;;  %448 = vmatpush3.msra.mxu0 %v383_v11  ;;  %v401_v39 = vld [vmem:[%s688_s2] ss:$0 sm:$0xff] }
   0xd   :  { %467 = vmatpush3.msra.mxu1 %v25_v12  ;;  %449 = vmatprep.subr.mxu0 %v511_v0  ;;  %v402_v44 = vld [vmem:[#allocation2] ss:$0 sm:$0xff] }
   0xe   :  { %468 = vmatprep.subr.mxu1 %v511_v0  ;;  %450 = vmatpush3.msra.mxu0 %v382_v13 }
   0xf   :  { %469 = vmatpush3.msra.mxu1 %v24_v14  ;;  %451 = vmatprep.subr.mxu0 %v511_v0 }
  0x10   :  { %452 = vmatpush3.msra.mxu0 %v381_v15  ;;  %470 = vmatprep.subr.mxu1 %v511_v0 }
  0x11   :  { %454 = vmatmul.mubr.msk.f32.vlgmr.msra.gmra.mxu0 %vm42_vm0, %v380_v16  ;;  %471 = vmatpush3.msra.mxu1 %v23_v17 }
  0x12   :  { %472 = vmatprep.mubr.msk.f32.mxu1 %vm512_vm1, %v511_v0  ;;  %475 = vmatprep.subr.mxu0 %v511_v0 }
  0x13   :  { %473 = vmatmul.mubr.msk.f32.vlgmr.msra.gmra.mxu1 %vm42_vm0, %v22_v18  ;;  %476 = vmatpush3.msra.mxu0 %v399_v19 }
  0x14   :  { %477 = vmatprep.subr.mxu0 %v511_v0  ;;  %491 = vmatprep.mubr.msk.f32.mxu0 %vm512_vm1, %v511_v0 }
  0x15   :  { %478 = vmatpush3.msra.mxu0 %v398_v20  ;;  %494 = vmatprep.subr.mxu1 %v511_v0 }
  0x16   :  { %479 = vmatprep.subr.mxu0 %v511_v0  ;;  %502 = vmatprep.mubr.msk.f32.mxu1 %vm512_vm1, %v511_v0 }
  0x17   :  { %480 = vmatpush3.msra.mxu0 %v397_v21  ;;  %495 = vmatpush3.msra.mxu1 %v286_v28 }
  0x18   :  { %481 = vmatprep.subr.mxu0 %v511_v0  ;;  %496 = vmatprep.subr.mxu1 %v511_v0 }
  0x19   :  { %482 = vmatpush3.msra.mxu0 %v396_v22  ;;  %497 = vmatpush3.msra.mxu1 %v285_v29 }
  0x1a   :  { %483 = vmatprep.subr.mxu0 %v511_v0  ;;  %498 = vmatprep.subr.mxu1 %v511_v0 }
  0x1b   :  { %484 = vmatpush3.msra.mxu0 %v395_v23  ;;  %499 = vmatpush3.msra.mxu1 %v284_v30 }
  0x1c   :  { %485 = vmatprep.subr.mxu0 %v511_v0  ;;  %500 = vmatprep.subr.mxu1 %v511_v0 }
  0x1d   :  { %486 = vmatpush3.msra.mxu0 %v394_v24  ;;  %501 = vmatpush3.msra.mxu1 %v283_v31 }
  0x1e   :  { %487 = vmatprep.subr.mxu0 %v511_v0 }
  0x1f   :  { %488 = vmatpush3.msra.mxu0 %v393_v25 }
  0x20   :  { %489 = vmatprep.subr.mxu0 %v511_v0 }
  0x21   :  { %490 = vmatpush3.msra.mxu0 %v392_v26 }
  0x22   :  { %492 = vmatmul.mubr.msk.f32.vlgmr.msra.gmra.mxu0 %vm42_vm0, %v391_v27 }
  0xd1   :  { %v112_v33 = vpop.f32.mrf.mxu0 }
  0xd3   :  { %v185_v34 = vpop.f32.mrf.mxu1  ;;  %v455_v35 = vpop.f32.mrf.mxu0 }
  0xd4   :  { %v186_v37 = vadd.f32 %v185_v34, %v112_v33 }
  0xd5   :  { %v474_v36 = vpop.f32.mrf.mxu1 }
  0xe2   :  { %v269_v38 = vpop.f32.mrf.mxu0 }
  0xe3   :  { %v273_v40 = vadd.f32 %v269_v38, %v186_v37 }
  0xe4   :  { %v493_v41 = vpop.f32.mrf.mxu0 }
  0xe5   :  { %v281_v42 = vadd.f32 %v401_v39, %v273_v40 }
  0xe7   :  { %v282_v43 = vmax.f32 %v281_v42, 0.0 }
  0xe9   :  { %503 = vmatmul.mubr.msk.f32.vlgmr.msra.gmra.mxu1 %vm294_vm2, %v282_v43 }
 0x1a9   :  { %v364_v45 = vpop.f32.mrf.mxu1 }
 0x1aa   :  { %v365_v46 = vadd.f32 %v402_v44, %v364_v45 }
 0x1ab   :  { %v504_v47 = vpop.f32.mrf.mxu1 }
 0x1ac   :  { %v404_v48 = vmul.f32 -1.442695, %v365_v46 }
 0x1ae   :  { %507 = vpow2.f32 %v404_v48 }
 0x1bb   :  { %v508_v49 = vpop.eup %507 }
 0x1bc   :  { %v371_v50 = vadd.f32 1.0, %v508_v49 }
 0x1be   :  { %509 = vrcp.f32 %v371_v50 }
 0x1cb   :  { %v510_v51 = vpop.eup %509 }
 0x1cc   :  { %375 = vst.msk [vmem:[%s689_s5] sm:$0x3] %vm374_vm3, %v510_v51 }

// kernel: vccnn_forward.2
= control target key start
LH: loop header
LB: loop body
LE: loop exit
PB: predicated region body
PF: predicated region fallthrough
CT: control target
= control target key end

     0   :  { %s6291_s27 = smov 0   ;;  %s8985_s0 = inlined_call_operand.vmem [shape: f32[2,64,32], index: 0, kind: input, shape index: {}]   ;;  %s8986_s1 = inlined_call_operand.vmem [shape: f32[120,64], index: 1, kind: input, shape index: {}]   ;;  %s8987_s2 = inlined_call_operand.vmem [shape: f32[48,30], index: 2, kind: input, shape index: {}]   ;;  %s8988_s3 = inlined_call_operand.vmem [shape: f32[16,12], index: 3, kind: input, shape index: {}]   ;;  %s8989_s4 = inlined_call_operand.vmem [shape: f32[2,128,240], index: 4, kind: input, shape index: {}]   ;;  %s8990_s5 = inlined_call_operand.vmem [shape: f32[2,1,240], index: 5, kind: input, shape index: {}]   ;;  %s8991_s6 = inlined_call_operand.vmem [shape: f32[2,960,192], index: 6, kind: input, shape index: {}]   ;;  %s8992_s7 = inlined_call_operand.vmem [shape: f32[2,1,192], index: 7, kind: input, shape index: {}]   ;;  %s8993_s8 = inlined_call_operand.vmem [shape: f32[2,768,128], index: 8, kind: input, shape index: {}]   ;;  %s8994_s9 = inlined_call_operand.vmem [shape: f32[2,1,128], index: 9, kind: input, shape index: {}]   ;;  %s8995_s10 = inlined_call_operand.vmem [shape: f32[128,1], index: 10, kind: input, shape index: {}]   ;;  %s8996_s11 = inlined_call_operand.vmem [shape: f32[544,98], index: 11, kind: input, shape index: {}]   ;;  %s8997_s12 = inlined_call_operand.vmem [shape: f32[16,16], index: 12, kind: input, shape index: {}]   ;;  %s8998_s13 = inlined_call_operand.vmem [shape: f32[1,16], index: 13, kind: input, shape index: {}]   ;;  %s8999_s14 = inlined_call_operand.vmem [shape: f32[256,32], index: 14, kind: input, shape index: {}]   ;;  %s9000_s15 = inlined_call_operand.vmem [shape: f32[1,32], index: 15, kind: input, shape index: {}]   ;;  %s9001_s16 = inlined_call_operand.vmem [shape: f32[256,64], index: 16, kind: input, shape index: {}]   ;;  %s9002_s17 = inlined_call_operand.vmem [shape: f32[1,64], index: 17, kind: input, shape index: {}]   ;;  %s9003_s18 = inlined_call_operand.vmem [shape: f32[3,2,64], index: 18, kind: output, shape index: {}]  }
   0x1   :  { %9022 = sst [smem:[#allocation3_spill]] %s8985_s0 }
   0x2   :  { %9023 = sst [smem:[#allocation4_spill]] %s8986_s1 }
   0x3   :  { %9024 = sst [smem:[#allocation5_spill]] %s8987_s2 }
   0x4   :  { %9025 = sst [smem:[#allocation6_spill]] %s8989_s4 }
   0x5   :  { %9026 = sst [smem:[#allocation7_spill]] %s8990_s5 }
   0x6   :  { %9027 = sst [smem:[#allocation8_spill]] %s8996_s11 }
   0x7   :  { %9028 = sst [smem:[#allocation9_spill]] %s8998_s13 }
   0x8   :  { %9029 = sst [smem:[#allocation10_spill]] %s8999_s14 }
   0x9   :  { %9030 = sst [smem:[#allocation11_spill]] %s9000_s15 }
   0xa   :  { %9031 = sst [smem:[#allocation12_spill]] %s9001_s16 }
   0xb   :  { %9032 = sst [smem:[#allocation13_spill]] %s9002_s17 }
   0xc LB: > { %9033 = sst [smem:[#allocation2_spill]] %s6163_s27  ;;  %s6297_s28 = sadd.s32 4294967295, %s6163_s27   ;;  %s6163_s27 = sphi %s6291_s27, %s28_s27  }
   0xd   : > { %p5190_p0 = scmp.ge.s32.totalorder %s6163_s27, 1  ;;  %p624_p1 = scmp.lt.s32.totalorder %s6163_s27, 4 }
   0xf   : > { %p625_p2 = pnand %p5190_p0, %p624_p1 }
  0x10   : > { %p717_p3 = scmp.lt.s32.totalorder (!%p625_p2), %s6297_s28, 1  ;;  %p776_p4 = scmp.lt.s32.totalorder (!%p625_p2), %s6297_s28, 2 }
  0x11   : > { %628 = sbr.rel (%p625_p2) target bundleno = 3646 (0xe3e), region = 92  ;;  %s9034_s22 = sld [smem:[#allocation3_spill]] (!%p625_p2) }
  0x12   : > { %s9035_s4 = sld [smem:[#allocation6_spill]] (!%p625_p2)  ;;  %p5221_p5 = scmp.ge.s32.totalorder (!%p625_p2), %s6297_s28, 2 }
  0x13   : > { %s9036_s5 = sld [smem:[#allocation7_spill]] (!%p625_p2) }
  0x16   : > { %s718_s29 = scalar_select %p717_p3, %s6297_s28, 1 }
  0x17   : > { %s777_s30 = scalar_select %p776_p4, %s6297_s28, 2 }
  0x18   : > { %s9193_s29 = smov (!%p717_p3, %s718_s29), 1  ;;  %s9037_s11 = sld [smem:[#allocation4_spill]] (!%p5221_p5) }
  0x19   : > { %s5220_s0 = sshll.u32 %s777_s30, 1  ;;  %s5340_s19 = sshll.u32 %s9193_s29, 6 }
  0x1a   : > { %s5341_s1 = sshll.u32 %s9193_s29, 8  ;;  %s6312_s2 = scalar_lea.vmem %s9034_s22, %s5340_s19 }
  0x1b   : > { %s6317_s25 = scalar_lea.vmem %s9035_s4, %s5341_s1  ;;  %s5204_s26 = sshll.u32 %s9193_s29, 1 }
  0x1c   : > { %s5886_s27 = smul.u32 1920, %s9193_s29  ;;  %s6324_s16 = scalar_lea.vmem %s9036_s5, %s5204_s26 }
  0x1d   : > { %s6329_s13 = scalar_lea.vmem %s8992_s7, %s5204_s26  ;;  %s5887_s22 = smul.u32 768, %s9193_s29 }
  0x1e   : > { %s6334_s21 = scalar_lea.vmem %s8991_s6, %s5886_s27  ;;  %s773_s24 = scalar_lea.vmem %s8994_s9, %s9193_s29 }
  0x1f   : > { %s6344_s15 = scalar_lea.vmem %s9003_s18, %s5220_s0  ;;  %s6349_s14 = scalar_lea.vmem %s8993_s8, %s5887_s22 }
  0x20   : > { %783 = sbr.rel (%p5221_p5) target bundleno = 1902 (0x76e), region = 96  ;;  %s6168_s26 = smov (!%p5221_p5), 64  }
  0x21   : > { %s9038_s20 = sld [smem:[#allocation5_spill]] (!%p5221_p5)  ;;  %s6171_s30 = smov (!%p5221_p5), 80  }
  0x25   : > { %v791_v0 = vld [vmem:[%s6312_s2 + $0x38] sm:$0xff]  ;;  %v6165_v1 = vmov 0.0   ;;  %v790_v2 = vld [vmem:[%s6312_s2 + $0x30] sm:$0xff]  ;;  %vm6166_vm0 = vmmov 0   ;;  %v789_v3 = vld [vmem:[%s6312_s2 + $0x28] sm:$0xff]  ;;  %vm807_vm1 = vcmask 523264  }
  0x26   : > { %5654 = vmatprep.subr.mxu0 %v6165_v1  ;;  %5670 = vmatprep.mubr.msk.f32.mxu0 %vm6166_vm0, %v6165_v1  ;;  %v788_v4 = vld [vmem:[%s6312_s2 + $0x20] sm:$0xff]  ;;  %v787_v5 = vld [vmem:[%s6312_s2 + $0x18] sm:$0xff]  ;;  %v786_v6 = vld [vmem:[%s6312_s2 + $0x10] sm:$0xff]  ;;  %vm998_vm2 = vcmask 1041408   ;;  %vm1024_vm3 = vcmask 1043456   ;;  %vm1049_vm4 = vcmask 1045504  }
  0x27   : > { %5655 = vmatpush3.msra.mxu0 %v791_v0  ;;  %1191 = vmatprep.mubr.f32.mxu1 %v6165_v1  ;;  %v785_v7 = vld [vmem:[%s6312_s2 + $0x8] sm:$0xff]  ;;  %v784_v8 = vld [vmem:[%s6312_s2] sm:$0xff]  ;;  %v794_v11 = vld [vmem:[%s9037_s11 + $0x10] sm:$0xff]  ;;  %s6167_s2 = smov 32   ;;  %vm1069_vm5 = vcmask 261120   ;;  %vm1078_vm6 = vcmask 785408  }
  0x28   : > { %5656 = vmatprep.subr.mxu0 %v6165_v1  ;;  %v792_v9 = vld [vmem:[%s9037_s11] sm:$0xff]  ;;  %v793_v10 = vld [vmem:[%s9037_s11 + $0x8] sm:$0xff]  ;;  %v795_v12 = vld [vmem:[%s9037_s11 + $0x18] sm:$0xff]  ;;  %vm1230_vm7 = vcmask 244736   ;;  %vm1374_vm8 = vcmask 916480   ;;  %vm1419_vm9 = vcmask 654336  }
  0x29   : > { %5657 = vmatpush3.msra.mxu0 %v790_v2  ;;  %v796_v13 = vld [vmem:[%s9037_s11 + $0x20] sm:$0xff]  ;;  %v797_v14 = vld [vmem:[%s9037_s11 + $0x28] sm:$0xff]  ;;  %v798_v15 = vld [vmem:[%s9037_s11 + $0x30] sm:$0xff]  ;;  %vm2002_vm10 = vcmask 97280   ;;  %vm2439_vm11 = vcmask 517120  }
  0x2a   : > { %5658 = vmatprep.subr.mxu0 %v6165_v1  ;;  %v799_v16 = vld [vmem:[%s9037_s11 + $0x38] sm:$0xff]  ;;  %v800_v17 = vld [vmem:[%s9037_s11 + $0x40] sm:$0xff]  ;;  %v801_v18 = vld [vmem:[%s9037_s11 + $0x48] sm:$0xff] }
  0x2b   : > { %5659 = vmatpush3.msra.mxu0 %v789_v3  ;;  %v802_v19 = vld [vmem:[%s9037_s11 + $0x50] sm:$0xff]  ;;  %v803_v20 = vld [vmem:[%s9037_s11 + $0x58] sm:$0xff]  ;;  %v804_v21 = vld [vmem:[%s9037_s11 + $0x60] sm:$0xff] }
  0x2c   : > { %5660 = vmatprep.subr.mxu0 %v6165_v1  ;;  %v805_v22 = vld [vmem:[%s9037_s11 + $0x68] sm:$0xff]  ;;  %v806_v23 = vld [vmem:[%s9037_s11 + $0x70] sm:$0xff]  ;;  %v1114_v31 = vld [vmem:[%s6317_s25 + $0xf8] sm:$0xff] }
  0x2d   : > { %5661 = vmatpush3.msra.mxu0 %v788_v4  ;;  %v1113_v32 = vld [vmem:[%s6317_s25 + $0xf0] sm:$0xff]  ;;  %v1112_v33 = vld [vmem:[%s6317_s25 + $0xe8] sm:$0xff]  ;;  %1127 = vmatprep.subr.mxu1 %v1114_v31  ;;  %v1111_v35 = vld [vmem:[%s6317_s25 + $0xe0] sm:$0xff] }
  0x2e   : > { %5662 = vmatprep.subr.mxu0 %v6165_v1  ;;  %1128 = vmatpush1.msra.mxu1 %v1113_v32  ;;  %v1110_v36 = vld [vmem:[%s6317_s25 + $0xd8] sm:$0xff]  ;;  %v1109_v38 = vld [vmem:[%s6317_s25 + $0xd0] sm:$0xff]  ;;  %v1108_v39 = vld [vmem:[%s6317_s25 + $0xc8] sm:$0xff] }
  0x2f   : > { %5663 = vmatpush3.msra.mxu0 %v787_v5  ;;  %1129 = vmatprep.subr.mxu1 %v1112_v33  ;;  %v1107_v41 = vld [vmem:[%s6317_s25 + $0xc0] sm:$0xff]  ;;  %v1106_v43 = vld [vmem:[%s6317_s25 + $0xb8] sm:$0xff]  ;;  %v1105_v45 = vld [vmem:[%s6317_s25 + $0xb0] sm:$0xff] }
  0x30   : > { %5664 = vmatprep.subr.mxu0 %v6165_v1  ;;  %1130 = vmatpush1.msra.mxu1 %v1111_v35  ;;  %v1104_v48 = vld [vmem:[%s6317_s25 + $0xa8] sm:$0xff]  ;;  %v1103_v50 = vld [vmem:[%s6317_s25 + $0xa0] sm:$0xff]  ;;  %v1102_v53 = vld [vmem:[%s6317_s25 + $0x98] sm:$0xff] }
  0x31   : > { %5665 = vmatpush3.msra.mxu0 %v786_v6  ;;  %1131 = vmatprep.subr.mxu1 %v1110_v36  ;;  %v1101_v58 = vld [vmem:[%s6317_s25 + $0x90] sm:$0xff]  ;;  %v1100_v59 = vld [vmem:[%s6317_s25 + $0x88] sm:$0xff]  ;;  %v1099_v60 = vld [vmem:[%s6317_s25 + $0x80] sm:$0xff] }
  0x32   : > { %5666 = vmatprep.subr.mxu0 %v6165_v1  ;;  %1132 = vmatpush1.msra.mxu1 %v1109_v38  ;;  %v1098_v61 = vld [vmem:[%s6317_s25 + $0x78] sm:$0xff]  ;;  %v1097_v0 = vld [vmem:[%s6317_s25 + $0x70] sm:$0xff]  ;;  %v1096_v2 = vld [vmem:[%s6317_s25 + $0x68] sm:$0xff] }
  0x33   : > { %5667 = vmatpush3.msra.mxu0 %v785_v7  ;;  %1133 = vmatprep.subr.mxu1 %v1108_v39  ;;  %v1095_v3 = vld [vmem:[%s6317_s25 + $0x60] sm:$0xff]  ;;  %v1094_v4 = vld [vmem:[%s6317_s25 + $0x58] sm:$0xff]  ;;  %v1084_v33 = vld [vmem:[%s6317_s25 + $0x8] sm:$0xff] }
  0x34   : > { %5668 = vmatprep.subr.mxu0 %v6165_v1  ;;  %1134 = vmatpush1.msra.mxu1 %v1107_v41 }
  0x35   : > { %5669 = vmatpush3.msra.mxu0 %v784_v8  ;;  %1135 = vmatprep.subr.mxu1 %v1106_v43  ;;  %v1093_v8 = vld [vmem:[%s6317_s25 + $0x50] sm:$0xff] }
  0x36   : > { %5671 = vmatmul.mubr.msk.f32.vlgmr.msra.gmra.mxu0 %vm807_vm1, %v792_v9  ;;  %1136 = vmatpush1.msra.mxu1 %v1105_v45 }
  0x37   : > { %5673 = vmatprep.mubr.msk.f32.mxu0 %vm6166_vm0, %v6165_v1  ;;  %1137 = vmatprep.subr.mxu1 %v1104_v48 }
  0x38   : > { %1138 = vmatpush1.msra.mxu1 %v1103_v50 }
  0x39   : > { %1139 = vmatprep.subr.mxu1 %v1102_v53 }
  0x3a   : > { %5674 = vmatmul.mubr.msk.f32.gmra.mxu0 %vm807_vm1, %v793_v10  ;;  %1140 = vmatpush1.msra.mxu1 %v1101_v58 }
  0x3b   : > { %5676 = vmatprep.mubr.msk.f32.mxu0 %vm6166_vm0, %v6165_v1  ;;  %1141 = vmatprep.subr.mxu1 %v1100_v59 }
  0x3c   : > { %1142 = vmatpush1.msra.mxu1 %v1099_v60 }
  0x3d   : > { %1143 = vmatprep.subr.mxu1 %v1098_v61 }
  0x3e   : > { %5677 = vmatmul.mubr.msk.f32.gmra.mxu0 %vm807_vm1, %v794_v11  ;;  %1144 = vmatpush1.msra.mxu1 %v1097_v0  ;;  %v1092_v11 = vld [vmem:[%s6317_s25 + $0x48] sm:$0xff] }
  0x3f   : > { %5679 = vmatprep.mubr.msk.f32.mxu0 %vm6166_vm0, %v6165_v1  ;;  %1145 = vmatprep.subr.mxu1 %v1096_v2 }
  0x40   : > { %1146 = vmatpush1.msra.mxu1 %v1095_v3 }
  0x41   : > { %1147 = vmatprep.subr.mxu1 %v1094_v4 }
  0x42   : > { %5680 = vmatmul.mubr.msk.f32.gmra.mxu0 %vm807_vm1, %v795_v12  ;;  %1148 = vmatpush1.msra.mxu1 %v1093_v8  ;;  %v1091_v12 = vld [vmem:[%s6317_s25 + $0x40] sm:$0xff] }
  0x43   : > { %5682 = vmatprep.mubr.msk.f32.mxu0 %vm6166_vm0, %v6165_v1  ;;  %1149 = vmatprep.subr.mxu1 %v1092_v11 }
  0x44   : > { %1150 = vmatpush1.msra.mxu1 %v1091_v12 }
  0x46   : > { %5683 = vmatmul.mubr.msk.f32.gmra.mxu0 %vm807_vm1, %v796_v13  ;;  %v1090_v13 = vld [vmem:[%s6317_s25 + $0x38] sm:$0xff] }
  0x47   : > { %5685 = vmatprep.mubr.msk.f32.mxu0 %vm6166_vm0, %v6165_v1  ;;  %1151 = vmatprep.subr.mxu1 %v1090_v13 }
  0x4a   : > { %5686 = vmatmul.mubr.msk.f32.gmra.mxu0 %vm807_vm1, %v797_v14 }
  0x4b   : > { %5688 = vmatprep.mubr.msk.f32.mxu0 %vm6166_vm0, %v6165_v1 }
  0x4e   : > { %5689 = vmatmul.mubr.msk.f32.gmra.mxu0 %vm807_vm1, %v798_v15  ;;  %v1089_v15 = vld [vmem:[%s6317_s25 + $0x30] sm:$0xff] }
  0x4f   : > { %5691 = vmatprep.mubr.msk.f32.mxu0 %vm6166_vm0, %v6165_v1  ;;  %1152 = vmatpush1.msra.mxu1 %v1089_v15 }
  0x52   : > { %5692 = vmatmul.mubr.msk.f32.gmra.mxu0 %vm807_vm1, %v799_v16 }
  0x53   : > { %5694 = vmatprep.mubr.msk.f32.mxu0 %vm6166_vm0, %v6165_v1 }
  0x56   : > { %5695 = vmatmul.mubr.msk.f32.gmra.mxu0 %vm807_vm1, %v800_v17 }
  0x57   : > { %5697 = vmatprep.mubr.msk.f32.mxu0 %vm6166_vm0, %v6165_v1 }
  0x5a   : > { %5698 = vmatmul.mubr.msk.f32.gmra.mxu0 %vm807_vm1, %v801_v18  ;;  %v1088_v18 = vld [vmem:[%s6317_s25 + $0x28] sm:$0xff] }
  0x5b   : > { %5700 = vmatprep.mubr.msk.f32.mxu0 %vm6166_vm0, %v6165_v1  ;;  %1153 = vmatprep.subr.mxu1 %v1088_v18 }
  0x5e   : > { %5701 = vmatmul.mubr.msk.f32.gmra.mxu0 %vm807_vm1, %v802_v19 }
  0x5f   : > { %5703 = vmatprep.mubr.msk.f32.mxu0 %vm6166_vm0, %v6165_v1 }
  0x62   : > { %5704 = vmatmul.mubr.msk.f32.gmra.mxu0 %vm807_vm1, %v803_v20 }
  0x63   : > { %5706 = vmatprep.mubr.msk.f32.mxu0 %vm6166_vm0, %v6165_v1 }
  0x66   : > { %5707 = vmatmul.mubr.msk.f32.gmra.mxu0 %vm807_vm1, %v804_v21  ;;  %v1087_v21 = vld [vmem:[%s6317_s25 + $0x20] sm:$0xff] }
  0x67   : > { %5709 = vmatprep.mubr.msk.f32.mxu0 %vm6166_vm0, %v6165_v1  ;;  %1154 = vmatpush1.msra.mxu1 %v1087_v21 }
  0x6a   : > { %5710 = vmatmul.mubr.msk.f32.gmra.mxu0 %vm807_vm1, %v805_v22 }
  0x6b   : > { %5712 = vmatprep.mubr.msk.f32.mxu0 %vm6166_vm0, %v6165_v1 }
  0x6e   : > { %5713 = vmatmul.mubr.msk.f32.gmra.mxu0 %vm807_vm1, %v806_v23  ;;  %v1086_v23 = vld [vmem:[%s6317_s25 + $0x18] sm:$0xff] }
  0x6f   : > { %1155 = vmatprep.subr.mxu1 %v1086_v23  ;;  %v1115_v23 = vld [vmem:[%s6324_s16] sm:$0x3]  ;;  %s6170_s16 = smov 112  }
  0xf6   : > { %v6459_v24 = vpop.f32.mrf.mxu0 }
  0xf8   : > { %v5672_v25 = vpop.f32.mrf.mxu0 }
  0xfa   : > { %v6461_v26 = vpop.f32.mrf.mxu0 }
  0xfc   : > { %v5675_v27 = vpop.f32.mrf.mxu0 }
  0xfe   : > { %v6463_v28 = vpop.f32.mrf.mxu0 }
 0x100   : > { %v5678_v29 = vpop.f32.mrf.mxu0 }
 0x101   : > { %v1085_v29 = vld [vmem:[%s6317_s25 + $0x10] sm:$0xff] }
 0x102   : > { %v6465_v30 = vpop.f32.mrf.mxu0  ;;  %1156 = vmatpush1.msra.mxu1 %v1085_v29 }
 0x103   : > { %v999_v46 = vrot.slane %v6465_v30, 6  ;;  %1157 = vmatprep.subr.mxu1 %v1084_v33 }
 0x104   : > { %v5681_v34 = vpop.f32.mrf.mxu0 }
 0x105   : > { %v1083_v34 = vld [vmem:[%s6317_s25] sm:$0xff]  ;;  %s6169_s25 = smov 96  }
 0x106   : > { %v939_v37 = vpop.f32.mrf.mxu0  ;;  %1158 = vmatpush1.msra.mxu1 %v1083_v34 }
 0x107   : > { %v1000_v42 = vrot.slane %v939_v37, 6 }
 0x108   : > { %v5684_v40 = vpop.f32.mrf.mxu0 }
 0x109   : > { %v1001_v51 = vsel %vm998_vm2, %v999_v46, %v1000_v42 }
 0x10a   : > { %v6476_v44 = vpop.f32.mrf.mxu0 }
 0x10b   : > { %v1002_v47 = vrot.slane %v6476_v44, 6 }
 0x10c   : > { %v5687_v49 = vpop.f32.mrf.mxu0 }
 0x10d   : > { %v1003_v52 = vsel %vm998_vm2, %v1000_v42, %v1002_v47 }
 0x10e   : > { %v6488_v54 = vpop.f32.mrf.mxu0  ;;  %v5927_v55 = vpack.i.bf16 %v1003_v52, %v1001_v51 }
 0x10f   : > { %v1004_v36 = vrot.slane %v6488_v54, 6 }
 0x110   : > { %5928 = vrot.lane.b32.xlu0 %v5927_v55, %s6167_s2  ;;  %v5690_v56 = vpop.f32.mrf.mxu0 }
 0x111   : > { %v1005_v53 = vsel %vm998_vm2, %v1002_v47, %v1004_v36 }
 0x112   : > { %v6491_v57 = vpop.f32.mrf.mxu0 }
 0x113   : > { %v1025_v9 = vrot.slane %v6491_v57, 4  ;;  %v1006_v31 = vrot.slane %v6491_v57, 6 }
 0x114   : > { %v5693_v62 = vpop.f32.mrf.mxu0 }
 0x115   : > { %v1007_v38 = vsel %vm998_vm2, %v1004_v36, %v1006_v31 }
 0x116   : > { %v959_v63 = vpop.f32.mrf.mxu0 }
 0x117   : > { %v1026_v6 = vrot.slane %v959_v63, 4 }
 0x118   : > { %v5696_v5 = vpop.f32.mrf.mxu0 }
 0x119   : > { %v1027_v16 = vsel %vm1024_vm3, %v1025_v9, %v1026_v6 }
 0x11a   : > { %v964_v7 = vpop.f32.mrf.mxu0 }
 0x11b   : > { %v1028_v10 = vrot.slane %v964_v7, 4 }
 0x11c   : > { %v5699_v14 = vpop.f32.mrf.mxu0 }
 0x11d   : > { %v1029_v17 = vsel %vm1024_vm3, %v1026_v6, %v1028_v10 }
 0x11e   : > { %v969_v19 = vpop.f32.mrf.mxu0  ;;  %v5932_v20 = vpack.i.bf16 %v1029_v17, %v1027_v16  ;;  %v1117_v16 = vlaneseq }
 0x11f   : > { %v1030_v22 = vrot.slane %v969_v19, 4 }
 0x120   : > { %5933 = vrot.lane.b32.xlu0 %v5932_v20, %s6168_s26  ;;  %v5702_v25 = vpop.f32.mrf.mxu0  ;;  %v6554_v19 = vshrl.u32 %v1117_v16, 7  ;;  %v1449_v16 = vld [vmem:[%s6334_s21 + $0x88] sm:$0xff] }
 0x121   : > { %v1031_v32 = vsel %vm1024_vm3, %v1028_v10, %v1030_v22 }
 0x122   : > { %v974_v27 = vpop.f32.mrf.mxu0  ;;  %v1119_v21 = vsub.s32 0, %v6554_v19  ;;  %v1123_v25 = vsub.s32 1, %v6554_v19 }
 0x123   : > { %v1050_v42 = vrot.slane %v974_v27, 2  ;;  %v1032_v54 = vrot.slane %v974_v27, 4 }
 0x124   : > { %1038 = vrot.lane.b32.xlu0 %v1031_v32, %s6168_s26  ;;  %v5705_v35 = vpop.f32.mrf.mxu0  ;;  %v1120_v29 = vrot.slane %v1115_v23, %v1119_v21  ;;  %v1124_v32 = vrot.slane %v1115_v23, %v1123_v25  ;;  %v1446_v23 = vld [vmem:[%s6334_s21 + $0x70] sm:$0xff] }
 0x125   : > { %v1033_v56 = vsel %vm1024_vm3, %v1030_v22, %v1032_v54  ;;  %v1226_v54 = vld [vmem:[%s9038_s20 + $0x10] sm:$0xff] }
 0x126   : > { %v979_v37 = vpop.f32.mrf.mxu0 }
 0x127   : > { %v1051_v40 = vrot.slane %v979_v37, 2 }
 0x128   : > { %1014 = vrot.lane.b32.xlu0 %v1007_v38, %s6167_s2  ;;  %v5708_v39 = vpop.f32.mrf.mxu0 }
 0x129   : > { %v1052_v46 = vsel %vm1049_vm4, %v1050_v42, %v1051_v40 }
 0x12a   : > { %v984_v41 = vpop.f32.mrf.mxu0 }
 0x12b   : > { %v1053_v43 = vrot.slane %v984_v41, 2 }
 0x12c   : > { %v5711_v45 = vpop.f32.mrf.mxu0 }
 0x12d   : > { %v1054_v48 = vsel %vm1049_vm4, %v1051_v40, %v1053_v43 }
 0x12e   : > { %v989_v49 = vpop.f32.mrf.mxu0  ;;  %v5937_v50 = vpack.i.bf16 %v1054_v48, %v1052_v46 }
 0x12f   : > { %v1055_v51 = vrot.slane %v989_v49, 2 }
 0x130   : > { %5938 = vrot.lane.b32.xlu1 %v5937_v50, %s6169_s25  ;;  %v5714_v52 = vpop.f32.mrf.mxu0 }
 0x131   : > { %1063 = vrot.lane.b32.xlu0 %v1055_v51, %s6169_s25  ;;  %v1056_v55 = vsel %vm1049_vm4, %v1053_v43, %v1055_v51  ;;  %v1224_v52 = vld [vmem:[%s9038_s20] sm:$0xff] }
 0x134   : > { %1012 = vrot.lane.b32.xlu1 %v1005_v53, %s6167_s2  ;;  %v1225_v53 = vld [vmem:[%s9038_s20 + $0x8] sm:$0xff] }
 0x138   : > { %1061 = vrot.lane.b32.xlu1 %v1056_v55, %s6169_s25  ;;  %v1227_v55 = vld [vmem:[%s9038_s20 + $0x18] sm:$0xff] }
 0x13c   : > { %1040 = vrot.lane.b32.xlu1 %v1033_v56, %s6168_s26  ;;  %v1228_v56 = vld [vmem:[%s9038_s20 + $0x20] sm:$0xff] }
 0x182   : > { %v5929_v57 = vpop.permute.xlu0 %5928 }
 0x183   : > { %v5930_v59 = vunpack.i.l.bf16 %v5929_v57  ;;  %v5931_v44 = vunpack.i.h.bf16 %v5929_v57  ;;  %v1229_v57 = vld [vmem:[%s9038_s20 + $0x28] sm:$0xff] }
 0x185   : > { %v1070_v62 = vsel %vm1069_vm5, %v6459_v24, %v5930_v59  ;;  %v1071_v6 = vsel %vm1069_vm5, %v6461_v26, %v5931_v44  ;;  %v1462_v59 = vld [vmem:[%s6334_s21 + $0xf0] sm:$0xff]  ;;  %v1459_v44 = vld [vmem:[%s6334_s21 + $0xd8] sm:$0xff] }
 0x192   : > { %v5934_v58 = vpop.permute.xlu0 %5933 }
 0x193   : > { %v5935_v60 = vunpack.i.l.bf16 %v5934_v58  ;;  %v5936_v63 = vunpack.i.h.bf16 %v5934_v58  ;;  %v1463_v58 = vld [vmem:[%s6334_s21 + $0xf8] sm:$0xff] }
 0x194   : > { %1688 = vmatprep.subr.mxu0 %v1463_v58  ;;  %v1432_v58 = vld [vmem:[%s6334_s21] sm:$0xff] }
 0x195   : > { %v1074_v0 = vsel %vm807_vm1, %v1070_v62, %v5935_v60  ;;  %v1075_v7 = vsel %vm807_vm1, %v1071_v6, %v5936_v63  ;;  %v1461_v60 = vld [vmem:[%s6334_s21 + $0xe8] sm:$0xff]  ;;  %1689 = vmatpush1.msra.mxu0 %v1462_v59  ;;  %v1526_v62 = vld [vmem:[%s6334_s21 + $0x2f0] sm:$0xff] }
 0x196   : > { %v1039_v2 = vpop.permute.xlu0 %1038  ;;  %1690 = vmatprep.subr.mxu0 %v1461_v60  ;;  %v1458_v63 = vld [vmem:[%s6334_s21 + $0xd0] sm:$0xff]  ;;  %v1495_v60 = vld [vmem:[%s6334_s21 + $0x1f8] sm:$0xff] }
 0x197   : > { %v1522_v6 = vld [vmem:[%s6334_s21 + $0x2d0] sm:$0xff] }
 0x198   : > { %v1498_v59 = vld [vmem:[%s6334_s21 + $0x210] sm:$0xff] }
 0x19a   : > { %v1015_v10 = vpop.permute.xlu0 %1014 }
 0x19b   : > { %v1073_v13 = vsel %vm1069_vm5, %v6465_v30, %v1015_v10  ;;  %v1453_v10 = vld [vmem:[%s6334_s21 + $0xa8] sm:$0xff] }
 0x1a2   : > { %v5939_v61 = vpop.permute.xlu1 %5938 }
 0x1a3   : > { %v5940_v47 = vunpack.i.l.bf16 %v5939_v61  ;;  %v5941_v3 = vunpack.i.h.bf16 %v5939_v61  ;;  %v1064_v14 = vpop.permute.xlu0 %1063  ;;  %v1460_v61 = vld [vmem:[%s6334_s21 + $0xe0] sm:$0xff] }
 0x1a4   : > { %1691 = vmatpush1.msra.mxu0 %v1460_v61  ;;  %v1497_v61 = vld [vmem:[%s6334_s21 + $0x208] sm:$0xff] }
 0x1a5   : > { %v1079_v4 = vsel %vm1078_vm6, %v1074_v0, %v5940_v47  ;;  %v1080_v24 = vsel %vm1078_vm6, %v1075_v7, %v5941_v3  ;;  %v1527_v47 = vld [vmem:[%s6334_s21 + $0x2f8] sm:$0xff]  ;;  %v1525_v0 = vld [vmem:[%s6334_s21 + $0x2e8] sm:$0xff]  ;;  %v1524_v3 = vld [vmem:[%s6334_s21 + $0x2e0] sm:$0xff]  ;;  %1692 = vmatprep.subr.mxu0 %v1459_v44 }
 0x1a6   : > { %v1013_v5 = vpop.permute.xlu1 %1012  ;;  %1192 = vmatmul.mubr.f32.vlgmr.msra.gmra.mxu1 %v1079_v4  ;;  %v1523_v4 = vld [vmem:[%s6334_s21 + $0x2d8] sm:$0xff]  ;;  %1693 = vmatpush1.msra.mxu0 %v1458_v63  ;;  %v1494_v44 = vld [vmem:[%s6334_s21 + $0x1f0] sm:$0xff] }
 0x1a7   : > { %1197 = vmatprep.mubr.f32.mxu1 %v6165_v1  ;;  %v1072_v8 = vsel %vm1069_vm5, %v6463_v28, %v1013_v5  ;;  %v1456_v5 = vld [vmem:[%s6334_s21 + $0xc0] sm:$0xff]  ;;  %v1455_v7 = vld [vmem:[%s6334_s21 + $0xb8] sm:$0xff] }
 0x1a8   : > { %v1076_v11 = vsel %vm807_vm1, %v1072_v8, %v1039_v2  ;;  %v1457_v2 = vld [vmem:[%s6334_s21 + $0xc8] sm:$0xff]  ;;  %v1559_v63 = vld [vmem:[%s6334_s21 + $0x3f8] sm:$0xff] }
 0x1a9   : > { %v1521_v8 = vld [vmem:[%s6334_s21 + $0x2c8] sm:$0xff]  ;;  %1694 = vmatprep.subr.mxu0 %v1457_v2  ;;  %v1558_v2 = vld [vmem:[%s6334_s21 + $0x3f0] sm:$0xff] }
 0x1aa   : > { %1198 = vmatmul.mubr.f32.gmra.mxu1 %v1080_v24  ;;  %v1062_v9 = vpop.permute.xlu1 %1061  ;;  %v1454_v24 = vld [vmem:[%s6334_s21 + $0xb0] sm:$0xff]  ;;  %1695 = vmatpush1.msra.mxu0 %v1456_v5 }
 0x1ab   : > { %1203 = vmatprep.mubr.f32.mxu1 %v6165_v1  ;;  %v1081_v12 = vsel %vm1078_vm6, %v1076_v11, %v1062_v9  ;;  %v1520_v9 = vld [vmem:[%s6334_s21 + $0x2c0] sm:$0xff]  ;;  %v1519_v11 = vld [vmem:[%s6334_s21 + $0x2b8] sm:$0xff]  ;;  %1696 = vmatprep.subr.mxu0 %v1455_v7  ;;  %v1490_v5 = vld [vmem:[%s6334_s21 + $0x1d0] sm:$0xff] }
 0x1ac   : > { %1697 = vmatpush1.msra.mxu0 %v1454_v24  ;;  %v1489_v7 = vld [vmem:[%s6334_s21 + $0x1c8] sm:$0xff]  ;;  %v1488_v24 = vld [vmem:[%s6334_s21 + $0x1c0] sm:$0xff] }
 0x1ad   : > { %1698 = vmatprep.subr.mxu0 %v1453_v10  ;;  %v1487_v10 = vld [vmem:[%s6334_s21 + $0x1b8] sm:$0xff] }
 0x1ae   : > { %1204 = vmatmul.mubr.f32.gmra.mxu1 %v1081_v12  ;;  %v1041_v26 = vpop.permute.xlu1 %1040  ;;  %v1452_v12 = vld [vmem:[%s6334_s21 + $0xa0] sm:$0xff] }
 0x1af   : > { %v1077_v28 = vsel %vm807_vm1, %v1073_v13, %v1041_v26  ;;  %1209 = vmatprep.mubr.f32.mxu1 %v6165_v1  ;;  %v1518_v13 = vld [vmem:[%s6334_s21 + $0x2b0] sm:$0xff]  ;;  %v1451_v26 = vld [vmem:[%s6334_s21 + $0x98] sm:$0xff]  ;;  %1699 = vmatpush1.msra.mxu0 %v1452_v12 }
 0x1b0   : > { %v1082_v15 = vsel %vm1078_vm6, %v1077_v28, %v1064_v14  ;;  %v1517_v14 = vld [vmem:[%s6334_s21 + $0x2a8] sm:$0xff]  ;;  %v1450_v28 = vld [vmem:[%s6334_s21 + $0x90] sm:$0xff]  ;;  %1700 = vmatprep.subr.mxu0 %v1451_v26 }
 0x1b1   : > { %1701 = vmatpush1.msra.mxu0 %v1450_v28  ;;  %v1486_v12 = vld [vmem:[%s6334_s21 + $0x1b0] sm:$0xff]  ;;  %v1485_v26 = vld [vmem:[%s6334_s21 + $0x1a8] sm:$0xff]  ;;  %v1484_v28 = vld [vmem:[%s6334_s21 + $0x1a0] sm:$0xff] }
 0x1b2   : > { %1210 = vmatmul.mubr.f32.gmra.mxu1 %v1082_v15  ;;  %v1516_v15 = vld [vmem:[%s6334_s21 + $0x2a0] sm:$0xff]  ;;  %1702 = vmatprep.subr.mxu0 %v1449_v16  ;;  %v1483_v16 = vld [vmem:[%s6334_s21 + $0x198] sm:$0xff] }
 0x1b3   : > { %1319 = vmatprep.mubr.f32.mxu1 %v6165_v1 }
 0x266   : > { %v1193_v17 = vpop.f32.mrf.mxu1 }
 0x267   : > { %v1194_v45 = vadd.f32 %v1193_v17, %v1120_v29  ;;  %v1515_v17 = vld [vmem:[%s6334_s21 + $0x298] sm:$0xff] }
 0x268   : > { %v1195_v18 = vpop.f32.mrf.mxu1 }
 0x269   : > { %v1196_v42 = vadd.f32 %v1195_v18, %v1124_v32  ;;  %v1216_v51 = vmax.f32 %v1194_v45, 0.0  ;;  %v1448_v18 = vld [vmem:[%s6334_s21 + $0x80] sm:$0xff]  ;;  %v1438_v45 = vld [vmem:[%s6334_s21 + $0x30] sm:$0xff] }
 0x26a   : > { %v1199_v20 = vpop.f32.mrf.mxu1  ;;  %1703 = vmatpush1.msra.mxu0 %v1448_v18  ;;  %v1482_v18 = vld [vmem:[%s6334_s21 + $0x190] sm:$0xff] }
 0x26b   : > { %v1200_v40 = vadd.f32 %v1199_v20, %v1120_v29  ;;  %v1217_v50 = vmax.f32 %v1196_v42, 0.0  ;;  %v1514_v20 = vld [vmem:[%s6334_s21 + $0x290] sm:$0xff]  ;;  %v1439_v42 = vld [vmem:[%s6334_s21 + $0x38] sm:$0xff] }
 0x26c   : > { %v1201_v30 = vpop.f32.mrf.mxu1 }
 0x26d   : > { %v1202_v38 = vadd.f32 %v1201_v30, %v1124_v32  ;;  %v1218_v49 = vmax.f32 %v1200_v40, 0.0  ;;  %v1447_v30 = vld [vmem:[%s6334_s21 + $0x78] sm:$0xff]  ;;  %v1440_v40 = vld [vmem:[%s6334_s21 + $0x40] sm:$0xff] }
 0x26e   : > { %v1205_v22 = vpop.f32.mrf.mxu1  ;;  %1704 = vmatprep.subr.mxu0 %v1447_v30  ;;  %v1481_v30 = vld [vmem:[%s6334_s21 + $0x188] sm:$0xff] }
 0x26f   : > { %v1206_v37 = vadd.f32 %v1205_v22, %v1120_v29  ;;  %v1219_v48 = vmax.f32 %v1202_v38, 0.0  ;;  %v1513_v22 = vld [vmem:[%s6334_s21 + $0x288] sm:$0xff]  ;;  %1705 = vmatpush1.msra.mxu0 %v1446_v23  ;;  %v1480_v23 = vld [vmem:[%s6334_s21 + $0x180] sm:$0xff] }
 0x270   : > { %v1207_v27 = vpop.f32.mrf.mxu1  ;;  %v1441_v38 = vld [vmem:[%s6334_s21 + $0x48] sm:$0xff] }
 0x271   : > { %v1208_v35 = vadd.f32 %v1207_v27, %v1124_v32  ;;  %v1220_v46 = vmax.f32 %v1206_v37, 0.0  ;;  %v1512_v27 = vld [vmem:[%s6334_s21 + $0x280] sm:$0xff] }
 0x272   : > { %v1211_v31 = vpop.f32.mrf.mxu1  ;;  %v1508_v37 = vld [vmem:[%s6334_s21 + $0x260] sm:$0xff] }
 0x273   : > { %v1212_v33 = vadd.f32 %v1211_v31, %v1120_v29  ;;  %v1221_v43 = vmax.f32 %v1208_v35, 0.0  ;;  %v1445_v29 = vld [vmem:[%s6334_s21 + $0x68] sm:$0xff]  ;;  %v1511_v31 = vld [vmem:[%s6334_s21 + $0x278] sm:$0xff] }
 0x274   : > { %v1213_v34 = vpop.f32.mrf.mxu1  ;;  %v1509_v35 = vld [vmem:[%s6334_s21 + $0x268] sm:$0xff]  ;;  %1706 = vmatprep.subr.mxu0 %v1445_v29  ;;  %v1479_v29 = vld [vmem:[%s6334_s21 + $0x178] sm:$0xff] }
 0x275   : > { %v1214_v36 = vadd.f32 %v1213_v34, %v1124_v32  ;;  %v1222_v41 = vmax.f32 %v1212_v33, 0.0  ;;  %v1444_v32 = vld [vmem:[%s6334_s21 + $0x60] sm:$0xff]  ;;  %v1510_v33 = vld [vmem:[%s6334_s21 + $0x270] sm:$0xff]  ;;  %v1443_v34 = vld [vmem:[%s6334_s21 + $0x58] sm:$0xff] }
 0x276   : > { %1707 = vmatpush1.msra.mxu0 %v1444_v32  ;;  %v1478_v32 = vld [vmem:[%s6334_s21 + $0x170] sm:$0xff] }
 0x277   : > { %v1223_v39 = vmax.f32 %v1214_v36, 0.0  ;;  %v1442_v36 = vld [vmem:[%s6334_s21 + $0x50] sm:$0xff]  ;;  %1708 = vmatprep.subr.mxu0 %v1443_v34  ;;  %v1477_v34 = vld [vmem:[%s6334_s21 + $0x168] sm:$0xff] }
 0x278   : > { %1709 = vmatpush1.msra.mxu0 %v1442_v36  ;;  %v1476_v36 = vld [vmem:[%s6334_s21 + $0x160] sm:$0xff] }
 0x279   : > { %5237 = vmatprep.subr.msk.mxu1 %vm1049_vm4, %v1223_v39  ;;  %v1507_v39 = vld [vmem:[%s6334_s21 + $0x258] sm:$0xff]  ;;  %1710 = vmatprep.subr.mxu0 %v1441_v38 }
 0x27a   : > { %5238 = vmatpush1.msk.msra.mxu1 %vm1049_vm4, %v1222_v41  ;;  %v1506_v41 = vld [vmem:[%s6334_s21 + $0x250] sm:$0xff]  ;;  %1711 = vmatpush1.msra.mxu0 %v1440_v40  ;;  %v1475_v38 = vld [vmem:[%s6334_s21 + $0x158] sm:$0xff] }
 0x27b   : > { %1281 = vmatprep.subr.mxu1 %v1221_v43  ;;  %v1505_v43 = vld [vmem:[%s6334_s21 + $0x248] sm:$0xff]  ;;  %1712 = vmatprep.subr.mxu0 %v1439_v42  ;;  %v1474_v40 = vld [vmem:[%s6334_s21 + $0x150] sm:$0xff] }
 0x27c   : > { %1282 = vmatpush1.msra.mxu1 %v1220_v46  ;;  %v1504_v46 = vld [vmem:[%s6334_s21 + $0x240] sm:$0xff]  ;;  %1713 = vmatpush1.msra.mxu0 %v1438_v45  ;;  %v1473_v42 = vld [vmem:[%s6334_s21 + $0x148] sm:$0xff] }
 0x27d   : > { %1283 = vmatprep.subr.mxu1 %v1219_v48  ;;  %v1437_v48 = vld [vmem:[%s6334_s21 + $0x28] sm:$0xff]  ;;  %v1472_v45 = vld [vmem:[%s6334_s21 + $0x140] sm:$0xff] }
 0x27e   : > { %1284 = vmatpush1.msra.mxu1 %v1218_v49  ;;  %v1503_v49 = vld [vmem:[%s6334_s21 + $0x238] sm:$0xff]  ;;  %1714 = vmatprep.subr.mxu0 %v1437_v48 }
 0x27f   : > { %1285 = vmatprep.subr.mxu1 %v1217_v50  ;;  %v1436_v50 = vld [vmem:[%s6334_s21 + $0x20] sm:$0xff]  ;;  %v1471_v48 = vld [vmem:[%s6334_s21 + $0x138] sm:$0xff] }
 0x280   : > { %1286 = vmatpush1.msra.mxu1 %v1216_v51  ;;  %v1502_v51 = vld [vmem:[%s6334_s21 + $0x230] sm:$0xff]  ;;  %1715 = vmatpush1.msra.mxu0 %v1436_v50 }
 0x281   : > { %5239 = vmatmul.mubr.msk.f32.vlgmr.msra.gmra.mxu1 %vm1230_vm7, %v1224_v52  ;;  %1765 = vmatprep.subr.mxu1 %v1527_v47  ;;  %v1435_v52 = vld [vmem:[%s6334_s21 + $0x18] sm:$0xff]  ;;  %v1496_v47 = vld [vmem:[%s6334_s21 + $0x200] sm:$0xff]  ;;  %v1470_v50 = vld [vmem:[%s6334_s21 + $0x130] sm:$0xff] }
 0x282   : > { %1325 = vmatprep.mubr.f32.mxu1 %v6165_v1  ;;  %1766 = vmatpush1.msra.mxu1 %v1526_v62  ;;  %v1493_v62 = vld [vmem:[%s6334_s21 + $0x1e8] sm:$0xff] }
 0x283   : > { %1767 = vmatprep.subr.mxu1 %v1525_v0  ;;  %1716 = vmatprep.subr.mxu0 %v1435_v52  ;;  %v1492_v0 = vld [vmem:[%s6334_s21 + $0x1e0] sm:$0xff]  ;;  %v1469_v52 = vld [vmem:[%s6334_s21 + $0x128] sm:$0xff] }
 0x284   : > { %1768 = vmatpush1.msra.mxu1 %v1524_v3  ;;  %v1491_v3 = vld [vmem:[%s6334_s21 + $0x1d8] sm:$0xff] }
 0x285   : > { %5240 = vmatmul.mubr.msk.f32.gmra.mxu1 %vm1230_vm7, %v1225_v53  ;;  %1769 = vmatprep.subr.mxu1 %v1523_v4  ;;  %v1501_v53 = vld [vmem:[%s6334_s21 + $0x228] sm:$0xff] }
 0x286   : > { %1331 = vmatprep.mubr.f32.mxu1 %v6165_v1  ;;  %1770 = vmatpush1.msra.mxu1 %v1522_v6  ;;  %v1557_v4 = vld [vmem:[%s6334_s21 + $0x3e8] sm:$0xff]  ;;  %v1556_v6 = vld [vmem:[%s6334_s21 + $0x3e0] sm:$0xff] }
 0x287   : > { %1771 = vmatprep.subr.mxu1 %v1521_v8  ;;  %v1555_v8 = vld [vmem:[%s6334_s21 + $0x3d8] sm:$0xff] }
 0x288   : > { %1772 = vmatpush1.msra.mxu1 %v1520_v9  ;;  %v1554_v9 = vld [vmem:[%s6334_s21 + $0x3d0] sm:$0xff] }
 0x289   : > { %5241 = vmatmul.mubr.msk.f32.gmra.mxu1 %vm1230_vm7, %v1226_v54  ;;  %1773 = vmatprep.subr.mxu1 %v1519_v11  ;;  %v1434_v54 = vld [vmem:[%s6334_s21 + $0x10] sm:$0xff]  ;;  %v1553_v11 = vld [vmem:[%s6334_s21 + $0x3c8] sm:$0xff] }
 0x28a   : > { %1337 = vmatprep.mubr.f32.mxu1 %v6165_v1  ;;  %1774 = vmatpush1.msra.mxu1 %v1518_v13  ;;  %v1552_v13 = vld [vmem:[%s6334_s21 + $0x3c0] sm:$0xff] }
 0x28b   : > { %1775 = vmatprep.subr.mxu1 %v1517_v14  ;;  %1717 = vmatpush1.msra.mxu0 %v1434_v54  ;;  %v1551_v14 = vld [vmem:[%s6334_s21 + $0x3b8] sm:$0xff]  ;;  %v1468_v54 = vld [vmem:[%s6334_s21 + $0x120] sm:$0xff] }
 0x28c   : > { %1776 = vmatpush1.msra.mxu1 %v1516_v15  ;;  %v1550_v15 = vld [vmem:[%s6334_s21 + $0x3b0] sm:$0xff] }
 0x28d   : > { %5242 = vmatmul.mubr.msk.f32.gmra.mxu1 %vm1230_vm7, %v1227_v55  ;;  %1777 = vmatprep.subr.mxu1 %v1515_v17  ;;  %v1500_v55 = vld [vmem:[%s6334_s21 + $0x220] sm:$0xff]  ;;  %v1549_v17 = vld [vmem:[%s6334_s21 + $0x3a8] sm:$0xff] }
 0x28e   : > { %1343 = vmatprep.mubr.f32.mxu1 %v6165_v1  ;;  %1778 = vmatpush1.msra.mxu1 %v1514_v20  ;;  %v1548_v20 = vld [vmem:[%s6334_s21 + $0x3a0] sm:$0xff] }
 0x28f   : > { %1779 = vmatprep.subr.mxu1 %v1513_v22  ;;  %v1547_v22 = vld [vmem:[%s6334_s21 + $0x398] sm:$0xff] }
 0x290   : > { %1780 = vmatpush1.msra.mxu1 %v1512_v27  ;;  %v1546_v27 = vld [vmem:[%s6334_s21 + $0x390] sm:$0xff] }
 0x291   : > { %5243 = vmatmul.mubr.msk.f32.gmra.mxu1 %vm1230_vm7, %v1228_v56  ;;  %1781 = vmatprep.subr.mxu1 %v1511_v31  ;;  %v1433_v56 = vld [vmem:[%s6334_s21 + $0x8] sm:$0xff] }
 0x292   : > { %1349 = vmatprep.mubr.f32.mxu1 %v6165_v1  ;;  %1782 = vmatpush1.msra.mxu1 %v1510_v33  ;;  %v1545_v31 = vld [vmem:[%s6334_s21 + $0x388] sm:$0xff]  ;;  %v1544_v33 = vld [vmem:[%s6334_s21 + $0x380] sm:$0xff] }
 0x293   : > { %1783 = vmatprep.subr.mxu1 %v1509_v35  ;;  %1718 = vmatprep.subr.mxu0 %v1433_v56  ;;  %v1543_v35 = vld [vmem:[%s6334_s21 + $0x378] sm:$0xff] }
 0x294   : > { %1784 = vmatpush1.msra.mxu1 %v1508_v37  ;;  %1719 = vmatpush1.msra.mxu0 %v1432_v58  ;;  %v1542_v37 = vld [vmem:[%s6334_s21 + $0x370] sm:$0xff]  ;;  %v1467_v56 = vld [vmem:[%s6334_s21 + $0x118] sm:$0xff]  ;;  %v1465_v58 = vld [vmem:[%s6334_s21 + $0x108] sm:$0xff] }
 0x295   : > { %5244 = vmatmul.mubr.msk.f32.gmra.mxu1 %vm1230_vm7, %v1229_v57  ;;  %1785 = vmatprep.subr.mxu1 %v1507_v39  ;;  %v1499_v57 = vld [vmem:[%s6334_s21 + $0x218] sm:$0xff]  ;;  %v1541_v39 = vld [vmem:[%s6334_s21 + $0x368] sm:$0xff] }
 0x296   : > { %1786 = vmatpush1.msra.mxu1 %v1506_v41  ;;  %1720 = vmatprep.subr.mxu0 %v1495_v60  ;;  %v1540_v41 = vld [vmem:[%s6334_s21 + $0x360] sm:$0xff]  ;;  %v1533_v60 = vld [vmem:[%s6334_s21 + $0x328] sm:$0xff] }
 0x297   : > { %1787 = vmatprep.subr.mxu1 %v1505_v43  ;;  %1721 = vmatpush2.msra.mxu0 %v1494_v44  ;;  %v1539_v43 = vld [vmem:[%s6334_s21 + $0x358] sm:$0xff] }
 0x298   : > { %1788 = vmatpush1.msra.mxu1 %v1504_v46  ;;  %1722 = vmatprep.subr.mxu0 %v1493_v62  ;;  %v1538_v46 = vld [vmem:[%s6334_s21 + $0x350] sm:$0xff]  ;;  %v1591_v44 = vld [vmem:[%s6334_s21 + $0x4f8] sm:$0xff] }
 0x299   : > { %1789 = vmatprep.subr.mxu1 %v1503_v49  ;;  %1723 = vmatpush2.msra.mxu0 %v1492_v0  ;;  %v1537_v49 = vld [vmem:[%s6334_s21 + $0x348] sm:$0xff]  ;;  %v1531_v62 = vld [vmem:[%s6334_s21 + $0x318] sm:$0xff]  ;;  %v1530_v0 = vld [vmem:[%s6334_s21 + $0x310] sm:$0xff] }
 0x29a   : > { %1790 = vmatpush1.msra.mxu1 %v1502_v51  ;;  %1724 = vmatprep.subr.mxu0 %v1491_v3  ;;  %v1536_v51 = vld [vmem:[%s6334_s21 + $0x340] sm:$0xff] }
 0x29b   : > { %1791 = vmatprep.subr.mxu1 %v1501_v53  ;;  %1725 = vmatpush2.msra.mxu0 %v1490_v5  ;;  %v1535_v53 = vld [vmem:[%s6334_s21 + $0x338] sm:$0xff] }
 0x29c   : > { %1792 = vmatpush1.msra.mxu1 %v1500_v55  ;;  %1726 = vmatprep.subr.mxu0 %v1489_v7  ;;  %v1534_v55 = vld [vmem:[%s6334_s21 + $0x330] sm:$0xff] }
 0x29d   : > { %1793 = vmatprep.subr.mxu1 %v1499_v57  ;;  %1727 = vmatpush2.msra.mxu0 %v1488_v24  ;;  %v1466_v57 = vld [vmem:[%s6334_s21 + $0x110] sm:$0xff] }
 0x29e   : > { %1794 = vmatpush1.msra.mxu1 %v1498_v59  ;;  %1728 = vmatprep.subr.mxu0 %v1487_v10  ;;  %v1464_v59 = vld [vmem:[%s6334_s21 + $0x100] sm:$0xff] }
 0x29f   : > { %1795 = vmatprep.subr.mxu1 %v1497_v61  ;;  %1729 = vmatpush2.msra.mxu0 %v1486_v12  ;;  %v1532_v61 = vld [vmem:[%s6334_s21 + $0x320] sm:$0xff] }
 0x2a0   : > { %1796 = vmatpush1.msra.mxu1 %v1496_v47  ;;  %1730 = vmatprep.subr.mxu0 %v1485_v26 }
 0x2a1   : > { %1797 = vmatprep.subr.mxu1 %v1559_v63  ;;  %1731 = vmatpush2.msra.mxu0 %v1484_v28 }
 0x2a2   : > { %1798 = vmatpush2.msra.mxu1 %v1558_v2  ;;  %1732 = vmatprep.subr.mxu0 %v1483_v16  ;;  %v1529_v2 = vld [vmem:[%s6334_s21 + $0x308] sm:$0xff] }
 0x2a3   : > { %1799 = vmatprep.subr.mxu1 %v1557_v4  ;;  %1733 = vmatpush2.msra.mxu0 %v1482_v18  ;;  %v1528_v4 = vld [vmem:[%s6334_s21 + $0x300] sm:$0xff] }
 0x2a4   : > { %1800 = vmatpush2.msra.mxu1 %v1556_v6  ;;  %1734 = vmatprep.subr.mxu0 %v1481_v30  ;;  %v1655_v6 = vld [vmem:[%s6334_s21 + $0x6f8] sm:$0xff] }
 0x2a5   : > { %1801 = vmatprep.subr.mxu1 %v1555_v8  ;;  %1735 = vmatpush2.msra.mxu0 %v1480_v23 }
 0x2a6   : > { %1802 = vmatpush2.msra.mxu1 %v1554_v9  ;;  %1736 = vmatprep.subr.mxu0 %v1479_v29 }
 0x2a7   : > { %1803 = vmatprep.subr.mxu1 %v1553_v11  ;;  %1737 = vmatpush2.msra.mxu0 %v1478_v32 }
 0x2a8   : > { %1804 = vmatpush2.msra.mxu1 %v1552_v13  ;;  %1738 = vmatprep.subr.mxu0 %v1477_v34  ;;  %v1590_v34 = vld [vmem:[%s6334_s21 + $0x4f0] sm:$0xff] }
 0x2a9   : > { %1805 = vmatprep.subr.mxu1 %v1551_v14  ;;  %1739 = vmatpush2.msra.mxu0 %v1476_v36  ;;  %v1589_v36 = vld [vmem:[%s6334_s21 + $0x4e8] sm:$0xff] }
 0x2aa   : > { %1806 = vmatpush2.msra.mxu1 %v1550_v15  ;;  %1740 = vmatprep.subr.mxu0 %v1475_v38 }
 0x2ab   : > { %1807 = vmatprep.subr.mxu1 %v1549_v17  ;;  %1741 = vmatpush2.msra.mxu0 %v1474_v40 }
 0x2ac   : > { %1808 = vmatpush2.msra.mxu1 %v1548_v20  ;;  %1742 = vmatprep.subr.mxu0 %v1473_v42  ;;  %v1654_v42 = vld [vmem:[%s6334_s21 + $0x6f0] sm:$0xff] }
 0x2ad   : > { %1809 = vmatprep.subr.mxu1 %v1547_v22  ;;  %1743 = vmatpush2.msra.mxu0 %v1472_v45 }
 0x2ae   : > { %1810 = vmatpush2.msra.mxu1 %v1546_v27  ;;  %1744 = vmatprep.subr.mxu0 %v1471_v48  ;;  %v1653_v48 = vld [vmem:[%s6334_s21 + $0x6e8] sm:$0xff] }
 0x2af   : > { %1811 = vmatprep.subr.mxu1 %v1545_v31  ;;  %1745 = vmatpush2.msra.mxu0 %v1470_v50  ;;  %v1584_v50 = vld [vmem:[%s6334_s21 + $0x4c0] sm:$0xff] }
 0x2b0   : > { %1812 = vmatpush2.msra.mxu1 %v1544_v33  ;;  %1746 = vmatprep.subr.mxu0 %v1469_v52 }
 0x2b1   : > { %1813 = vmatprep.subr.mxu1 %v1543_v35  ;;  %1747 = vmatpush2.msra.mxu0 %v1468_v54 }
 0x2b2   : > { %1814 = vmatpush2.msra.mxu1 %v1542_v37  ;;  %1748 = vmatprep.subr.mxu0 %v1467_v56  ;;  %v1588_v37 = vld [vmem:[%s6334_s21 + $0x4e0] sm:$0xff]  ;;  %v1582_v56 = vld [vmem:[%s6334_s21 + $0x4b0] sm:$0xff] }
 0x2b3   : > { %1815 = vmatprep.subr.mxu1 %v1541_v39  ;;  %1749 = vmatpush2.msra.mxu0 %v1466_v57  ;;  %v1587_v39 = vld [vmem:[%s6334_s21 + $0x4d8] sm:$0xff]  ;;  %v1581_v57 = vld [vmem:[%s6334_s21 + $0x4a8] sm:$0xff] }
 0x2b4   : > { %1816 = vmatpush2.msra.mxu1 %v1540_v41  ;;  %1750 = vmatprep.subr.mxu0 %v1465_v58  ;;  %v1586_v41 = vld [vmem:[%s6334_s21 + $0x4d0] sm:$0xff] }
 0x2b5   : > { %1817 = vmatprep.subr.mxu1 %v1539_v43  ;;  %1751 = vmatpush2.msra.mxu0 %v1464_v59  ;;  %v1580_v59 = vld [vmem:[%s6334_s21 + $0x4a0] sm:$0xff] }
 0x2b6   : > { %1818 = vmatpush2.msra.mxu1 %v1538_v46  ;;  %1842 = vmatprep.subr.mxu0 %v1591_v44  ;;  %v1585_v46 = vld [vmem:[%s6334_s21 + $0x4c8] sm:$0xff]  ;;  %v1579_v44 = vld [vmem:[%s6334_s21 + $0x498] sm:$0xff] }
 0x2b7   : > { %1819 = vmatprep.subr.mxu1 %v1537_v49 }
 0x2b8   : > { %1820 = vmatpush2.msra.mxu1 %v1536_v51 }
 0x2b9   : > { %1821 = vmatprep.subr.mxu1 %v1535_v53  ;;  %v1583_v53 = vld [vmem:[%s6334_s21 + $0x4b8] sm:$0xff] }
 0x2ba   : > { %1822 = vmatpush2.msra.mxu1 %v1534_v55 }
 0x2bb   : > { %1823 = vmatprep.subr.mxu1 %v1533_v60  ;;  %v1652_v60 = vld [vmem:[%s6334_s21 + $0x6e0] sm:$0xff] }
 0x2bc   : > { %1824 = vmatpush2.msra.mxu1 %v1532_v61 }
 0x2bd   : > { %1825 = vmatprep.subr.mxu1 %v1531_v62  ;;  %v1578_v62 = vld [vmem:[%s6334_s21 + $0x490] sm:$0xff] }
 0x2be   : > { %1826 = vmatpush2.msra.mxu1 %v1530_v0  ;;  %v1577_v0 = vld [vmem:[%s6334_s21 + $0x488] sm:$0xff] }
 0x2bf   : > { %1827 = vmatprep.subr.mxu1 %v1529_v2  ;;  %v1649_v2 = vld [vmem:[%s6334_s21 + $0x6c8] sm:$0xff] }
 0x2c0   : > { %1828 = vmatpush2.msra.mxu1 %v1528_v4  ;;  %v1648_v4 = vld [vmem:[%s6334_s21 + $0x6c0] sm:$0xff] }
 0x2c1   : > { %1919 = vmatprep.subr.mxu1 %v1655_v6  ;;  %v1647_v6 = vld [vmem:[%s6334_s21 + $0x6b8] sm:$0xff] }
 0x341   : > { %v1321_v47 = vpop.f32.mrf.mxu1 }
 0x343   : > { %v1323_v63 = vpop.f32.mrf.mxu1 }
 0x345   : > { %v6722_v3 = vpop.f32.mrf.mxu1 }
 0x346   : > { %v1360_v8 = vrot.slane %v6722_v3, 4 }
 0x347   : > { %v6725_v5 = vpop.f32.mrf.mxu1 }
 0x348   : > { %v1363_v10 = vrot.slane %v6725_v5, 4 }
 0x349   : > { %v1333_v7 = vpop.f32.mrf.mxu1 }
 0x34a   : > { %v1361_v24 = vrot.slane %v1333_v7, 4  ;;  %v1574_v7 = vld [vmem:[%s6334_s21 + $0x470] sm:$0xff] }
 0x34b   : > { %v1335_v9 = vpop.f32.mrf.mxu1 }
 0x34c   : > { %v1364_v11 = vrot.slane %v1335_v9, 4  ;;  %v1362_v12 = vsel %vm1024_vm3, %v1360_v8, %v1361_v24  ;;  %v1646_v8 = vld [vmem:[%s6334_s21 + $0x6b0] sm:$0xff]  ;;  %v1645_v9 = vld [vmem:[%s6334_s21 + $0x6a8] sm:$0xff] }
 0x34d   : > { %1366 = vrot.lane.b32.xlu1 %v1362_v12, %s6170_s16  ;;  %v1339_v13 = vpop.f32.mrf.mxu1  ;;  %v1571_v12 = vld [vmem:[%s6334_s21 + $0x458] sm:$0xff] }
 0x34e   : > { %v1365_v26 = vsel %vm1024_vm3, %v1363_v10, %v1364_v11  ;;  %v5942_v28 = vpack.i.bf16 %v1364_v11, %v1361_v24  ;;  %v1573_v24 = vld [vmem:[%s6334_s21 + $0x468] sm:$0xff]  ;;  %v1572_v10 = vld [vmem:[%s6334_s21 + $0x460] sm:$0xff] }
 0x34f   : > { %1368 = vrot.lane.b32.xlu0 %v1365_v26, %s6170_s16  ;;  %v1341_v14 = vpop.f32.mrf.mxu1  ;;  %v1644_v11 = vld [vmem:[%s6334_s21 + $0x6a0] sm:$0xff]  ;;  %v1570_v26 = vld [vmem:[%s6334_s21 + $0x450] sm:$0xff] }
 0x351   : > { %1387 = vrot.lane.b32.xlu1 %v1339_v13, %s6169_s25  ;;  %v1345_v15 = vpop.f32.mrf.mxu1  ;;  %v1643_v13 = vld [vmem:[%s6334_s21 + $0x698] sm:$0xff] }
 0x352   : > { %v5947_v16 = vpack.i.bf16 %v1341_v14, %v1345_v15  ;;  %v1405_v18 = vrot.slane %v1345_v15, 4  ;;  %v1642_v14 = vld [vmem:[%s6334_s21 + $0x690] sm:$0xff]  ;;  %v1569_v15 = vld [vmem:[%s6334_s21 + $0x448] sm:$0xff] }
 0x353   : > { %5943 = vrot.lane.b32.xlu0 %v5942_v28, %s6170_s16  ;;  %v1347_v17 = vpop.f32.mrf.mxu1 }
 0x354   : > { %v1408_v30 = vrot.slane %v1347_v17, 4 }
 0x355   : > { %5948 = vrot.lane.b32.xlu1 %v5947_v16, %s6169_s25  ;;  %v1351_v20 = vpop.f32.mrf.mxu1  ;;  %v1641_v16 = vld [vmem:[%s6334_s21 + $0x688] sm:$0xff] }
 0x356   : > { %v1406_v22 = vrot.slane %v1351_v20, 4  ;;  %v1640_v20 = vld [vmem:[%s6334_s21 + $0x680] sm:$0xff] }
 0x357   : > { %v1353_v23 = vpop.f32.mrf.mxu1 }
 0x358   : > { %v1407_v27 = vsel %vm1024_vm3, %v1405_v18, %v1406_v22  ;;  %v1409_v29 = vrot.slane %v1353_v23, 4  ;;  %v1568_v18 = vld [vmem:[%s6334_s21 + $0x440] sm:$0xff]  ;;  %v1566_v23 = vld [vmem:[%s6334_s21 + $0x430] sm:$0xff] }
 0x359   : > { %1411 = vrot.lane.b32.xlu0 %v1407_v27, %s6171_s30  ;;  %v1639_v27 = vld [vmem:[%s6334_s21 + $0x678] sm:$0xff] }
 0x35a   : > { %v1410_v31 = vsel %vm1024_vm3, %v1408_v30, %v1409_v29  ;;  %v1567_v30 = vld [vmem:[%s6334_s21 + $0x438] sm:$0xff] }
 0x35b   : > { %1413 = vrot.lane.b32.xlu1 %v1410_v31, %s6171_s30  ;;  %v1638_v31 = vld [vmem:[%s6334_s21 + $0x670] sm:$0xff] }
 0x35d   : > { %1393 = vrot.lane.b32.xlu0 %v1347_v17, %s6169_s25 }
 0x35f   : > { %1415 = vrot.lane.b32.xlu1 %v1406_v22, %s6171_s30 }
 0x361   : > { %1417 = vrot.lane.b32.xlu0 %v1409_v29, %s6171_s30  ;;  %v1565_v29 = vld [vmem:[%s6334_s21 + $0x428] sm:$0xff] }
 0x3bf   : > { %v1367_v32 = vpop.permute.xlu1 %1366 }
 0x3c0   : > { %v1426_v33 = vsel %vm1374_vm8, %v1323_v63, %v1367_v32  ;;  %v1650_v63 = vld [vmem:[%s6334_s21 + $0x6d0] sm:$0xff] }
 0x3c1   : > { %1752 = vmatprep.mubr.f32.mxu0 %v1426_v33  ;;  %v1369_v35 = vpop.permute.xlu0 %1368  ;;  %v1637_v33 = vld [vmem:[%s6334_s21 + $0x668] sm:$0xff] }
 0x3c2   : > { %1753 = vmatmul.mubr.f32.vlgmr.msra.gmra.mxu0 %v1321_v47  ;;  %v1375_v43 = vsel %vm1374_vm8, %v1367_v32, %v1369_v35  ;;  %v1651_v47 = vld [vmem:[%s6334_s21 + $0x6d8] sm:$0xff]  ;;  %v1564_v32 = vld [vmem:[%s6334_s21 + $0x420] sm:$0xff] }
 0x3c3   : > { %1843 = vmatpush1.msra.mxu0 %v1590_v34  ;;  %v6741_v38 = vpop.permute.xlu1 %1387  ;;  %v1563_v34 = vld [vmem:[%s6334_s21 + $0x418] sm:$0xff] }
 0x3c4   : > { %1844 = vmatprep.subr.mxu0 %v1589_v36  ;;  %v1428_v40 = vsel %vm1078_vm6, %v1369_v35, %v6741_v38  ;;  %v1636_v35 = vld [vmem:[%s6334_s21 + $0x660] sm:$0xff]  ;;  %v1562_v36 = vld [vmem:[%s6334_s21 + $0x410] sm:$0xff] }
 0x3c5   : > { %1845 = vmatpush1.msra.mxu0 %v1588_v37  ;;  %v5944_v45 = vpop.permute.xlu0 %5943  ;;  %1829 = vmatprep.mubr.f32.mxu1 %v1428_v40  ;;  %v1635_v37 = vld [vmem:[%s6334_s21 + $0x658] sm:$0xff]  ;;  %v1634_v40 = vld [vmem:[%s6334_s21 + $0x650] sm:$0xff] }
 0x3c6   : > { %1846 = vmatprep.subr.mxu0 %v1587_v39  ;;  %v5945_v49 = vunpack.i.l.bf16 %v5944_v45  ;;  %1830 = vmatmul.mubr.f32.vlgmr.msra.gmra.mxu1 %v1375_v43  ;;  %v5946_v51 = vunpack.i.h.bf16 %v5944_v45  ;;  %v1561_v39 = vld [vmem:[%s6334_s21 + $0x408] sm:$0xff]  ;;  %v1623_v43 = vld [vmem:[%s6334_s21 + $0x5f8] sm:$0xff]  ;;  %v1632_v45 = vld [vmem:[%s6334_s21 + $0x640] sm:$0xff] }
 0x3c7   : > { %1847 = vmatpush1.msra.mxu0 %v1586_v41  ;;  %v6752_v52 = vpop.permute.xlu1 %5948  ;;  %1920 = vmatpush1.msra.mxu1 %v1654_v42  ;;  %v1560_v41 = vld [vmem:[%s6334_s21 + $0x400] sm:$0xff]  ;;  %v1633_v42 = vld [vmem:[%s6334_s21 + $0x648] sm:$0xff] }
 0x3c8   : > { %1848 = vmatprep.subr.mxu0 %v1585_v46  ;;  %v5950_v54 = vunpack.i.l.bf16 %v6752_v52  ;;  %v1427_v55 = vsel %vm1374_vm8, %v6725_v5, %v5945_v49  ;;  %1921 = vmatprep.subr.mxu1 %v1653_v48  ;;  %v1376_v61 = vsel %vm1374_vm8, %v5945_v49, %v5946_v51  ;;  %v1575_v5 = vld [vmem:[%s6334_s21 + $0x478] sm:$0xff]  ;;  %v5951_v28 = vunpack.i.h.bf16 %v6752_v52  ;;  %v1622_v46 = vld [vmem:[%s6334_s21 + $0x5f0] sm:$0xff]  ;;  %v1621_v49 = vld [vmem:[%s6334_s21 + $0x5e8] sm:$0xff] }
 0x3c9   : > { %1849 = vmatpush1.msra.mxu0 %v1584_v50  ;;  %1758 = vmatprep.mubr.f32.mxu0 %v1427_v55  ;;  %v1631_v48 = vld [vmem:[%s6334_s21 + $0x638] sm:$0xff]  ;;  %v1630_v50 = vld [vmem:[%s6334_s21 + $0x630] sm:$0xff] }
 0x3ca   : > { %1850 = vmatprep.subr.mxu0 %v1583_v53  ;;  %1759 = vmatmul.mubr.f32.gmra.mxu0 %v6722_v3  ;;  %v1429_v58 = vsel %vm1078_vm6, %v5946_v51, %v5950_v54  ;;  %v1576_v3 = vld [vmem:[%s6334_s21 + $0x480] sm:$0xff]  ;;  %v1629_v53 = vld [vmem:[%s6334_s21 + $0x628] sm:$0xff]  ;;  %v1619_v55 = vld [vmem:[%s6334_s21 + $0x5d8] sm:$0xff] }
 0x3cb   : > { %1851 = vmatpush1.msra.mxu0 %v1582_v56  ;;  %1835 = vmatprep.mubr.f32.mxu1 %v1429_v58  ;;  %v6790_v17 = vpop.permute.xlu0 %1411  ;;  %v1620_v51 = vld [vmem:[%s6334_s21 + $0x5e0] sm:$0xff]  ;;  %v1627_v58 = vld [vmem:[%s6334_s21 + $0x618] sm:$0xff] }
 0x3cc   : > { %1852 = vmatprep.subr.mxu0 %v1581_v57  ;;  %1836 = vmatmul.mubr.f32.gmra.mxu1 %v1376_v61  ;;  %v1430_v22 = vsel %vm1419_vm9, %v5951_v28, %v6790_v17  ;;  %v1628_v56 = vld [vmem:[%s6334_s21 + $0x620] sm:$0xff]  ;;  %v1618_v57 = vld [vmem:[%s6334_s21 + $0x5d0] sm:$0xff] }
 0x3cd   : > { %1853 = vmatpush1.msra.mxu0 %v1580_v59  ;;  %1922 = vmatpush1.msra.mxu1 %v1652_v60  ;;  %v1617_v59 = vld [vmem:[%s6334_s21 + $0x5c8] sm:$0xff]  ;;  %v1626_v60 = vld [vmem:[%s6334_s21 + $0x610] sm:$0xff]  ;;  %v1616_v61 = vld [vmem:[%s6334_s21 + $0x5c0] sm:$0xff] }
 0x3ce   : > { %1854 = vmatprep.subr.mxu0 %v1579_v44  ;;  %1923 = vmatprep.subr.mxu1 %v1651_v47  ;;  %v1625_v44 = vld [vmem:[%s6334_s21 + $0x608] sm:$0xff]  ;;  %v1615_v47 = vld [vmem:[%s6334_s21 + $0x5b8] sm:$0xff] }
 0x3cf   : > { %1855 = vmatpush1.msra.mxu0 %v1578_v62  ;;  %1924 = vmatpush1.msra.mxu1 %v1650_v63  ;;  %v1624_v62 = vld [vmem:[%s6334_s21 + $0x600] sm:$0xff]  ;;  %v1614_v63 = vld [vmem:[%s6334_s21 + $0x5b0] sm:$0xff] }
 0x3d0   : > { %1856 = vmatprep.subr.mxu0 %v1577_v0  ;;  %1925 = vmatprep.subr.mxu1 %v1649_v2  ;;  %v1671_v0 = vld [vmem:[%s6334_s21 + $0x778] sm:$0xff]  ;;  %v1613_v2 = vld [vmem:[%s6334_s21 + $0x5a8] sm:$0xff] }
 0x3d1   : > { %1857 = vmatpush1.msra.mxu0 %v1576_v3  ;;  %1926 = vmatpush1.msra.mxu1 %v1648_v4  ;;  %v1670_v3 = vld [vmem:[%s6334_s21 + $0x770] sm:$0xff]  ;;  %v1612_v4 = vld [vmem:[%s6334_s21 + $0x5a0] sm:$0xff] }
 0x3d2   : > { %1858 = vmatprep.subr.mxu0 %v1575_v5  ;;  %1927 = vmatprep.subr.mxu1 %v1647_v6  ;;  %v1669_v5 = vld [vmem:[%s6334_s21 + $0x768] sm:$0xff]  ;;  %v1611_v6 = vld [vmem:[%s6334_s21 + $0x598] sm:$0xff] }
 0x3d3   : > { %1859 = vmatpush1.msra.mxu0 %v1574_v7  ;;  %1928 = vmatpush1.msra.mxu1 %v1646_v8  ;;  %v1668_v7 = vld [vmem:[%s6334_s21 + $0x760] sm:$0xff]  ;;  %v1610_v8 = vld [vmem:[%s6334_s21 + $0x590] sm:$0xff] }
 0x3d4   : > { %1860 = vmatprep.subr.mxu0 %v1573_v24  ;;  %1929 = vmatprep.subr.mxu1 %v1645_v9  ;;  %v1667_v24 = vld [vmem:[%s6334_s21 + $0x758] sm:$0xff]  ;;  %v1609_v9 = vld [vmem:[%s6334_s21 + $0x588] sm:$0xff] }
 0x3d5   : > { %1861 = vmatpush1.msra.mxu0 %v1572_v10  ;;  %1930 = vmatpush1.msra.mxu1 %v1644_v11  ;;  %v1666_v10 = vld [vmem:[%s6334_s21 + $0x750] sm:$0xff]  ;;  %v1608_v11 = vld [vmem:[%s6334_s21 + $0x580] sm:$0xff] }
 0x3d6   : > { %1862 = vmatprep.subr.mxu0 %v1571_v12  ;;  %1931 = vmatprep.subr.mxu1 %v1643_v13  ;;  %v1665_v12 = vld [vmem:[%s6334_s21 + $0x748] sm:$0xff]  ;;  %v1607_v13 = vld [vmem:[%s6334_s21 + $0x578] sm:$0xff] }
 0x3d7   : > { %1863 = vmatpush1.msra.mxu0 %v1570_v26  ;;  %1932 = vmatpush1.msra.mxu1 %v1642_v14  ;;  %v1664_v26 = vld [vmem:[%s6334_s21 + $0x740] sm:$0xff]  ;;  %v1606_v14 = vld [vmem:[%s6334_s21 + $0x570] sm:$0xff] }
 0x3d8   : > { %1864 = vmatprep.subr.mxu0 %v1569_v15  ;;  %1933 = vmatprep.subr.mxu1 %v1641_v16  ;;  %v1663_v15 = vld [vmem:[%s6334_s21 + $0x738] sm:$0xff]  ;;  %v1605_v16 = vld [vmem:[%s6334_s21 + $0x568] sm:$0xff] }
 0x3d9   : > { %1865 = vmatpush1.msra.mxu0 %v1568_v18  ;;  %1934 = vmatpush1.msra.mxu1 %v1640_v20  ;;  %v1662_v18 = vld [vmem:[%s6334_s21 + $0x730] sm:$0xff]  ;;  %v1604_v20 = vld [vmem:[%s6334_s21 + $0x560] sm:$0xff] }
 0x3da   : > { %1866 = vmatprep.subr.mxu0 %v1567_v30  ;;  %1906 = vmatprep.mubr.f32.mxu0 %v1430_v22  ;;  %v1661_v30 = vld [vmem:[%s6334_s21 + $0x728] sm:$0xff]  ;;  %v1603_v22 = vld [vmem:[%s6334_s21 + $0x558] sm:$0xff] }
 0x3db   : > { %1867 = vmatpush1.msra.mxu0 %v1566_v23  ;;  %1935 = vmatprep.subr.mxu1 %v1639_v27  ;;  %v1660_v23 = vld [vmem:[%s6334_s21 + $0x720] sm:$0xff]  ;;  %v1602_v27 = vld [vmem:[%s6334_s21 + $0x550] sm:$0xff] }
 0x3dc   : > { %1868 = vmatprep.subr.mxu0 %v1565_v29  ;;  %1936 = vmatpush1.msra.mxu1 %v1638_v31  ;;  %v1659_v29 = vld [vmem:[%s6334_s21 + $0x718] sm:$0xff]  ;;  %v1601_v31 = vld [vmem:[%s6334_s21 + $0x548] sm:$0xff] }
 0x3dd   : > { %1869 = vmatpush1.msra.mxu0 %v1564_v32  ;;  %1937 = vmatprep.subr.mxu1 %v1637_v33  ;;  %v1658_v32 = vld [vmem:[%s6334_s21 + $0x710] sm:$0xff]  ;;  %v1394_v33 = vpop.permute.xlu0 %1393 }
 0x3de   : > { %1870 = vmatprep.subr.mxu0 %v1563_v34  ;;  %1938 = vmatpush1.msra.mxu1 %v1636_v35  ;;  %v1414_v34 = vpop.permute.xlu1 %1413  ;;  %v1600_v35 = vld [vmem:[%s6334_s21 + $0x540] sm:$0xff] }
 0x3df   : > { %1871 = vmatpush1.msra.mxu0 %v1562_v36  ;;  %1939 = vmatprep.subr.mxu1 %v1635_v37  ;;  %v1657_v36 = vld [vmem:[%s6334_s21 + $0x708] sm:$0xff]  ;;  %v1599_v37 = vld [vmem:[%s6334_s21 + $0x538] sm:$0xff] }
 0x3e0   : > { %1872 = vmatprep.subr.mxu0 %v1561_v39  ;;  %1940 = vmatpush1.msra.mxu1 %v1634_v40  ;;  %v1656_v39 = vld [vmem:[%s6334_s21 + $0x700] sm:$0xff]  ;;  %v1598_v40 = vld [vmem:[%s6334_s21 + $0x530] sm:$0xff] }
 0x3e1   : > { %1873 = vmatpush1.msra.mxu0 %v1560_v41  ;;  %1941 = vmatprep.subr.mxu1 %v1633_v42  ;;  %v1420_v41 = vsel %vm1419_vm9, %v6790_v17, %v1414_v34  ;;  %v1597_v42 = vld [vmem:[%s6334_s21 + $0x528] sm:$0xff] }
 0x3e2   : > { %1874 = vmatprep.subr.mxu0 %v1623_v43  ;;  %1942 = vmatpush1.msra.mxu1 %v1632_v45  ;;  %v1596_v43 = vld [vmem:[%s6334_s21 + $0x520] sm:$0xff]  ;;  %v1418_v45 = vpop.permute.xlu0 %1417  ;;  %v1593_v17 = vld [vmem:[%s6334_s21 + $0x508] sm:$0xff] }
 0x3e3   : > { %1875 = vmatpush2.msra.mxu0 %v1622_v46  ;;  %1943 = vmatprep.subr.mxu1 %v1631_v48  ;;  %v1595_v46 = vld [vmem:[%s6334_s21 + $0x518] sm:$0xff]  ;;  %v1416_v48 = vpop.permute.xlu1 %1415 }
 0x3e4   : > { %1876 = vmatprep.subr.mxu0 %v1621_v49  ;;  %1944 = vmatpush1.msra.mxu1 %v1630_v50  ;;  %v1594_v49 = vld [vmem:[%s6334_s21 + $0x510] sm:$0xff]  ;;  %v1421_v50 = vsel %vm1419_vm9, %v1416_v48, %v1418_v45 }
 0x3e5   : > { %1877 = vmatpush2.msra.mxu0 %v1620_v51  ;;  %1945 = vmatprep.subr.mxu1 %v1629_v53  ;;  %v1592_v51 = vld [vmem:[%s6334_s21 + $0x500] sm:$0xff]  ;;  %v1395_v53 = vsel %vm1078_vm6, %v6741_v38, %v5951_v28 }
 0x3e6   : > { %1878 = vmatprep.subr.mxu0 %v1619_v55  ;;  %1946 = vmatpush1.msra.mxu1 %v1628_v56  ;;  %v1431_v55 = vsel %vm1419_vm9, %v1394_v33, %v1416_v48  ;;  %v1396_v56 = vsel %vm1078_vm6, %v5950_v54, %v1394_v33  ;;  %v2146_v33 = vld [vmem:[%s6349_s14 + $0xf0] sm:$0xff]  ;;  %v2127_v48 = vld [vmem:[%s6349_s14 + $0x58] sm:$0xff] }
 0x3e7   : > { %1879 = vmatpush2.msra.mxu0 %v1618_v57  ;;  %1947 = vmatprep.subr.mxu1 %v1627_v58 }
 0x3e8   : > { %1880 = vmatprep.subr.mxu0 %v1617_v59  ;;  %1948 = vmatpush1.msra.mxu1 %v1626_v60 }
 0x3e9   : > { %1881 = vmatpush2.msra.mxu0 %v1616_v61  ;;  %1949 = vmatprep.subr.mxu1 %v1625_v44  ;;  %v1672_v44 = vld [vmem:[%s6329_s13] sm:$0x3] }
 0x3ea   : > { %1882 = vmatprep.subr.mxu0 %v1615_v47  ;;  %1950 = vmatpush1.msra.mxu1 %v1624_v62  ;;  %v1677_v28 = vrot.slane %v1672_v44, %v1119_v21 }
 0x3eb   : > { %1883 = vmatpush2.msra.mxu0 %v1614_v63  ;;  %1967 = vmatprep.subr.mxu1 %v1671_v0  ;;  %v1681_v63 = vrot.slane %v1672_v44, %v1123_v25  ;;  %v2173_v44 = vld [vmem:[%s6349_s14 + $0x1c8] sm:$0xff] }
 0x3ec   : > { %1884 = vmatprep.subr.mxu0 %v1613_v2  ;;  %1968 = vmatpush2.msra.mxu1 %v1670_v3 }
 0x3ed   : > { %1885 = vmatpush2.msra.mxu0 %v1612_v4  ;;  %1969 = vmatprep.subr.mxu1 %v1669_v5 }
 0x3ee   : > { %1886 = vmatprep.subr.mxu0 %v1611_v6  ;;  %1970 = vmatpush2.msra.mxu1 %v1668_v7 }
 0x3ef   : > { %1887 = vmatpush2.msra.mxu0 %v1610_v8  ;;  %1971 = vmatprep.subr.mxu1 %v1667_v24 }
 0x3f0   : > { %1888 = vmatprep.subr.mxu0 %v1609_v9  ;;  %1972 = vmatpush2.msra.mxu1 %v1666_v10 }
 0x3f1   : > { %1889 = vmatpush2.msra.mxu0 %v1608_v11  ;;  %1973 = vmatprep.subr.mxu1 %v1665_v12 }
 0x3f2   : > { %1890 = vmatprep.subr.mxu0 %v1607_v13  ;;  %1974 = vmatpush2.msra.mxu1 %v1664_v26 }
 0x3f3   : > { %1891 = vmatpush2.msra.mxu0 %v1606_v14  ;;  %1975 = vmatprep.subr.mxu1 %v1663_v15 }
 0x3f4   : > { %1892 = vmatprep.subr.mxu0 %v1605_v16  ;;  %1976 = vmatpush2.msra.mxu1 %v1662_v18 }
 0x3f5   : > { %1893 = vmatpush2.msra.mxu0 %v1604_v20  ;;  %1977 = vmatprep.subr.mxu1 %v1661_v30 }
 0x3f6   : > { %1894 = vmatprep.subr.mxu0 %v1603_v22  ;;  %1978 = vmatpush2.msra.mxu1 %v1660_v23 }
 0x3f7   : > { %1895 = vmatpush2.msra.mxu0 %v1602_v27  ;;  %1979 = vmatprep.subr.mxu1 %v1659_v29  ;;  %v2000_v27 = vld [vmem:[%s8988_s3] sm:$0xff]  ;;  %v2001_v29 = vld [vmem:[%s8988_s3 + $0x8] sm:$0xff] }
 0x3f8   : > { %1896 = vmatprep.subr.mxu0 %v1601_v31  ;;  %1980 = vmatpush2.msra.mxu1 %v1658_v32  ;;  %v2147_v31 = vld [vmem:[%s6349_s14 + $0xf8] sm:$0xff] }
 0x3f9   : > { %1897 = vmatpush2.msra.mxu0 %v1600_v35  ;;  %1981 = vmatprep.subr.mxu1 %v1657_v36  ;;  %v2131_v32 = vld [vmem:[%s6349_s14 + $0x78] sm:$0xff]  ;;  %v2145_v35 = vld [vmem:[%s6349_s14 + $0xe8] sm:$0xff] }
 0x3fa   : > { %1898 = vmatprep.subr.mxu0 %v1599_v37  ;;  %1982 = vmatpush2.msra.mxu1 %v1656_v39  ;;  %v2179_v36 = vld [vmem:[%s6349_s14 + $0x1f8] sm:$0xff]  ;;  %v2144_v39 = vld [vmem:[%s6349_s14 + $0xe0] sm:$0xff] }
 0x3fb   : > { %1899 = vmatpush2.msra.mxu0 %v1598_v40  ;;  %5245 = vmatprep.mubr.msk.f32.mxu1 %vm807_vm1, %v1414_v34  ;;  %v2130_v34 = vld [vmem:[%s6349_s14 + $0x70] sm:$0xff]  ;;  %v2163_v37 = vld [vmem:[%s6349_s14 + $0x178] sm:$0xff] }
 0x3fc   : > { %1900 = vmatprep.subr.mxu0 %v1597_v42  ;;  %1984 = vmatmul.mubr.f32.vlgmr.msra.gmra.mxu1 %v1420_v41  ;;  %v2178_v40 = vld [vmem:[%s6349_s14 + $0x1f0] sm:$0xff]  ;;  %v2128_v41 = vld [vmem:[%s6349_s14 + $0x60] sm:$0xff] }
 0x3fd   : > { %1901 = vmatpush2.msra.mxu0 %v1596_v43  ;;  %5246 = vmatprep.mubr.msk.f32.mxu1 %vm807_vm1, %v1418_v45  ;;  %v2162_v42 = vld [vmem:[%s6349_s14 + $0x170] sm:$0xff]  ;;  %v2177_v43 = vld [vmem:[%s6349_s14 + $0x1e8] sm:$0xff]  ;;  %v2143_v45 = vld [vmem:[%s6349_s14 + $0xd8] sm:$0xff] }
 0x3fe   : > { %1902 = vmatprep.subr.mxu0 %v1595_v46  ;;  %v2161_v46 = vld [vmem:[%s6349_s14 + $0x168] sm:$0xff] }
 0x3ff   : > { %1903 = vmatpush2.msra.mxu0 %v1594_v49  ;;  %v2176_v49 = vld [vmem:[%s6349_s14 + $0x1e0] sm:$0xff] }
 0x400   : > { %1904 = vmatprep.subr.mxu0 %v1593_v17  ;;  %1990 = vmatmul.mubr.f32.gmra.mxu1 %v1421_v50  ;;  %v2142_v17 = vld [vmem:[%s6349_s14 + $0xd0] sm:$0xff]  ;;  %v2160_v50 = vld [vmem:[%s6349_s14 + $0x160] sm:$0xff] }
 0x401   : > { %1905 = vmatpush2.msra.mxu0 %v1592_v51  ;;  %2079 = vmatprep.mubr.f32.mxu1 %v6165_v1  ;;  %v2126_v51 = vld [vmem:[%s6349_s14 + $0x50] sm:$0xff] }
 0x402   : > { %1907 = vmatmul.mubr.f32.vlgmr.msra.gmra.mxu0 %v1395_v53  ;;  %5365 = vmatprep.subr.mxu0 %v2147_v31  ;;  %v2175_v53 = vld [vmem:[%s6349_s14 + $0x1d8] sm:$0xff]  ;;  %v2148_v31 = vld [vmem:[%s6349_s14 + $0x100] sm:$0xff] }
 0x403   : > { %1912 = vmatprep.mubr.f32.mxu0 %v1431_v55  ;;  %5366 = vmatpush3.msra.mxu0 %v2131_v32  ;;  %v2141_v55 = vld [vmem:[%s6349_s14 + $0xc8] sm:$0xff] }
 0x404   : > { %5367 = vmatprep.subr.mxu0 %v2146_v33 }
 0x405   : > { %5368 = vmatpush3.msra.mxu0 %v2130_v34 }
 0x406   : > { %1913 = vmatmul.mubr.f32.gmra.mxu0 %v1396_v56  ;;  %5369 = vmatprep.subr.mxu0 %v2145_v35  ;;  %v2159_v56 = vld [vmem:[%s6349_s14 + $0x158] sm:$0xff] }
 0x482   : > { %v1754_v58 = vpop.f32.mrf.mxu0 }
 0x483   : > { %v1755_v5 = vadd.f32 %v1754_v58, %v1677_v28  ;;  %v2174_v58 = vld [vmem:[%s6349_s14 + $0x1d0] sm:$0xff] }
 0x484   : > { %v1756_v61 = vpop.f32.mrf.mxu0 }
 0x485   : > { %v1757_v3 = vadd.f32 %v1756_v61, %v1681_v63  ;;  %v2124_v61 = vld [vmem:[%s6349_s14 + $0x40] sm:$0xff] }
 0x486   : > { %v1831_v57 = vpop.f32.mrf.mxu1 }
 0x487   : > { %v1832_v24 = vadd.f32 %v1831_v57, %v1755_v5  ;;  %v2125_v57 = vld [vmem:[%s6349_s14 + $0x48] sm:$0xff]  ;;  %v2170_v5 = vld [vmem:[%s6349_s14 + $0x1b0] sm:$0xff] }
 0x488   : > { %v1833_v59 = vpop.f32.mrf.mxu1 }
 0x489   : > { %v1834_v7 = vadd.f32 %v1833_v59, %v1757_v3  ;;  %v2140_v59 = vld [vmem:[%s6349_s14 + $0xc0] sm:$0xff]  ;;  %v2155_v3 = vld [vmem:[%s6349_s14 + $0x138] sm:$0xff] }
 0x48a   : > { %v1760_v47 = vpop.f32.mrf.mxu0 }
 0x48b   : > { %v1761_v52 = vadd.f32 %v1760_v47, %v1677_v28  ;;  %v2139_v47 = vld [vmem:[%s6349_s14 + $0xb8] sm:$0xff]  ;;  %v2172_v28 = vld [vmem:[%s6349_s14 + $0x1c0] sm:$0xff] }
 0x48c   : > { %v1837_v60 = vpop.f32.mrf.mxu1  ;;  %v1762_v0 = vpop.f32.mrf.mxu0 }
 0x48d   : > { %v1763_v4 = vadd.f32 %v1762_v0, %v1681_v63  ;;  %v1838_v8 = vadd.f32 %v1837_v60, %v1761_v52  ;;  %v2158_v60 = vld [vmem:[%s6349_s14 + $0x150] sm:$0xff]  ;;  %v2156_v0 = vld [vmem:[%s6349_s14 + $0x140] sm:$0xff] }
 0x48e   : > { %v1839_v62 = vpop.f32.mrf.mxu1  ;;  %v2138_v63 = vld [vmem:[%s6349_s14 + $0xb0] sm:$0xff] }
 0x48f   : > { %v1840_v11 = vadd.f32 %v1839_v62, %v1763_v4  ;;  %v2157_v62 = vld [vmem:[%s6349_s14 + $0x148] sm:$0xff]  ;;  %v2122_v52 = vld [vmem:[%s6349_s14 + $0x30] sm:$0xff] }
 0x490   : > { %v2121_v4 = vld [vmem:[%s6349_s14 + $0x28] sm:$0xff] }
 0x4bc   : > { %v1985_v38 = vpop.f32.mrf.mxu1 }
 0x4be   : > { %v1987_v2 = vpop.f32.mrf.mxu1 }
 0x4c0   : > { %v1991_v9 = vpop.f32.mrf.mxu1 }
 0x4c2   : > { %v1908_v54 = vpop.f32.mrf.mxu0  ;;  %v1993_v25 = vpop.f32.mrf.mxu1 }
 0x4c3   : > { %v1909_v21 = vadd.f32 %v1908_v54, %v1832_v24  ;;  %v2137_v54 = vld [vmem:[%s6349_s14 + $0xa8] sm:$0xff] }
 0x4c4   : > { %v1910_v6 = vpop.f32.mrf.mxu0  ;;  %v2169_v24 = vld [vmem:[%s6349_s14 + $0x1a8] sm:$0xff] }
 0x4c5   : > { %v1911_v12 = vadd.f32 %v1910_v6, %v1834_v7  ;;  %v1986_v18 = vadd.f32 %v1985_v38, %v1909_v21  ;;  %v2123_v38 = vld [vmem:[%s6349_s14 + $0x38] sm:$0xff]  ;;  %v2136_v6 = vld [vmem:[%s6349_s14 + $0xa0] sm:$0xff]  ;;  %v2154_v7 = vld [vmem:[%s6349_s14 + $0x130] sm:$0xff] }
 0x4c6   : > { %v1914_v10 = vpop.f32.mrf.mxu0  ;;  %v2118_v21 = vld [vmem:[%s6349_s14 + $0x10] sm:$0xff] }
 0x4c7   : > { %v1915_v13 = vadd.f32 %v1914_v10, %v1838_v8  ;;  %v1988_v15 = vadd.f32 %v1987_v2, %v1911_v12  ;;  %v1996_v23 = vmax.f32 %v1986_v18, 0.0  ;;  %v2171_v2 = vld [vmem:[%s6349_s14 + $0x1b8] sm:$0xff]  ;;  %v2120_v8 = vld [vmem:[%s6349_s14 + $0x20] sm:$0xff]  ;;  %v2153_v10 = vld [vmem:[%s6349_s14 + $0x128] sm:$0xff] }
 0x4c8   : > { %v1916_v26 = vpop.f32.mrf.mxu0  ;;  %v2168_v12 = vld [vmem:[%s6349_s14 + $0x1a0] sm:$0xff]  ;;  %v2211_v18 = vld [vmem:[%s6349_s14 + $0x2f8] sm:$0xff] }
 0x4c9   : > { %v1917_v19 = vadd.f32 %v1916_v26, %v1840_v11  ;;  %v1992_v14 = vadd.f32 %v1991_v9, %v1915_v13  ;;  %v1997_v22 = vmax.f32 %v1988_v15, 0.0  ;;  %v2135_v9 = vld [vmem:[%s6349_s14 + $0x98] sm:$0xff]  ;;  %v2134_v13 = vld [vmem:[%s6349_s14 + $0x90] sm:$0xff]  ;;  %v2133_v26 = vld [vmem:[%s6349_s14 + $0x88] sm:$0xff] }
 0x4ca   : > { %v2119_v11 = vld [vmem:[%s6349_s14 + $0x18] sm:$0xff]  ;;  %v2152_v15 = vld [vmem:[%s6349_s14 + $0x120] sm:$0xff] }
 0x4cb   : > { %v1994_v16 = vadd.f32 %v1993_v25, %v1917_v19  ;;  %v1998_v30 = vmax.f32 %v1992_v14, 0.0  ;;  %v2117_v19 = vld [vmem:[%s6349_s14 + $0x8] sm:$0xff]  ;;  %v2132_v25 = vld [vmem:[%s6349_s14 + $0x80] sm:$0xff] }
 0x4cc   : > { %v2116_v14 = vld [vmem:[%s6349_s14] sm:$0xff] }
 0x4cd   : > { %v1999_v20 = vmax.f32 %v1994_v16, 0.0  ;;  %v2167_v16 = vld [vmem:[%s6349_s14 + $0x198] sm:$0xff] }
 0x4cf   : > { %5247 = vmatprep.subr.msk.mxu1 %vm1024_vm3, %v1999_v20  ;;  %v2151_v20 = vld [vmem:[%s6349_s14 + $0x118] sm:$0xff] }
 0x4d0   : > { %5248 = vmatpush1.msk.msra.mxu1 %vm1024_vm3, %v1998_v30  ;;  %v2166_v30 = vld [vmem:[%s6349_s14 + $0x190] sm:$0xff] }
 0x4d1   : > { %2045 = vmatprep.subr.mxu1 %v1997_v22  ;;  %v2150_v22 = vld [vmem:[%s6349_s14 + $0x110] sm:$0xff] }
 0x4d2   : > { %2046 = vmatpush1.msra.mxu1 %v1996_v23  ;;  %v2165_v23 = vld [vmem:[%s6349_s14 + $0x188] sm:$0xff] }
 0x4d3   : > { %5249 = vmatmul.mubr.msk.f32.vlgmr.msra.gmra.mxu1 %vm2002_vm10, %v2000_v27  ;;  %5400 = vmatprep.subr.mxu1 %v2179_v36  ;;  %v2149_v27 = vld [vmem:[%s6349_s14 + $0x108] sm:$0xff] }
 0x4d4   : > { %2085 = vmatprep.mubr.f32.mxu1 %v6165_v1  ;;  %v2129_v1 = vld [vmem:[%s6349_s14 + $0x68] sm:$0xff]  ;;  %5401 = vmatpush3.msra.mxu1 %v2163_v37 }
 0x4d5   : > { %5370 = vmatpush3.msra.mxu0 %v2129_v1  ;;  %5402 = vmatprep.subr.mxu1 %v2178_v40 }
 0x4d6   : > { %5371 = vmatprep.subr.mxu0 %v2144_v39  ;;  %5403 = vmatpush3.msra.mxu1 %v2162_v42 }
 0x4d7   : > { %5250 = vmatmul.mubr.msk.f32.gmra.mxu1 %vm2002_vm10, %v2001_v29  ;;  %5372 = vmatpush3.msra.mxu0 %v2128_v41  ;;  %v2164_v29 = vld [vmem:[%s6349_s14 + $0x180] sm:$0xff] }
 0x4d8   : > { %5404 = vmatprep.subr.mxu1 %v2177_v43  ;;  %5373 = vmatprep.subr.mxu0 %v2143_v45  ;;  %v2195_v43 = vld [vmem:[%s6349_s14 + $0x278] sm:$0xff]  ;;  %v2210_v45 = vld [vmem:[%s6349_s14 + $0x2f0] sm:$0xff] }
 0x4d9   : > { %5405 = vmatpush3.msra.mxu1 %v2161_v46  ;;  %5374 = vmatpush3.msra.mxu0 %v2127_v48  ;;  %v2194_v46 = vld [vmem:[%s6349_s14 + $0x270] sm:$0xff]  ;;  %v2209_v48 = vld [vmem:[%s6349_s14 + $0x2e8] sm:$0xff] }
 0x4da   : > { %5406 = vmatprep.subr.mxu1 %v2176_v49  ;;  %5375 = vmatprep.subr.mxu0 %v2142_v17  ;;  %v2193_v49 = vld [vmem:[%s6349_s14 + $0x268] sm:$0xff] }
 0x4db   : > { %5407 = vmatpush3.msra.mxu1 %v2160_v50  ;;  %5376 = vmatpush3.msra.mxu0 %v2126_v51  ;;  %v2208_v50 = vld [vmem:[%s6349_s14 + $0x2e0] sm:$0xff] }
 0x4dc   : > { %5408 = vmatprep.subr.mxu1 %v2175_v53  ;;  %5377 = vmatprep.subr.mxu0 %v2141_v55 }
 0x4dd   : > { %5409 = vmatpush3.msra.mxu1 %v2159_v56  ;;  %5378 = vmatpush3.msra.mxu0 %v2125_v57  ;;  %v2192_v56 = vld [vmem:[%s6349_s14 + $0x260] sm:$0xff]  ;;  %v2207_v57 = vld [vmem:[%s6349_s14 + $0x2d8] sm:$0xff] }
 0x4de   : > { %5410 = vmatprep.subr.mxu1 %v2174_v58  ;;  %5379 = vmatprep.subr.mxu0 %v2140_v59  ;;  %v2191_v59 = vld [vmem:[%s6349_s14 + $0x258] sm:$0xff] }
 0x4df   : > { %5411 = vmatpush3.msra.mxu1 %v2158_v60  ;;  %5380 = vmatpush3.msra.mxu0 %v2124_v61  ;;  %v2206_v61 = vld [vmem:[%s6349_s14 + $0x2d0] sm:$0xff] }
 0x4e0   : > { %5412 = vmatprep.subr.mxu1 %v2173_v44  ;;  %5381 = vmatprep.subr.mxu0 %v2139_v47  ;;  %v2190_v44 = vld [vmem:[%s6349_s14 + $0x250] sm:$0xff]  ;;  %v2205_v47 = vld [vmem:[%s6349_s14 + $0x2c8] sm:$0xff] }
 0x4e1   : > { %5413 = vmatpush3.msra.mxu1 %v2157_v62  ;;  %5382 = vmatpush3.msra.mxu0 %v2123_v38  ;;  %v2189_v62 = vld [vmem:[%s6349_s14 + $0x248] sm:$0xff]  ;;  %v2204_v38 = vld [vmem:[%s6349_s14 + $0x2c0] sm:$0xff] }
 0x4e2   : > { %5414 = vmatprep.subr.mxu1 %v2172_v28  ;;  %5383 = vmatprep.subr.mxu0 %v2138_v63  ;;  %v2188_v28 = vld [vmem:[%s6349_s14 + $0x240] sm:$0xff]  ;;  %v2203_v63 = vld [vmem:[%s6349_s14 + $0x2b8] sm:$0xff] }
 0x4e3   : > { %5415 = vmatpush3.msra.mxu1 %v2156_v0  ;;  %5384 = vmatpush3.msra.mxu0 %v2122_v52  ;;  %v2187_v0 = vld [vmem:[%s6349_s14 + $0x238] sm:$0xff]  ;;  %v2202_v52 = vld [vmem:[%s6349_s14 + $0x2b0] sm:$0xff] }
 0x4e4   : > { %5416 = vmatprep.subr.mxu1 %v2171_v2  ;;  %5385 = vmatprep.subr.mxu0 %v2137_v54  ;;  %v2186_v2 = vld [vmem:[%s6349_s14 + $0x230] sm:$0xff]  ;;  %v2201_v54 = vld [vmem:[%s6349_s14 + $0x2a8] sm:$0xff] }
 0x4e5   : > { %5417 = vmatpush3.msra.mxu1 %v2155_v3  ;;  %5386 = vmatpush3.msra.mxu0 %v2121_v4  ;;  %v2185_v3 = vld [vmem:[%s6349_s14 + $0x228] sm:$0xff]  ;;  %v2200_v4 = vld [vmem:[%s6349_s14 + $0x2a0] sm:$0xff] }
 0x4e6   : > { %5418 = vmatprep.subr.mxu1 %v2170_v5  ;;  %5387 = vmatprep.subr.mxu0 %v2136_v6  ;;  %v2184_v5 = vld [vmem:[%s6349_s14 + $0x220] sm:$0xff]  ;;  %v2199_v6 = vld [vmem:[%s6349_s14 + $0x298] sm:$0xff] }
 0x4e7   : > { %5419 = vmatpush3.msra.mxu1 %v2154_v7  ;;  %5388 = vmatpush3.msra.mxu0 %v2120_v8  ;;  %v2183_v7 = vld [vmem:[%s6349_s14 + $0x218] sm:$0xff]  ;;  %v2198_v8 = vld [vmem:[%s6349_s14 + $0x290] sm:$0xff] }
 0x4e8   : > { %5420 = vmatprep.subr.mxu1 %v2169_v24  ;;  %5389 = vmatprep.subr.mxu0 %v2135_v9  ;;  %v2182_v24 = vld [vmem:[%s6349_s14 + $0x210] sm:$0xff]  ;;  %v2197_v9 = vld [vmem:[%s6349_s14 + $0x288] sm:$0xff] }
 0x4e9   : > { %5421 = vmatpush3.msra.mxu1 %v2153_v10  ;;  %5390 = vmatpush3.msra.mxu0 %v2119_v11  ;;  %v2181_v10 = vld [vmem:[%s6349_s14 + $0x208] sm:$0xff]  ;;  %v2196_v11 = vld [vmem:[%s6349_s14 + $0x280] sm:$0xff] }
 0x4ea   : > { %5422 = vmatprep.subr.mxu1 %v2168_v12  ;;  %5391 = vmatprep.subr.mxu0 %v2134_v13  ;;  %v2180_v12 = vld [vmem:[%s6349_s14 + $0x200] sm:$0xff] }
 0x4eb   : > { %5392 = vmatpush3.msra.mxu0 %v2118_v21  ;;  %5423 = vmatpush3.msra.mxu1 %v2152_v15  ;;  %v5251_v15 = vld [vmem:[%s773_s24] ss:$0 sm:$0xff] }
 0x4ec   : > { %5393 = vmatprep.subr.mxu0 %v2133_v26  ;;  %5424 = vmatprep.subr.mxu1 %v2167_v16 }
 0x4ed   : > { %5394 = vmatpush3.msra.mxu0 %v2117_v19  ;;  %5425 = vmatpush3.msra.mxu1 %v2151_v20 }
 0x4ee   : > { %5395 = vmatprep.subr.mxu0 %v2132_v25  ;;  %5426 = vmatprep.subr.mxu1 %v2166_v30 }
 0x4ef   : > { %5396 = vmatpush3.msra.mxu0 %v2116_v14  ;;  %5427 = vmatpush3.msra.mxu1 %v2150_v22 }
 0x4f0   : > { %5435 = vmatprep.subr.mxu0 %v2211_v18  ;;  %5428 = vmatprep.subr.mxu1 %v2165_v23 }
 0x4f1   : > { %5429 = vmatpush3.msra.mxu1 %v2149_v27 }
 0x4f2   : > { %5430 = vmatprep.subr.mxu1 %v2164_v29 }
 0x4f3   : > { %5431 = vmatpush3.msra.mxu1 %v2148_v31 }
 0x593   : > { %v2081_v32 = vpop.f32.mrf.mxu1 }
 0x594   : > { %v2094_v33 = vrot.slane %v2081_v32, 4 }
 0x595   : > { %v2083_v34 = vpop.f32.mrf.mxu1 }
 0x596   : > { %2096 = vrot.lane.b32.xlu1 %v2094_v33, %s6168_s26  ;;  %v2095_v1 = vrot.slane %v2083_v34, 4 }
 0x597   : > { %v2087_v35 = vpop.f32.mrf.mxu1 }
 0x598   : > { %v2105_v36 = vrot.slane %v2087_v35, 4  ;;  %2353 = vmatprep.mubr.f32.mxu1 %v2087_v35 }
 0x599   : > { %v6964_v37 = vpop.f32.mrf.mxu1 }
 0x59a   : > { %v5952_v39 = vpack.i.bf16 %v2105_v36, %v2095_v1  ;;  %v2106_v40 = vrot.slane %v6964_v37, 4 }
 0x59c   : > { %5953 = vrot.lane.b32.xlu0 %v5952_v39, %s6168_s26  ;;  %2109 = vrot.lane.b32.xlu1 %v2106_v40, %s6168_s26 }
 0x608   : > { %v2097_v41 = vpop.permute.xlu1 %2096 }
 0x609   : > { %v2114_v42 = vsel %vm807_vm1, %v2083_v34, %v2097_v41 }
 0x60a   : > { %2283 = vmatprep.mubr.f32.mxu0 %v2114_v42 }
 0x60b   : > { %2284 = vmatmul.mubr.f32.vlgmr.msra.gmra.mxu0 %v2081_v32 }
 0x60c   : > { %5436 = vmatpush3.msra.mxu0 %v2195_v43 }
 0x60d   : > { %5437 = vmatprep.subr.mxu0 %v2210_v45 }
 0x60e   : > { %5438 = vmatpush3.msra.mxu0 %v2194_v46  ;;  %v6975_v17 = vpop.permute.xlu0 %5953  ;;  %v2110_v51 = vpop.permute.xlu1 %2109 }
 0x60f   : > { %5439 = vmatprep.subr.mxu0 %v2209_v48  ;;  %v5956_v53 = vunpack.i.h.bf16 %v6975_v17  ;;  %v5955_v55 = vunpack.i.l.bf16 %v6975_v17 }
 0x610   : > { %5440 = vmatpush3.msra.mxu0 %v2193_v49 }
 0x611   : > { %5441 = vmatprep.subr.mxu0 %v2208_v50  ;;  %v2100_v58 = vsel %vm807_vm1, %v2097_v41, %v5955_v55  ;;  %v2111_v60 = vsel %vm807_vm1, %v5956_v53, %v2110_v51  ;;  %v2115_v13 = vsel %vm807_vm1, %v6964_v37, %v5956_v53 }
 0x612   : > { %5442 = vmatpush3.msra.mxu0 %v2192_v56  ;;  %2354 = vmatmul.mubr.f32.vlgmr.msra.gmra.mxu1 %v2100_v58 }
 0x613   : > { %5443 = vmatprep.subr.mxu0 %v2207_v57  ;;  %2423 = vmatprep.mubr.f32.mxu0 %v2111_v60 }
 0x614   : > { %5444 = vmatpush3.msra.mxu0 %v2191_v59 }
 0x615   : > { %5445 = vmatprep.subr.mxu0 %v2206_v61 }
 0x616   : > { %5446 = vmatpush3.msra.mxu0 %v2190_v44 }
 0x617   : > { %5447 = vmatprep.subr.mxu0 %v2205_v47 }
 0x618   : > { %5448 = vmatpush3.msra.mxu0 %v2189_v62 }
 0x619   : > { %5449 = vmatprep.subr.mxu0 %v2204_v38 }
 0x61a   : > { %5450 = vmatpush3.msra.mxu0 %v2188_v28 }
 0x61b   : > { %5451 = vmatprep.subr.mxu0 %v2203_v63 }
 0x61c   : > { %5452 = vmatpush3.msra.mxu0 %v2187_v0 }
 0x61d   : > { %5453 = vmatprep.subr.mxu0 %v2202_v52 }
 0x61e   : > { %5454 = vmatpush3.msra.mxu0 %v2186_v2 }
 0x61f   : > { %5455 = vmatprep.subr.mxu0 %v2201_v54 }
 0x620   : > { %5456 = vmatpush3.msra.mxu0 %v2185_v3 }
 0x621   : > { %5457 = vmatprep.subr.mxu0 %v2200_v4 }
 0x622   : > { %5458 = vmatpush3.msra.mxu0 %v2184_v5 }
 0x623   : > { %5459 = vmatprep.subr.mxu0 %v2199_v6 }
 0x624   : > { %5460 = vmatpush3.msra.mxu0 %v2183_v7 }
 0x625   : > { %5461 = vmatprep.subr.mxu0 %v2198_v8 }
 0x626   : > { %5462 = vmatpush3.msra.mxu0 %v2182_v24 }
 0x627   : > { %5463 = vmatprep.subr.mxu0 %v2197_v9 }
 0x628   : > { %5464 = vmatpush3.msra.mxu0 %v2181_v10 }
 0x629   : > { %5465 = vmatprep.subr.mxu0 %v2196_v11 }
 0x62a   : > { %5466 = vmatpush3.msra.mxu0 %v2180_v12 }
 0x62b   : > { %2424 = vmatmul.mubr.f32.vlgmr.msra.gmra.mxu0 %v2115_v13 }
 0x6cb   : > { %v5397_v21 = vpop.f32.mrf.mxu0 }
 0x6cd   : > { %v5398_v19 = vpop.f32.mrf.mxu0 }
 0x6ce   : > { %v5399_v14 = vadd.f32 %v5398_v19, %v5397_v21 }
 0x6d0   : > { %v2286_v20 = vadd.f32 %v5399_v14, %v5251_v15 }
 0x6d2   : > { %v5432_v26 = vpop.f32.mrf.mxu1 }
 0x6d4   : > { %v5433_v25 = vpop.f32.mrf.mxu1 }
 0x6d5   : > { %v5434_v16 = vadd.f32 %v5433_v25, %v5432_v26 }
 0x6d7   : > { %v2356_v22 = vadd.f32 %v5434_v16, %v2286_v20 }
 0x6eb   : > { %v5467_v18 = vpop.f32.mrf.mxu0 }
 0x6ed   : > { %v5468_v30 = vpop.f32.mrf.mxu0 }
 0x6ee   : > { %v5469_v23 = vadd.f32 %v5468_v30, %v5467_v18 }
 0x6f0   : > { %v2426_v27 = vadd.f32 %v5469_v23, %v2356_v22 }
 0x6f2   : > { %v2429_v29 = vmax.f32 %v2426_v27, 0.0 }
 0x6f4   : > { %2431 = vrot.lane.b32.xlu0 %v2429_v29, %s6168_s26 }
 0x766   : > { %v2432_v31 = vpop.permute.xlu0 %2431 }
 0x767   : > { %v2434_v32 = vmax.f32 %v2429_v29, %v2432_v31 }
 0x769   : > { %v2436_v33 = vrot.slane %v2434_v32, 2 }
 0x76b   : > { %v2438_v34 = vmax.f32 %v2434_v32, %v2436_v33 }
 0x76d   : > { %2440 = vst.msk [vmem:[%s6344_s15] sm:$0x3] %vm2439_vm11, %v2438_v34 }
 0x76e PF: > { %p5252_p6 = scmp.ne.s32.totalorder %s6297_s28, 2 }
 0x76f   : > { %s6172_s26 = smov (!%p5252_p6), 4   ;;  %s6173_s4 = smov (!%p5252_p6), 1  }
 0x770   : > { %2444 = sbr.rel (%p5252_p6) target bundleno = 3646 (0xe3e), region = 100  ;;  %s6174_s5 = smov (!%p5252_p6), 3  }
 0x771   : > { %s6175_s27 = smov (!%p5252_p6), 2   ;;  %s6176_s0 = smov (!%p5252_p6), 5  }
 0x772   : > { %s6177_s2 = smov (!%p5252_p6), 6   ;;  %s6178_s13 = smov (!%p5252_p6), 7  }
 0x773   : > { %s6179_s21 = smov (!%p5252_p6), 8   ;;  %s6180_s25 = smov (!%p5252_p6), 9  }
 0x774   : > { %s6181_s19 = smov (!%p5252_p6), 10   ;;  %s6182_s29 = smov (!%p5252_p6), 11  }
 0x775   : > { %v7020_v35 = vld [vmem:[%s8995_s10 + $0x8] sm:$0xff]  ;;  %v7025_v1 = vld [vmem:[%s8995_s10] sm:$0xff]  ;;  %vm9019_vm12 = vcmask 1045504   ;;  %vm9017_vm13 = vcmask 1041408   ;;  %vm9014_vm14 = vcmask 1043456   ;;  %v7038_v43 = vld [vmem:[%s8995_s10 + $0x10] sm:$0xff] }
 0x776   : > { %2670 = vrot.lane.b32.xlu1 %v7020_v35, %s6172_s26  ;;  %v2475_v36 = vrot.slane %v7025_v1, 2  ;;  %v2476_v37 = vrot.slane %v7020_v35, 2  ;;  %v2605_v39 = vrot.slane %v7025_v1, 6  ;;  %v2606_v40 = vrot.slane %v7020_v35, 6  ;;  %v7058_v56 = vld [vmem:[%s8995_s10 + $0x18] sm:$0xff]  ;;  %v7083_v47 = vld [vmem:[%s8995_s10 + $0x20] sm:$0xff] }
 0x777   : > { %v2540_v41 = vrot.slane %v7025_v1, 4  ;;  %v2541_v42 = vrot.slane %v7020_v35, 4  ;;  %v2478_v48 = vrot.slane %v7038_v43, 2  ;;  %v2543_v50 = vrot.slane %v7038_v43, 4  ;;  %s6183_s24 = smov 12   ;;  %s6184_s14 = smov 13  }
 0x778   : > { %v2477_v45 = vsel %vm9019_vm12, %v2475_v36, %v2476_v37  ;;  %v2607_v46 = vsel %vm9017_vm13, %v2605_v39, %v2606_v40  ;;  %v2608_v53 = vrot.slane %v7038_v43, 6  ;;  %v2480_v57 = vrot.slane %v7058_v56, 2  ;;  %v3369_v0 = vld [vmem:[%s8997_s12 + $0x8] sm:$0xff]  ;;  %v3368_v2 = vld [vmem:[%s8997_s12] sm:$0xff]  ;;  %s6187_s30 = smov 14   ;;  %s6188_s23 = smov 15  }
 0x779   : > { %2500 = vrot.lane.b32.xlu0 %v2477_v45, %s6173_s4  ;;  %v2542_v49 = vsel %vm9014_vm14, %v2540_v41, %v2541_v42  ;;  %v2479_v17 = vsel %vm9019_vm12, %v2476_v37, %v2478_v48  ;;  %v2544_v51 = vsel %vm9014_vm14, %v2541_v42, %v2543_v50  ;;  %v2545_v59 = vrot.slane %v7058_v56, 4  ;;  %v7121_v4 = vld [vmem:[%s8995_s10 + $0x28] sm:$0xff]  ;;  %v7151_v10 = vld [vmem:[%s8995_s10 + $0x30] sm:$0xff]  ;;  %v7187_v22 = vld [vmem:[%s8995_s10 + $0x38] sm:$0xff]  ;;  %s6190_s17 = smov 32   ;;  %s6194_s1 = smov 96  }
 0x77a   : > { %2630 = vrot.lane.b32.xlu1 %v2607_v46, %s6174_s5  ;;  %v2609_v55 = vsel %vm9017_vm13, %v2606_v40, %v2608_v53  ;;  %v2481_v58 = vsel %vm9019_vm12, %v2478_v48, %v2480_v57  ;;  %v2610_v61 = vrot.slane %v7058_v56, 6  ;;  %v2482_v62 = vrot.slane %v7083_v47, 2  ;;  %s6195_s28 = smov 112  }
 0x77b   : > { %v2546_v60 = vsel %vm9014_vm14, %v2543_v50, %v2545_v59  ;;  %v2547_v28 = vrot.slane %v7083_v47, 4  ;;  %v6185_v63 = vmov 0.0   ;;  %vm6186_vm15 = vmmov 0  }
 0x77c   : > { %v2611_v44 = vsel %vm9017_vm13, %v2608_v53, %v2610_v61  ;;  %v2483_v38 = vsel %vm9019_vm12, %v2480_v57, %v2482_v62  ;;  %5715 = vmatprep.subr.mxu0 %v6185_v63  ;;  %5719 = vmatprep.mubr.msk.f32.mxu0 %vm6186_vm15, %v6185_v63  ;;  %v2612_v54 = vrot.slane %v7083_v47, 6  ;;  %v2484_v5 = vrot.slane %v7121_v4, 2 }
 0x77d   : > { %2565 = vrot.lane.b32.xlu0 %v2542_v49, %s6175_s27  ;;  %v2548_v52 = vsel %vm9014_vm14, %v2545_v59, %v2547_v28  ;;  %5716 = vmatpush3.msra.mxu0 %v3369_v0  ;;  %v2549_v7 = vrot.slane %v7121_v4, 4  ;;  %v2614_v24 = vrot.slane %v7121_v4, 6  ;;  %v2486_v11 = vrot.slane %v7151_v10, 2  ;;  %v7248_v59 = vld [vmem:[%s8995_s10 + $0x40] sm:$0xff] }
 0x77e   : > { %2711 = vrot.lane.b32.xlu1 %v2479_v17, %s6176_s0  ;;  %5717 = vmatprep.subr.mxu0 %v6185_v63  ;;  %v2613_v3 = vsel %vm9017_vm13, %v2610_v61, %v2612_v54  ;;  %v2485_v6 = vsel %vm9019_vm12, %v2482_v62, %v2484_v5  ;;  %v2551_v13 = vrot.slane %v7151_v10, 4  ;;  %v2616_v25 = vrot.slane %v7151_v10, 6 }
 0x77f   : > { %5718 = vmatpush3.msra.mxu0 %v3368_v2  ;;  %v2550_v8 = vsel %vm9014_vm14, %v2547_v28, %v2549_v7  ;;  %v2615_v9 = vsel %vm9017_vm13, %v2612_v54, %v2614_v24  ;;  %v2487_v12 = vsel %vm9019_vm12, %v2484_v5, %v2486_v11  ;;  %v2488_v27 = vrot.slane %v7187_v22, 2 }
 0x780   : > { %v2552_v21 = vsel %vm9014_vm14, %v2549_v7, %v2551_v13  ;;  %v2617_v16 = vsel %vm9017_vm13, %v2614_v24, %v2616_v25  ;;  %v2553_v36 = vrot.slane %v7187_v22, 4  ;;  %v2618_v45 = vrot.slane %v7187_v22, 6 }
 0x781   : > { %2502 = vrot.lane.b32.xlu0 %v2479_v17, %s6173_s4  ;;  %v2489_v32 = vsel %vm9019_vm12, %v2486_v11, %v2488_v27  ;;  %vm3158_vm0 = vcmask 7168   ;;  %vm3172_vm1 = vcmask 15360   ;;  %vm9020_vm2 = vcmask 23552  }
 0x782   : > { %2752 = vrot.lane.b32.xlu1 %v2544_v51, %s6177_s2  ;;  %v2554_v40 = vsel %vm9014_vm14, %v2551_v13, %v2553_v36  ;;  %v2619_v49 = vsel %vm9017_vm13, %v2616_v25, %v2618_v45  ;;  %vm3200_vm3 = vcmask 31744   ;;  %vm9016_vm4 = vcmask 39936  }
 0x783   : > { %vm9015_vm5 = vcmask 48128   ;;  %vm9018_vm6 = vcmask 56320   ;;  %vm9011_vm7 = vcmask 64512   ;;  %v2555_v54 = vrot.slane %v7248_v59, 4 }
 0x784   : > { %vm9010_vm8 = vcmask 72704   ;;  %vm9012_vm9 = vcmask 80896   ;;  %vm9013_vm10 = vcmask 89088   ;;  %vm3312_vm11 = vcmask 97280  }
 0x785   : > { %2567 = vrot.lane.b32.xlu0 %v2544_v51, %s6175_s27 }
 0x786   : > { %2793 = vrot.lane.b32.xlu1 %v2609_v55, %s6178_s13 }
 0x789   : > { %2632 = vrot.lane.b32.xlu0 %v2609_v55, %s6174_s5 }
 0x78a   : > { %2833 = vrot.lane.b32.xlu1 %v7038_v43, %s6179_s21 }
 0x78d   : > { %2672 = vrot.lane.b32.xlu0 %v7038_v43, %s6172_s26 }
 0x78e   : > { %2713 = vrot.lane.b32.xlu1 %v2481_v58, %s6176_s0 }
 0x791   : > { %2504 = vrot.lane.b32.xlu0 %v2481_v58, %s6173_s4 }
 0x792   : > { %2569 = vrot.lane.b32.xlu1 %v2546_v60, %s6175_s27 }
 0x795   : > { %2874 = vrot.lane.b32.xlu0 %v2481_v58, %s6180_s25 }
 0x796   : > { %2915 = vrot.lane.b32.xlu1 %v2546_v60, %s6181_s19 }
 0x799   : > { %2754 = vrot.lane.b32.xlu0 %v2546_v60, %s6177_s2 }
 0x79a   : > { %2795 = vrot.lane.b32.xlu1 %v2611_v44, %s6178_s13 }
 0x79d   : > { %2634 = vrot.lane.b32.xlu0 %v2611_v44, %s6174_s5 }
 0x79e   : > { %2674 = vrot.lane.b32.xlu1 %v7058_v56, %s6172_s26 }
 0x7a1   : > { %2956 = vrot.lane.b32.xlu0 %v2611_v44, %s6182_s29 }
 0x7a2   : > { %2996 = vrot.lane.b32.xlu1 %v7058_v56, %s6183_s24 }
 0x7a5   : > { %2835 = vrot.lane.b32.xlu0 %v7058_v56, %s6179_s21 }
 0x7a6   : > { %2715 = vrot.lane.b32.xlu1 %v2483_v38, %s6176_s0 }
 0x7a9   : > { %2506 = vrot.lane.b32.xlu0 %v2483_v38, %s6173_s4 }
 0x7aa   : > { %3037 = vrot.lane.b32.xlu1 %v2483_v38, %s6184_s14 }
 0x7ad   : > { %2876 = vrot.lane.b32.xlu0 %v2483_v38, %s6180_s25 }
 0x7ae   : > { %2756 = vrot.lane.b32.xlu1 %v2548_v52, %s6177_s2 }
 0x7b1   : > { %2571 = vrot.lane.b32.xlu0 %v2548_v52, %s6175_s27 }
 0x7b2   : > { %3078 = vrot.lane.b32.xlu1 %v2548_v52, %s6187_s30 }
 0x7b5   : > { %2917 = vrot.lane.b32.xlu0 %v2548_v52, %s6181_s19 }
 0x7b6   : > { %2797 = vrot.lane.b32.xlu1 %v2613_v3, %s6178_s13 }
 0x7b9   : > { %2636 = vrot.lane.b32.xlu0 %v2613_v3, %s6174_s5 }
 0x7ba   : > { %3119 = vrot.lane.b32.xlu1 %v2613_v3, %s6188_s23 }
 0x7bd   : > { %2958 = vrot.lane.b32.xlu0 %v2613_v3, %s6182_s29 }
 0x7be   : > { %2837 = vrot.lane.b32.xlu1 %v7083_v47, %s6179_s21 }
 0x7c1   : > { %2676 = vrot.lane.b32.xlu0 %v7083_v47, %s6172_s26 }
 0x7c2   : > { %2508 = vrot.lane.b32.xlu1 %v2485_v6, %s6173_s4 }
 0x7c5   : > { %2998 = vrot.lane.b32.xlu0 %v7083_v47, %s6183_s24 }
 0x7c6   : > { %2878 = vrot.lane.b32.xlu1 %v2485_v6, %s6180_s25 }
 0x7c9   : > { %2717 = vrot.lane.b32.xlu0 %v2485_v6, %s6176_s0 }
 0x7ca   : > { %2573 = vrot.lane.b32.xlu1 %v2550_v8, %s6175_s27 }
 0x7cd   : > { %3039 = vrot.lane.b32.xlu0 %v2485_v6, %s6184_s14 }
 0x7ce   : > { %2919 = vrot.lane.b32.xlu1 %v2550_v8, %s6181_s19 }
 0x7d1   : > { %2758 = vrot.lane.b32.xlu0 %v2550_v8, %s6177_s2 }
 0x7d2   : > { %2638 = vrot.lane.b32.xlu1 %v2615_v9, %s6174_s5 }
 0x7d5   : > { %3080 = vrot.lane.b32.xlu0 %v2550_v8, %s6187_s30 }
 0x7d6   : > { %2960 = vrot.lane.b32.xlu1 %v2615_v9, %s6182_s29 }
 0x7d9   : > { %2799 = vrot.lane.b32.xlu0 %v2615_v9, %s6178_s13 }
 0x7da   : > { %2678 = vrot.lane.b32.xlu1 %v7121_v4, %s6172_s26 }
 0x7dd   : > { %3121 = vrot.lane.b32.xlu0 %v2615_v9, %s6188_s23  ;;  %v2556_v9 = vsel %vm9014_vm14, %v2553_v36, %v2555_v54 }
 0x7de   : > { %3000 = vrot.lane.b32.xlu1 %v7121_v4, %s6183_s24 }
 0x7e1   : > { %2839 = vrot.lane.b32.xlu0 %v7121_v4, %s6179_s21 }
 0x7e2   : > { %2719 = vrot.lane.b32.xlu1 %v2487_v12, %s6176_s0 }
 0x7e5   : > { %2510 = vrot.lane.b32.xlu0 %v2487_v12, %s6173_s4 }
 0x7e6   : > { %3041 = vrot.lane.b32.xlu1 %v2487_v12, %s6184_s14 }
 0x7e8   : > { %v7168_v26 = vpop.permute.xlu1 %2670 }
 0x7e9   : > { %2880 = vrot.lane.b32.xlu0 %v2487_v12, %s6180_s25 }
 0x7ea   : > { %2760 = vrot.lane.b32.xlu1 %v2552_v21, %s6177_s2 }
 0x7eb   : > { %v2501_v19 = vpop.permute.xlu0 %2500 }
 0x7ec   : > { %v2631_v14 = vpop.permute.xlu1 %2630  ;;  %v3159_v53 = vsel %vm3158_vm0, %v7025_v1, %v2501_v19  ;;  %v2490_v1 = vrot.slane %v7248_v59, 2 }
 0x7ed   : > { %2575 = vrot.lane.b32.xlu0 %v2552_v21, %s6175_s27 }
 0x7ee   : > { %3082 = vrot.lane.b32.xlu1 %v2552_v21, %s6187_s30  ;;  %v2491_v28 = vsel %vm9019_vm12, %v2488_v27, %v2490_v1 }
 0x7ef   : > { %v2566_v15 = vpop.permute.xlu0 %2565 }
 0x7f0   : > { %v7176_v18 = vpop.permute.xlu1 %2711  ;;  %v3173_v57 = vsel %vm3172_vm1, %v3159_v53, %v2566_v15 }
 0x7f1   : > { %2921 = vrot.lane.b32.xlu0 %v2552_v21, %s6181_s19  ;;  %v3187_v60 = vsel %vm9020_vm2, %v3173_v57, %v2631_v14 }
 0x7f2   : > { %2801 = vrot.lane.b32.xlu1 %v2617_v16, %s6178_s13  ;;  %v3201_v62 = vsel %vm3200_vm3, %v3187_v60, %v7168_v26  ;;  %v2620_v26 = vrot.slane %v7248_v59, 6 }
 0x7f3   : > { %v7180_v20 = vpop.permute.xlu0 %2502  ;;  %v3215_v52 = vsel %vm9016_vm4, %v3201_v62, %v7176_v18 }
 0x7f4   : > { %v7182_v30 = vpop.permute.xlu1 %2752 }
 0x7f5   : > { %2640 = vrot.lane.b32.xlu0 %v2617_v16, %s6174_s5  ;;  %v3229_v3 = vsel %vm9015_vm5, %v3215_v52, %v7182_v30 }
 0x7f6   : > { %3123 = vrot.lane.b32.xlu1 %v2617_v16, %s6188_s23 }
 0x7f7   : > { %v7191_v23 = vpop.permute.xlu0 %2567 }
 0x7f8   : > { %v7194_v29 = vpop.permute.xlu1 %2793 }
 0x7f9   : > { %2962 = vrot.lane.b32.xlu0 %v2617_v16, %s6182_s29  ;;  %v3243_v6 = vsel %vm9018_vm6, %v3229_v3, %v7194_v29  ;;  %v2621_v16 = vsel %vm9017_vm13, %v2618_v45, %v2620_v26 }
 0x7fa   : > { %2841 = vrot.lane.b32.xlu1 %v7151_v10, %s6179_s21 }
 0x7fb   : > { %v7199_v31 = vpop.permute.xlu0 %2632 }
 0x7fc   : > { %v7202_v33 = vpop.permute.xlu1 %2833 }
 0x7fd   : > { %2680 = vrot.lane.b32.xlu0 %v7151_v10, %s6172_s26  ;;  %v3257_v7 = vsel %vm9011_vm7, %v3243_v6, %v7202_v33  ;;  %vm3340_vm7 = vcmask 113664   ;;  %v7325_v33 = vld [vmem:[%s8995_s10 + $0x48] sm:$0xff] }
 0x7fe   : > { %2512 = vrot.lane.b32.xlu1 %v2489_v32, %s6173_s4 }
 0x7ff   : > { %v7207_v34 = vpop.permute.xlu0 %2672 }
 0x800   : > { %v7210_v37 = vpop.permute.xlu1 %2713 }
 0x801   : > { %3002 = vrot.lane.b32.xlu0 %v7151_v10, %s6183_s24 }
 0x802   : > { %2882 = vrot.lane.b32.xlu1 %v2489_v32, %s6180_s25 }
 0x803   : > { %v7215_v39 = vpop.permute.xlu0 %2504 }
 0x804   : > { %v7220_v41 = vpop.permute.xlu1 %2569 }
 0x805   : > { %2721 = vrot.lane.b32.xlu0 %v2489_v32, %s6176_s0 }
 0x806   : > { %2577 = vrot.lane.b32.xlu1 %v2554_v40, %s6175_s27 }
 0x807   : > { %v2875_v42 = vpop.permute.xlu0 %2874 }
 0x808   : > { %v2916_v46 = vpop.permute.xlu1 %2915  ;;  %v3271_v8 = vsel %vm9010_vm8, %v3257_v7, %v2875_v42  ;;  %vm3326_vm8 = vcmask 105472  }
 0x809   : > { %3043 = vrot.lane.b32.xlu0 %v2489_v32, %s6184_s14  ;;  %v3285_v12 = vsel %vm9012_vm9, %v3271_v8, %v2916_v46  ;;  %vm3354_vm9 = vcmask 121856  }
 0x80a   : > { %2923 = vrot.lane.b32.xlu1 %v2554_v40, %s6181_s19 }
 0x80b   : > { %v7227_v48 = vpop.permute.xlu0 %2754 }
 0x80c   : > { %v7232_v17 = vpop.permute.xlu1 %2795 }
 0x80d   : > { %2762 = vrot.lane.b32.xlu0 %v2554_v40, %s6177_s2 }
 0x80e   : > { %2642 = vrot.lane.b32.xlu1 %v2619_v49, %s6174_s5 }
 0x80f   : > { %v7236_v50 = vpop.permute.xlu0 %2634 }
 0x810   : > { %v7238_v51 = vpop.permute.xlu1 %2674 }
 0x811   : > { %3084 = vrot.lane.b32.xlu0 %v2554_v40, %s6187_s30  ;;  %v2492_v40 = vrot.slane %v7325_v33, 2 }
 0x812   : > { %2964 = vrot.lane.b32.xlu1 %v2619_v49, %s6182_s29 }
 0x813   : > { %v2957_v55 = vpop.permute.xlu0 %2956  ;;  %v2493_v46 = vsel %vm9019_vm12, %v2490_v1, %v2492_v40 }
 0x814   : > { %v2997_v58 = vpop.permute.xlu1 %2996  ;;  %v3299_v13 = vsel %vm9013_vm10, %v3285_v12, %v2957_v55  ;;  %vm3377_vm10 = vcmask 130048   ;;  %v2557_v55 = vrot.slane %v7325_v33, 4 }
 0x815   : > { %2803 = vrot.lane.b32.xlu0 %v2619_v49, %s6178_s13  ;;  %v3313_v25 = vsel %vm3312_vm11, %v3299_v13, %v2997_v58  ;;  %v3160_v58 = vsel %vm3158_vm0, %v7020_v35, %v7180_v20 }
 0x816   : > { %2682 = vrot.lane.b32.xlu1 %v7187_v22, %s6172_s26  ;;  %v3174_v60 = vsel %vm3172_vm1, %v3160_v58, %v7191_v23  ;;  %v2558_v62 = vsel %vm9014_vm14, %v2555_v54, %v2557_v55  ;;  %v2622_v23 = vrot.slane %v7325_v33, 6  ;;  %vm9039_vm14 = vcmask 64512  }
 0x817   : > { %v7254_v61 = vpop.permute.xlu0 %2835 }
 0x818   : > { %v7257_v44 = vpop.permute.xlu1 %2715  ;;  %v2623_v3 = vsel %vm9017_vm13, %v2620_v26, %v2622_v23  ;;  %vm9042_vm13 = vcmask 89088  }
 0x819   : > { %3125 = vrot.lane.b32.xlu0 %v2619_v49, %s6188_s23 }
 0x81a   : > { %3004 = vrot.lane.b32.xlu1 %v7187_v22, %s6183_s24 }
 0x81b   : > { %v7264_v38 = vpop.permute.xlu0 %2506 }
 0x81c   : > { %v3038_v0 = vpop.permute.xlu1 %3037 }
 0x81d   : > { %2843 = vrot.lane.b32.xlu0 %v7187_v22, %s6179_s21  ;;  %v3327_v14 = vsel %vm3326_vm8, %v3313_v25, %v3038_v0  ;;  %v7411_v25 = vld [vmem:[%s8995_s10 + $0x50] sm:$0xff] }
 0x81e   : > { %2723 = vrot.lane.b32.xlu1 %v2491_v28, %s6176_s0 }
 0x81f   : > { %v7274_v2 = vpop.permute.xlu0 %2876 }
 0x820   : > { %v7279_v5 = vpop.permute.xlu1 %2756 }
 0x821   : > { %2514 = vrot.lane.b32.xlu0 %v2491_v28, %s6173_s4 }
 0x822   : > { %3045 = vrot.lane.b32.xlu1 %v2491_v28, %s6184_s14 }
 0x823   : > { %v7288_v24 = vpop.permute.xlu0 %2571 }
 0x824   : > { %v3079_v11 = vpop.permute.xlu1 %3078 }
 0x825   : > { %2884 = vrot.lane.b32.xlu0 %v2491_v28, %s6180_s25  ;;  %v3341_v18 = vsel %vm3340_vm7, %v3327_v14, %v3079_v11  ;;  %v3188_v28 = vsel %vm9020_vm2, %v3174_v60, %v7199_v31 }
 0x826   : > { %2764 = vrot.lane.b32.xlu1 %v2556_v9, %s6177_s2  ;;  %v3202_v35 = vsel %vm3200_vm3, %v3188_v28, %v7207_v34 }
 0x827   : > { %v7299_v21 = vpop.permute.xlu0 %2917  ;;  %v3216_v52 = vsel %vm9016_vm4, %v3202_v35, %v7210_v37  ;;  %vm9041_vm4 = vcmask 80896  }
 0x828   : > { %v7302_v19 = vpop.permute.xlu1 %2797  ;;  %v3230_v31 = vsel %vm9015_vm5, %v3216_v52, %v7227_v48  ;;  %vm9040_vm5 = vcmask 72704  }
 0x829   : > { %2579 = vrot.lane.b32.xlu0 %v2556_v9, %s6175_s27  ;;  %v3244_v6 = vsel %vm9018_vm6, %v3230_v31, %v7232_v17 }
 0x82a   : > { %3086 = vrot.lane.b32.xlu1 %v2556_v9, %s6187_s30  ;;  %v3258_v37 = vsel %vm9039_vm14, %v3244_v6, %v7254_v61  ;;  %vm9044_vm14 = vcmask 1043456  }
 0x82b   : > { %v7308_v15 = vpop.permute.xlu0 %2636  ;;  %v3272_v48 = vsel %vm9040_vm5, %v3258_v37, %v7274_v2  ;;  %vm9046_vm5 = vcmask 64512  }
 0x82c   : > { %v3120_v30 = vpop.permute.xlu1 %3119  ;;  %v3286_v8 = vsel %vm9041_vm4, %v3272_v48, %v7299_v21  ;;  %vm9045_vm4 = vcmask 48128  }
 0x82d   : > { %v3355_v27 = vsel %vm3354_vm9, %v3341_v18, %v3120_v30  ;;  %2925 = vrot.lane.b32.xlu0 %v2556_v9, %s6181_s19  ;;  %v3161_v30 = vsel %vm3158_vm0, %v7038_v43, %v7215_v39  ;;  %v2559_v43 = vrot.slane %v7411_v25, 4 }
 0x82e   : > { %2805 = vrot.lane.b32.xlu1 %v2621_v16, %s6178_s13  ;;  %5720 = vmatmul.mubr.msk.f32.vlgmr.msra.gmra.mxu0 %vm3377_vm10, %v3355_v27 }
 0x82f   : > { %v2959_v29 = vpop.permute.xlu0 %2958  ;;  %5722 = vmatprep.mubr.msk.f32.mxu0 %vm6186_vm15, %v6185_v63 }
 0x830   : > { %v7320_v32 = vpop.permute.xlu1 %2837  ;;  %v3300_v11 = vsel %vm9042_vm13, %v3286_v8, %v2959_v29  ;;  %vm9043_vm13 = vcmask 39936  }
 0x831   : > { %2644 = vrot.lane.b32.xlu0 %v2621_v16, %s6174_s5 }
 0x832   : > { %3127 = vrot.lane.b32.xlu1 %v2621_v16, %s6188_s23 }
 0x833   : > { %v7329_v36 = vpop.permute.xlu0 %2676 }
 0x834   : > { %v7332_v42 = vpop.permute.xlu1 %2508 }
 0x835   : > { %2966 = vrot.lane.b32.xlu0 %v2621_v16, %s6182_s29  ;;  %v2494_v16 = vrot.slane %v7411_v25, 2 }
 0x836   : > { %2845 = vrot.lane.b32.xlu1 %v7248_v59, %s6179_s21 }
 0x837   : > { %v2999_v45 = vpop.permute.xlu0 %2998  ;;  %v2495_v29 = vsel %vm9019_vm12, %v2492_v40, %v2494_v16 }
 0x838   : > { %v7342_v49 = vpop.permute.xlu1 %2878  ;;  %v3314_v17 = vsel %vm3312_vm11, %v3300_v11, %v2999_v45 }
 0x839   : > { %2684 = vrot.lane.b32.xlu0 %v7248_v59, %s6172_s26 }
 0x83a   : > { %2516 = vrot.lane.b32.xlu1 %v2493_v46, %s6173_s4 }
 0x83b   : > { %v7347_v53 = vpop.permute.xlu0 %2717 }
 0x83c   : > { %v7350_v57 = vpop.permute.xlu1 %2573 }
 0x83d   : > { %3006 = vrot.lane.b32.xlu0 %v7248_v59, %s6183_s24 }
 0x83e   : > { %2886 = vrot.lane.b32.xlu1 %v2493_v46, %s6180_s25 }
 0x83f   : > { %v3040_v1 = vpop.permute.xlu0 %3039 }
 0x840   : > { %v7367_v0 = vpop.permute.xlu1 %2919  ;;  %v3328_v61 = vsel %vm3326_vm8, %v3314_v17, %v3040_v1 }
 0x841   : > { %2725 = vrot.lane.b32.xlu0 %v2493_v46, %s6176_s0 }
 0x842   : > { %2581 = vrot.lane.b32.xlu1 %v2558_v62, %s6175_s27 }
 0x843   : > { %v7373_v20 = vpop.permute.xlu0 %2758 }
 0x844   : > { %v7378_v54 = vpop.permute.xlu1 %2638 }
 0x845   : > { %3047 = vrot.lane.b32.xlu0 %v2493_v46, %s6184_s14  ;;  %v3175_v46 = vsel %vm3172_vm1, %v3161_v30, %v7220_v41 }
 0x846   : > { %2927 = vrot.lane.b32.xlu1 %v2558_v62, %s6181_s19  ;;  %v3189_v58 = vsel %vm9020_vm2, %v3175_v46, %v7236_v50  ;;  %v2560_v50 = vsel %vm9044_vm14, %v2557_v55, %v2559_v43  ;;  %v2624_v55 = vrot.slane %v7411_v25, 6  ;;  %vm9048_vm14 = vcmask 80896  }
 0x847   : > { %v3081_v34 = vpop.permute.xlu0 %3080  ;;  %v3203_v40 = vsel %vm3200_vm3, %v3189_v58, %v7238_v51  ;;  %v3162_v46 = vsel %vm3158_vm0, %v7058_v56, %v7264_v38 }
 0x848   : > { %v2961_v7 = vpop.permute.xlu1 %2960  ;;  %v3342_v2 = vsel %vm3340_vm7, %v3328_v61, %v3081_v34  ;;  %v3217_v41 = vsel %vm9043_vm13, %v3203_v40, %v7257_v44  ;;  %vm9047_vm13 = vcmask 72704   ;;  %v3176_v58 = vsel %vm3172_vm1, %v3162_v46, %v7288_v24 }
 0x849   : > { %2766 = vrot.lane.b32.xlu0 %v2558_v62, %s6177_s2 }
 0x84a   : > { %2646 = vrot.lane.b32.xlu1 %v2623_v3, %s6174_s5 }
 0x84b   : > { %v7397_v9 = vpop.permute.xlu0 %2799 }
 0x84c   : > { %v7400_v12 = vpop.permute.xlu1 %2678 }
 0x84d   : > { %3088 = vrot.lane.b32.xlu0 %v2558_v62, %s6187_s30  ;;  %v3231_v62 = vsel %vm9045_vm4, %v3217_v41, %v7279_v5  ;;  %vm9049_vm4 = vcmask 89088  }
 0x84e   : > { %2968 = vrot.lane.b32.xlu1 %v2623_v3, %s6182_s29  ;;  %v3245_v35 = vsel %vm9018_vm6, %v3231_v62, %v7302_v19 }
 0x84f   : > { %v3122_v13 = vpop.permute.xlu0 %3121  ;;  %v3259_v51 = vsel %vm9046_vm5, %v3245_v35, %v7320_v32  ;;  %vm9050_vm5 = vcmask 1041408  }
 0x850   : > { %v3356_v26 = vsel %vm3354_vm9, %v3342_v2, %v3122_v13  ;;  %v3001_v21 = vpop.permute.xlu1 %3000  ;;  %v3273_v44 = vsel %vm9047_vm13, %v3259_v51, %v7342_v49  ;;  %vm9051_vm13 = vcmask 1043456  }
 0x851   : > { %2807 = vrot.lane.b32.xlu0 %v2623_v3, %s6178_s13  ;;  %5723 = vmatmul.mubr.msk.f32.gmra.mxu0 %vm3377_vm10, %v3356_v26  ;;  %v3287_v5 = vsel %vm9048_vm14, %v3273_v44, %v7367_v0  ;;  %vm9052_vm14 = vcmask 39936  }
 0x852   : > { %2686 = vrot.lane.b32.xlu1 %v7325_v33, %s6172_s26  ;;  %5725 = vmatprep.mubr.msk.f32.mxu0 %vm6186_vm15, %v6185_v63  ;;  %v3301_v19 = vsel %vm9049_vm4, %v3287_v5, %v2961_v7  ;;  %vm9053_vm4 = vcmask 48128  }
 0x853   : > { %v7419_v14 = vpop.permute.xlu0 %2839  ;;  %v3315_v32 = vsel %vm3312_vm11, %v3301_v19, %v3001_v21 }
 0x854   : > { %v7422_v18 = vpop.permute.xlu1 %2719 }
 0x855   : > { %3129 = vrot.lane.b32.xlu0 %v2623_v3, %s6188_s23  ;;  %v2625_v3 = vsel %vm9050_vm5, %v2622_v23, %v2624_v55  ;;  %v7497_v23 = vld [vmem:[%s8995_s10 + $0x58] sm:$0xff] }
 0x856   : > { %3008 = vrot.lane.b32.xlu1 %v7325_v33, %s6183_s24  ;;  %v2496_v11 = vrot.slane %v7497_v23, 2  ;;  %v2561_v21 = vrot.slane %v7497_v23, 4  ;;  %v2626_v41 = vrot.slane %v7497_v23, 6 }
 0x857   : > { %v7430_v27 = vpop.permute.xlu0 %2510 }
 0x858   : > { %v3042_v45 = vpop.permute.xlu1 %3041  ;;  %v2497_v2 = vsel %vm9019_vm12, %v2494_v16, %v2496_v11  ;;  %v2562_v16 = vsel %vm9051_vm13, %v2559_v43, %v2561_v21  ;;  %v3190_v43 = vsel %vm9020_vm2, %v3176_v58, %v7308_v15  ;;  %v2627_v15 = vsel %vm9050_vm5, %v2624_v55, %v2626_v41 }
 0x859   : > { %2847 = vrot.lane.b32.xlu0 %v7325_v33, %s6179_s21  ;;  %v3329_v34 = vsel %vm3326_vm8, %v3315_v32, %v3042_v45  ;;  %v3204_v62 = vsel %vm3200_vm3, %v3190_v43, %v7329_v36  ;;  %vm9054_vm13 = vcmask 64512   ;;  %vm9057_vm5 = vcmask 89088   ;;  %v7577_v32 = vld [vmem:[%s8995_s10 + $0x60] sm:$0xff] }
 0x85a   : > { %2727 = vrot.lane.b32.xlu1 %v2495_v29, %s6176_s0  ;;  %v3218_v56 = vsel %vm9052_vm14, %v3204_v62, %v7347_v53  ;;  %vm9055_vm14 = vcmask 72704  }
 0x85b   : > { %v7442_v60 = vpop.permute.xlu0 %2880  ;;  %v3232_v38 = vsel %vm9053_vm4, %v3218_v56, %v7373_v20  ;;  %vm9056_vm4 = vcmask 80896  }
 0x85c   : > { %v7445_v39 = vpop.permute.xlu1 %2760 }
 0x85d   : > { %2518 = vrot.lane.b32.xlu0 %v2495_v29, %s6173_s4 }
 0x85e   : > { %3049 = vrot.lane.b32.xlu1 %v2495_v29, %s6184_s14 }
 0x85f   : > { %v7453_v1 = vpop.permute.xlu0 %2575 }
 0x860   : > { %v3083_v28 = vpop.permute.xlu1 %3082 }
 0x861   : > { %2888 = vrot.lane.b32.xlu0 %v2495_v29, %s6180_s25  ;;  %v3343_v0 = vsel %vm3340_vm7, %v3329_v34, %v3083_v28  ;;  %v3246_v28 = vsel %vm9018_vm6, %v3232_v38, %v7397_v9 }
 0x862   : > { %2768 = vrot.lane.b32.xlu1 %v2560_v50, %s6177_s2  ;;  %v3260_v36 = vsel %vm9054_vm13, %v3246_v28, %v7419_v14  ;;  %vm9058_vm13 = vcmask 39936  }
 0x863   : > { %v7468_v52 = vpop.permute.xlu0 %2921  ;;  %v3274_v53 = vsel %vm9055_vm14, %v3260_v36, %v7442_v60  ;;  %vm9059_vm14 = vcmask 1043456  }
 0x864   : > { %v7473_v31 = vpop.permute.xlu1 %2801  ;;  %v3288_v20 = vsel %vm9056_vm4, %v3274_v53, %v7468_v52  ;;  %vm9060_vm4 = vcmask 48128  }
 0x865   : > { %2583 = vrot.lane.b32.xlu0 %v2560_v50, %s6175_s27 }
 0x866   : > { %3090 = vrot.lane.b32.xlu1 %v2560_v50, %s6187_s30 }
 0x867   : > { %v7480_v49 = vpop.permute.xlu0 %2640 }
 0x868   : > { %v3124_v6 = vpop.permute.xlu1 %3123 }
 0x869   : > { %v3357_v37 = vsel %vm3354_vm9, %v3343_v0, %v3124_v6  ;;  %2929 = vrot.lane.b32.xlu0 %v2560_v50, %s6181_s19 }
 0x86a   : > { %2809 = vrot.lane.b32.xlu1 %v2625_v3, %s6178_s13  ;;  %5726 = vmatmul.mubr.msk.f32.gmra.mxu0 %vm3377_vm10, %v3357_v37 }
 0x86b   : > { %v2963_v7 = vpop.permute.xlu0 %2962  ;;  %5728 = vmatprep.mubr.msk.f32.mxu0 %vm6186_vm15, %v6185_v63 }
 0x86c   : > { %v7492_v48 = vpop.permute.xlu1 %2841  ;;  %v3302_v44 = vsel %vm9057_vm5, %v3288_v20, %v2963_v7  ;;  %vm9061_vm5 = vcmask 64512  }
 0x86d   : > { %2648 = vrot.lane.b32.xlu0 %v2625_v3, %s6174_s5 }
 0x86e   : > { %3131 = vrot.lane.b32.xlu1 %v2625_v3, %s6188_s23 }
 0x86f   : > { %v7501_v8 = vpop.permute.xlu0 %2680 }
 0x870   : > { %v7504_v17 = vpop.permute.xlu1 %2512 }
 0x871   : > { %2970 = vrot.lane.b32.xlu0 %v2625_v3, %s6182_s29  ;;  %v2498_v3 = vrot.slane %v7577_v32, 2 }
 0x872   : > { %2849 = vrot.lane.b32.xlu1 %v7411_v25, %s6179_s21 }
 0x873   : > { %v3003_v61 = vpop.permute.xlu0 %3002  ;;  %v2499_v37 = vsel %vm9019_vm12, %v2496_v11, %v2498_v3 }
 0x874   : > { %v7510_v13 = vpop.permute.xlu1 %2882  ;;  %v3316_v9 = vsel %vm3312_vm11, %v3302_v44, %v3003_v61  ;;  %v3163_v61 = vsel %vm3158_vm0, %v7083_v47, %v7332_v42  ;;  %v7671_v44 = vld [vmem:[%s8995_s10 + $0x68] sm:$0xff] }
 0x875   : > { %2688 = vrot.lane.b32.xlu0 %v7411_v25, %s6172_s26 }
 0x876   : > { %2520 = vrot.lane.b32.xlu1 %v2497_v2, %s6173_s4 }
 0x877   : > { %v7515_v26 = vpop.permute.xlu0 %2721 }
 0x878   : > { %v7518_v30 = vpop.permute.xlu1 %2577 }
 0x879   : > { %3010 = vrot.lane.b32.xlu0 %v7411_v25, %s6183_s24 }
 0x87a   : > { %2890 = vrot.lane.b32.xlu1 %v2497_v2, %s6180_s25 }
 0x87b   : > { %v3044_v29 = vpop.permute.xlu0 %3043 }
 0x87c   : > { %v7526_v45 = vpop.permute.xlu1 %2923  ;;  %v3330_v14 = vsel %vm3326_vm8, %v3316_v9, %v3044_v29  ;;  %v7605_v29 = vrot.slane %v7577_v32, 4 }
 0x87d   : > { %2729 = vrot.lane.b32.xlu0 %v2497_v2, %s6176_s0 }
 0x87e   : > { %2585 = vrot.lane.b32.xlu1 %v2562_v16, %s6175_s27 }
 0x87f   : > { %v7535_v40 = vpop.permute.xlu0 %2762 }
 0x880   : > { %v7540_v50 = vpop.permute.xlu1 %2642 }
 0x881   : > { %3051 = vrot.lane.b32.xlu0 %v2497_v2, %s6184_s14 }
 0x882   : > { %2931 = vrot.lane.b32.xlu1 %v2562_v16, %s6181_s19 }
 0x883   : > { %v3085_v24 = vpop.permute.xlu0 %3084 }
 0x884   : > { %v2965_v35 = vpop.permute.xlu1 %2964  ;;  %v3344_v60 = vsel %vm3340_vm7, %v3330_v14, %v3085_v24  ;;  %v7677_v14 = vrot.slane %v7671_v44, 2 }
 0x885   : > { %2770 = vrot.lane.b32.xlu0 %v2562_v16, %s6177_s2 }
 0x886   : > { %2650 = vrot.lane.b32.xlu1 %v2627_v15, %s6174_s5 }
 0x887   : > { %v7563_v51 = vpop.permute.xlu0 %2803 }
 0x888   : > { %v7566_v55 = vpop.permute.xlu1 %2682 }
 0x889   : > { %3092 = vrot.lane.b32.xlu0 %v2562_v16, %s6187_s30  ;;  %v3177_v16 = vsel %vm3172_vm1, %v3163_v61, %v7350_v57  ;;  %v2564_v57 = vsel %vm9059_vm14, %v2561_v21, %v7605_v29  ;;  %v7636_v21 = vrot.slane %v7577_v32, 6  ;;  %vm9063_vm14 = vcmask 80896  }
 0x88a   : > { %2972 = vrot.lane.b32.xlu1 %v2627_v15, %s6182_s29  ;;  %v3191_v11 = vsel %vm9020_vm2, %v3177_v16, %v7378_v54  ;;  %v3164_v16 = vsel %vm3158_vm0, %v7121_v4, %v7430_v27 }
 0x88b   : > { %v3126_v5 = vpop.permute.xlu0 %3125  ;;  %v3205_v47 = vsel %vm3200_vm3, %v3191_v11, %v7400_v12 }
 0x88c   : > { %v3358_v19 = vsel %vm3354_vm9, %v3344_v60, %v3126_v5  ;;  %v3005_v52 = vpop.permute.xlu1 %3004  ;;  %v3219_v42 = vsel %vm9058_vm13, %v3205_v47, %v7422_v18  ;;  %vm9062_vm13 = vcmask 72704  }
 0x88d   : > { %2811 = vrot.lane.b32.xlu0 %v2627_v15, %s6178_s13  ;;  %5729 = vmatmul.mubr.msk.f32.gmra.mxu0 %vm3377_vm10, %v3358_v19  ;;  %v3233_v54 = vsel %vm9060_vm4, %v3219_v42, %v7445_v39  ;;  %vm9064_vm4 = vcmask 89088   ;;  %v2710_v19 = vsel %vm9019_vm12, %v2498_v3, %v7677_v14 }
 0x88e   : > { %2690 = vrot.lane.b32.xlu1 %v7497_v23, %s6172_s26  ;;  %5731 = vmatprep.mubr.msk.f32.mxu0 %vm6186_vm15, %v6185_v63  ;;  %v3247_v62 = vsel %vm9018_vm6, %v3233_v54, %v7473_v31 }
 0x88f   : > { %v7585_v34 = vpop.permute.xlu0 %2843  ;;  %v3261_v12 = vsel %vm9061_vm5, %v3247_v62, %v7492_v48  ;;  %vm9065_vm5 = vcmask 1041408  }
 0x890   : > { %v7588_v0 = vpop.permute.xlu1 %2723  ;;  %v3275_v18 = vsel %vm9062_vm13, %v3261_v12, %v7510_v13  ;;  %vm9066_vm13 = vcmask 1043456  }
 0x891   : > { %3133 = vrot.lane.b32.xlu0 %v2627_v15, %s6188_s23  ;;  %v3289_v39 = vsel %vm9063_vm14, %v3275_v18, %v7526_v45  ;;  %v2629_v15 = vsel %vm9065_vm5, %v2626_v41, %v7636_v21  ;;  %vm9067_vm14 = vcmask 39936   ;;  %vm9069_vm5 = vcmask 64512  }
 0x892   : > { %3012 = vrot.lane.b32.xlu1 %v7497_v23, %s6183_s24  ;;  %v3303_v31 = vsel %vm9064_vm4, %v3289_v39, %v2965_v35  ;;  %vm9068_vm4 = vcmask 48128  }
 0x893   : > { %v7593_v6 = vpop.permute.xlu0 %2514  ;;  %v3317_v48 = vsel %vm3312_vm11, %v3303_v31, %v3005_v52 }
 0x894   : > { %v3046_v7 = vpop.permute.xlu1 %3045 }
 0x895   : > { %2851 = vrot.lane.b32.xlu0 %v7497_v23, %s6179_s21  ;;  %v3331_v24 = vsel %vm3326_vm8, %v3317_v48, %v3046_v7  ;;  %v7694_v7 = vrot.slane %v7671_v44, 4 }
 0x896   : > { %2731 = vrot.lane.b32.xlu1 %v2499_v37, %s6176_s0 }
 0x897   : > { %v7602_v2 = vpop.permute.xlu0 %2884  ;;  %v2751_v47 = vsel %vm9066_vm13, %v7605_v29, %v7694_v7  ;;  %vm9070_vm13 = vcmask 72704  }
 0x898   : > { %v7609_v46 = vpop.permute.xlu1 %2764 }
 0x899   : > { %2522 = vrot.lane.b32.xlu0 %v2499_v37, %s6173_s4 }
 0x89a   : > { %3053 = vrot.lane.b32.xlu1 %v2499_v37, %s6184_s14 }
 0x89b   : > { %v7619_v58 = vpop.permute.xlu0 %2579 }
 0x89c   : > { %v3087_v43 = vpop.permute.xlu1 %3086 }
 0x89d   : > { %2892 = vrot.lane.b32.xlu0 %v2499_v37, %s6180_s25  ;;  %v3345_v45 = vsel %vm3340_vm7, %v3331_v24, %v3087_v43 }
 0x89e   : > { %2772 = vrot.lane.b32.xlu1 %v2564_v57, %s6177_s2 }
 0x89f   : > { %v2926_v56 = vpop.permute.xlu0 %2925 }
 0x8a0   : > { %v7640_v38 = vpop.permute.xlu1 %2805 }
 0x8a1   : > { %2587 = vrot.lane.b32.xlu0 %v2564_v57, %s6175_s27 }
 0x8a2   : > { %3094 = vrot.lane.b32.xlu1 %v2564_v57, %s6187_s30 }
 0x8a3   : > { %v7647_v13 = vpop.permute.xlu0 %2644 }
 0x8a4   : > { %v3128_v28 = vpop.permute.xlu1 %3127 }
 0x8a5   : > { %v3359_v35 = vsel %vm3354_vm9, %v3345_v45, %v3128_v28  ;;  %2933 = vrot.lane.b32.xlu0 %v2564_v57, %s6181_s19 }
 0x8a6   : > { %2813 = vrot.lane.b32.xlu1 %v2629_v15, %s6178_s13  ;;  %5732 = vmatmul.mubr.msk.f32.gmra.mxu0 %vm3377_vm10, %v3359_v35 }
 0x8a7   : > { %v2967_v36 = vpop.permute.xlu0 %2966  ;;  %5734 = vmatprep.mubr.msk.f32.mxu0 %vm6186_vm15, %v6185_v63 }
 0x8a8   : > { %v7660_v53 = vpop.permute.xlu1 %2845 }
 0x8a9   : > { %2652 = vrot.lane.b32.xlu0 %v2629_v15, %s6174_s5 }
 0x8aa   : > { %3135 = vrot.lane.b32.xlu1 %v2629_v15, %s6188_s23 }
 0x8ab   : > { %v7664_v41 = vpop.permute.xlu0 %2684 }
 0x8ac   : > { %v7666_v20 = vpop.permute.xlu1 %2516 }
 0x8ad   : > { %2974 = vrot.lane.b32.xlu0 %v2629_v15, %s6182_s29 }
 0x8ae   : > { %2853 = vrot.lane.b32.xlu1 %v7577_v32, %s6179_s21 }
 0x8af   : > { %v3007_v9 = vpop.permute.xlu0 %3006 }
 0x8b0   : > { %v7679_v60 = vpop.permute.xlu1 %2886 }
 0x8b1   : > { %2692 = vrot.lane.b32.xlu0 %v7577_v32, %s6172_s26 }
 0x8b2   : > { %2524 = vrot.lane.b32.xlu1 %v2498_v3, %s6173_s4  ;;  %v3178_v3 = vsel %vm3172_vm1, %v3164_v16, %v7453_v1  ;;  %s9179_s4 = sld [smem:[#allocation12_spill]] }
 0x8b3   : > { %v7684_v5 = vpop.permute.xlu0 %2725  ;;  %v3192_v42 = vsel %vm9020_vm2, %v3178_v3, %v7480_v49 }
 0x8b4   : > { %v7688_v52 = vpop.permute.xlu1 %2581  ;;  %v3206_v4 = vsel %vm3200_vm3, %v3192_v42, %v7501_v8 }
 0x8b5   : > { %3014 = vrot.lane.b32.xlu0 %v7577_v32, %s6183_s24  ;;  %v3220_v27 = vsel %vm9067_vm14, %v3206_v4, %v7515_v26  ;;  %vm9071_vm14 = vcmask 80896  }
 0x8b6   : > { %2894 = vrot.lane.b32.xlu1 %v2710_v19, %s6180_s25  ;;  %v3234_v1 = vsel %vm9068_vm4, %v3220_v27, %v7535_v40  ;;  %vm9072_vm4 = vcmask 1041408  }
 0x8b7   : > { %v3048_v37 = vpop.permute.xlu0 %3047  ;;  %v3248_v49 = vsel %vm9018_vm6, %v3234_v1, %v7563_v51  ;;  %vm9073_vm6 = vcmask 89088  }
 0x8b8   : > { %v7696_v61 = vpop.permute.xlu1 %2927  ;;  %v3262_v8 = vsel %vm9069_vm5, %v3248_v49, %v7585_v34  ;;  %vm9075_vm5 = vcmask 1043456  }
 0x8b9   : > { %2733 = vrot.lane.b32.xlu0 %v2710_v19, %s6176_s0  ;;  %v3276_v26 = vsel %vm9070_vm13, %v3262_v8, %v7602_v2  ;;  %vm9076_vm13 = vcmask 48128  }
 0x8ba   : > { %2589 = vrot.lane.b32.xlu1 %v7605_v29, %s6175_s27  ;;  %v7724_v29 = vrot.slane %v7671_v44, 6  ;;  %v3290_v40 = vsel %vm9071_vm14, %v3276_v26, %v2926_v56  ;;  %vm9077_vm14 = vcmask 56320  }
 0x8bb   : > { %v7706_v11 = vpop.permute.xlu0 %2766  ;;  %v3304_v12 = vsel %vm9073_vm6, %v3290_v40, %v2967_v36  ;;  %vm9074_vm6 = vcmask 39936  }
 0x8bc   : > { %v7713_v57 = vpop.permute.xlu1 %2646  ;;  %v2792_v51 = vsel %vm9072_vm4, %v7636_v21, %v7724_v29  ;;  %v3318_v34 = vsel %vm3312_vm11, %v3304_v12, %v3007_v9  ;;  %v3165_v9 = vsel %vm3158_vm0, %v7151_v10, %v7504_v17  ;;  %vm9078_vm4 = vcmask 64512  }
 0x8bd   : > { %3055 = vrot.lane.b32.xlu0 %v2710_v19, %s6184_s14  ;;  %v3332_v2 = vsel %vm3326_vm8, %v3318_v34, %v3048_v37  ;;  %v3179_v16 = vsel %vm3172_vm1, %v3165_v9, %v7518_v30 }
 0x8be   : > { %2935 = vrot.lane.b32.xlu1 %v2751_v47, %s6181_s19 }
 0x8bf   : > { %v3089_v54 = vpop.permute.xlu0 %3088 }
 0x8c0   : > { %v2969_v43 = vpop.permute.xlu1 %2968  ;;  %v3346_v56 = vsel %vm3340_vm7, %v3332_v2, %v3089_v54 }
 0x8c1   : > { %2774 = vrot.lane.b32.xlu0 %v2751_v47, %s6177_s2 }
 0x8c2   : > { %2654 = vrot.lane.b32.xlu1 %v7636_v21, %s6174_s5  ;;  %v2459_v21 = vld [vmem:[%s8995_s10 + $0x70] sm:$0xff]  ;;  %s6192_s5 = smov 64  }
 0x8c3   : > { %v7736_v62 = vpop.permute.xlu0 %2807  ;;  %v2872_v15 = vrot.slane %v2459_v21, 2  ;;  %v2913_v37 = vrot.slane %v2459_v21, 4  ;;  %v2954_v42 = vrot.slane %v2459_v21, 6 }
 0x8c4   : > { %v7742_v18 = vpop.permute.xlu1 %2686 }
 0x8c5   : > { %3096 = vrot.lane.b32.xlu0 %v2751_v47, %s6187_s30  ;;  %v2873_v35 = vsel %vm9019_vm12, %v7677_v14, %v2872_v15  ;;  %v3193_v47 = vsel %vm9020_vm2, %v3179_v16, %v7540_v50  ;;  %v2914_v30 = vsel %vm9075_vm5, %v7694_v7, %v2913_v37  ;;  %vm9080_vm5 = vcmask 1041408  }
 0x8c6   : > { %2976 = vrot.lane.b32.xlu1 %v2792_v51, %s6182_s29  ;;  %v3207_v10 = vsel %vm3200_vm3, %v3193_v47, %v7566_v55 }
 0x8c7   : > { %v3130_v39 = vpop.permute.xlu0 %3129  ;;  %v3221_v17 = vsel %vm9074_vm6, %v3207_v10, %v7588_v0  ;;  %vm9079_vm6 = vcmask 72704   ;;  %v3166_v10 = vsel %vm3158_vm0, %v7187_v22, %v7593_v6 }
 0x8c8   : > { %v3360_v31 = vsel %vm3354_vm9, %v3346_v56, %v3130_v39  ;;  %v3009_v48 = vpop.permute.xlu1 %3008  ;;  %v3235_v50 = vsel %vm9076_vm13, %v3221_v17, %v7609_v46  ;;  %vm9081_vm13 = vcmask 80896  }
 0x8c9   : > { %2815 = vrot.lane.b32.xlu0 %v2792_v51, %s6178_s13  ;;  %5735 = vmatmul.mubr.msk.f32.gmra.mxu0 %vm3377_vm10, %v3360_v31 }
 0x8ca   : > { %2694 = vrot.lane.b32.xlu1 %v7671_v44, %s6172_s26  ;;  %5737 = vmatprep.mubr.msk.f32.mxu0 %vm6186_vm15, %v6185_v63 }
 0x8cb   : > { %v7759_v24 = vpop.permute.xlu0 %2847 }
 0x8cc   : > { %v7761_v45 = vpop.permute.xlu1 %2727 }
 0x8cd   : > { %3137 = vrot.lane.b32.xlu0 %v2792_v51, %s6188_s23 }
 0x8ce   : > { %3016 = vrot.lane.b32.xlu1 %v7671_v44, %s6183_s24 }
 0x8cf   : > { %v7766_v28 = vpop.permute.xlu0 %2518 }
 0x8d0   : > { %v3050_v36 = vpop.permute.xlu1 %3049 }
 0x8d1   : > { %2855 = vrot.lane.b32.xlu0 %v7671_v44, %s6179_s21 }
 0x8d2   : > { %2896 = vrot.lane.b32.xlu1 %v2873_v35, %s6180_s25 }
 0x8d3   : > { %v7776_v19 = vpop.permute.xlu0 %2888 }
 0x8d4   : > { %v7780_v3 = vpop.permute.xlu1 %2768 }
 0x8d5   : > { %2735 = vrot.lane.b32.xlu0 %v7677_v14, %s6176_s0  ;;  %v3249_v14 = vsel %vm9077_vm14, %v3235_v50, %v7640_v38  ;;  %vm9082_vm14 = vcmask 89088   ;;  %s6189_s0 = smov 16  }
 0x8d6   : > { %2776 = vrot.lane.b32.xlu1 %v7694_v7, %s6177_s2  ;;  %v3263_v55 = vsel %vm9078_vm4, %v3249_v14, %v7660_v53  ;;  %v2955_v7 = vsel %vm9080_vm5, %v7724_v29, %v2954_v42  ;;  %vm9083_vm4 = vcmask 1043456  }
 0x8d7   : > { %v7792_v44 = vpop.permute.xlu0 %2583  ;;  %v3277_v0 = vsel %vm9079_vm6, %v3263_v55, %v7679_v60  ;;  %vm9084_vm6 = vmmov %vm9080_vm5  ;;  %vm9085_vm5 = vcmask 39936  }
 0x8d8   : > { %v3091_v4 = vpop.permute.xlu1 %3090  ;;  %v3291_v46 = vsel %vm9081_vm13, %v3277_v0, %v7696_v61  ;;  %vm9086_vm13 = vcmask 48128  }
 0x8d9   : > { %3057 = vrot.lane.b32.xlu0 %v2873_v35, %s6184_s14  ;;  %v3305_v38 = vsel %vm9082_vm14, %v3291_v46, %v2969_v43  ;;  %v2460_v43 = vld [vmem:[%s8995_s10 + $0x78] sm:$0xff]  ;;  %vm9087_vm14 = vcmask 56320  }
 0x8da   : > { %3098 = vrot.lane.b32.xlu1 %v2914_v30, %s6187_s30  ;;  %v3319_v53 = vsel %vm3312_vm11, %v3305_v38, %v3009_v48  ;;  %v3035_v51 = vrot.slane %v2460_v43, 2  ;;  %v3076_v2 = vrot.slane %v2460_v43, 4  ;;  %v3117_v35 = vrot.slane %v2460_v43, 6 }
 0x8db   : > { %v2930_v27 = vpop.permute.xlu0 %2929  ;;  %v3333_v54 = vsel %vm3326_vm8, %v3319_v53, %v3050_v36 }
 0x8dc   : > { %v7810_v1 = vpop.permute.xlu1 %2809  ;;  %v3347_v49 = vsel %vm3340_vm7, %v3333_v54, %v3091_v4  ;;  %v3036_v34 = vsel %vm9019_vm12, %v2872_v15, %v3035_v51  ;;  %v3077_v48 = vsel %vm9083_vm4, %v2913_v37, %v3076_v2  ;;  %vm9088_vm4 = vcmask 64512  }
 0x8dd   : > { %2937 = vrot.lane.b32.xlu0 %v2914_v30, %s6181_s19  ;;  %vm9090_vm12 = vcmask 80896  }
 0x8de   : > { %2978 = vrot.lane.b32.xlu1 %v2955_v7, %s6182_s29 }
 0x8df   : > { %v7817_v60 = vpop.permute.xlu0 %2648 }
 0x8e0   : > { %v3132_v8 = vpop.permute.xlu1 %3131 }
 0x8e1   : > { %v3361_v26 = vsel %vm3354_vm9, %v3347_v49, %v3132_v8  ;;  %2817 = vrot.lane.b32.xlu0 %v7724_v29, %s6178_s13  ;;  %s9125_s13 = sld [smem:[#allocation8_spill]] }
 0x8e2   : > { %2857 = vrot.lane.b32.xlu1 %v2459_v21, %s6179_s21  ;;  %5738 = vmatmul.mubr.msk.f32.gmra.mxu0 %vm3377_vm10, %v3361_v26 }
 0x8e3   : > { %v2971_v61 = vpop.permute.xlu0 %2970  ;;  %5740 = vmatprep.mubr.msk.f32.mxu0 %vm6186_vm15, %v6185_v63 }
 0x8e4   : > { %v7830_v40 = vpop.permute.xlu1 %2849 }
 0x8e5   : > { %3139 = vrot.lane.b32.xlu0 %v2955_v7, %s6188_s23 }
 0x8e6   : > { %2898 = vrot.lane.b32.xlu1 %v2872_v15, %s6180_s25  ;;  %v3118_v15 = vsel %vm9084_vm6, %v2954_v42, %v3117_v35  ;;  %vm9089_vm6 = vcmask 72704   ;;  %s6191_s25 = smov 48  }
 0x8e7   : > { %v7834_v29 = vpop.permute.xlu0 %2688 }
 0x8e8   : > { %v2521_v12 = vpop.permute.xlu1 %2520 }
 0x8e9   : > { %3018 = vrot.lane.b32.xlu0 %v2459_v21, %s6183_s24  ;;  %v3169_v46 = vsel %vm3158_vm0, %v7411_v25, %v2521_v12 }
 0x8ea   : > { %2939 = vrot.lane.b32.xlu1 %v2913_v37, %s6181_s19  ;;  %v3180_v37 = vsel %vm3172_vm1, %v3166_v10, %v7619_v58  ;;  %s9126_s19 = sld [smem:[#allocation9_spill]] }
 0x8eb   : > { %v3011_v56 = vpop.permute.xlu0 %3010  ;;  %v3194_v30 = vsel %vm9020_vm2, %v3180_v37, %v7647_v13 }
 0x8ec   : > { %v7839_v39 = vpop.permute.xlu1 %2890 }
 0x8ed   : > { %3059 = vrot.lane.b32.xlu0 %v3036_v34, %s6184_s14 }
 0x8ee   : > { %2980 = vrot.lane.b32.xlu1 %v2954_v42, %s6182_s29  ;;  %v7843_v31 = vpop.f32.mrf.mxu0  ;;  %v3208_v42 = vsel %vm3200_vm3, %v3194_v30, %v7664_v41 }
 0x8ef   : > { %v7846_v36 = vpop.permute.xlu0 %2729  ;;  %v3222_v4 = vsel %vm9085_vm5, %v3208_v42, %v7684_v5  ;;  %vm9091_vm5 = vcmask 89088  }
 0x8f0   : > { %v2586_v21 = vpop.permute.xlu1 %2585  ;;  %v5721_v9 = vpop.f32.mrf.mxu0  ;;  %v3236_v22 = vsel %vm9086_vm13, %v3222_v4, %v7706_v11 }
 0x8f1   : > { %3100 = vrot.lane.b32.xlu0 %v3077_v48, %s6187_s30  ;;  %v3250_v58 = vsel %vm9087_vm14, %v3236_v22, %v7736_v62  ;;  %vm9094_vm14 = vcmask 48128  }
 0x8f2   : > { %3020 = vrot.lane.b32.xlu1 %v2460_v43, %s6183_s24  ;;  %v3264_v13 = vsel %vm9088_vm4, %v3250_v58, %v7759_v24  ;;  %vm9095_vm4 = vcmask 56320   ;;  %s6193_s24 = smov 80  }
 0x8f3   : > { %v3052_v16 = vpop.permute.xlu0 %3051  ;;  %v3278_v41 = vsel %vm9089_vm6, %v3264_v13, %v7776_v19  ;;  %vm9096_vm6 = vcmask 64512  }
 0x8f4   : > { %v2932_v47 = vpop.permute.xlu1 %2931  ;;  %v3292_v55 = vsel %vm9090_vm12, %v3278_v41, %v2930_v27  ;;  %v3183_v27 = vsel %vm3172_vm1, %v3169_v46, %v2586_v21  ;;  %vm9092_vm12 = vcmask 39936   ;;  %v3168_v46 = vsel %vm3158_vm0, %v7325_v33, %v7766_v28 }
 0x8f5   : > { %3141 = vrot.lane.b32.xlu0 %v3118_v15, %s6188_s23  ;;  %v3306_v5 = vsel %vm9091_vm5, %v3292_v55, %v2971_v61  ;;  %vm9093_vm13 = vmmov %vm9092_vm12  ;;  %vm9097_vm5 = vcmask 72704  }
 0x8f6   : > { %3102 = vrot.lane.b32.xlu1 %v3076_v2, %s6187_s30  ;;  %v3320_v7 = vsel %vm3312_vm11, %v3306_v5, %v3011_v56  ;;  %s9151_s30 = sld [smem:[#allocation10_spill]] }
 0x8f7   : > { %v7858_v17 = vpop.permute.xlu0 %2770  ;;  %v3334_v62 = vsel %vm3326_vm8, %v3320_v7, %v3052_v16 }
 0x8f8   : > { %v2651_v50 = vpop.permute.xlu1 %2650 }
 0x8f9   : > { %3061 = vrot.lane.b32.xlu0 %v3035_v51, %s6184_s14  ;;  %v3197_v54 = vsel %vm9020_vm2, %v3183_v27, %v2651_v50  ;;  %v3167_v51 = vsel %vm3158_vm0, %v7248_v59, %v7666_v20 }
 0x8fa   : > { %v3181_v34 = vsel %vm3172_vm1, %v3167_v51, %v7688_v52 }
 0x8fb   : > { %v3093_v6 = vpop.permute.xlu0 %3092  ;;  %v3195_v56 = vsel %vm9020_vm2, %v3181_v34, %v7713_v57 }
 0x8fc   : > { %v2973_v14 = vpop.permute.xlu1 %2972  ;;  %v3348_v24 = vsel %vm3340_vm7, %v3334_v62, %v3093_v6 }
 0x8fd   : > { %3143 = vrot.lane.b32.xlu0 %v3117_v35, %s6188_s23  ;;  %v3209_v35 = vsel %vm3200_vm3, %v3195_v56, %v7742_v18 }
 0x8fe   : > { %v3223_v21 = vsel %vm9093_vm13, %v3209_v35, %v7761_v45  ;;  %vm9099_vm13 = vcmask 89088  }
 0x8ff   : > { %v7877_v0 = vpop.permute.xlu0 %2811  ;;  %v3237_v52 = vsel %vm9094_vm14, %v3223_v21, %v7780_v3  ;;  %vm9100_vm14 = vcmask 39936  }
 0x900   : > { %v2691_v11 = vpop.permute.xlu1 %2690  ;;  %v3251_v57 = vsel %vm9095_vm4, %v3237_v52, %v7810_v1  ;;  %vm9101_vm4 = vcmask 48128  }
 0x901   : > { %v3211_v8 = vsel %vm3200_vm3, %v3197_v54, %v2691_v11  ;;  %v3265_v18 = vsel %vm9096_vm6, %v3251_v57, %v7830_v40  ;;  %vm9102_vm6 = vcmask 56320  }
 0x902   : > { %v3279_v45 = vsel %vm9097_vm5, %v3265_v18, %v7839_v39  ;;  %vm9103_vm5 = vcmask 64512  }
 0x903   : > { %v3134_v38 = vpop.permute.xlu0 %3133 }
 0x904   : > { %v3362_v53 = vsel %vm3354_vm9, %v3348_v24, %v3134_v38  ;;  %v3013_v19 = vpop.permute.xlu1 %3012  ;;  %v3182_v24 = vsel %vm3172_vm1, %v3168_v46, %v7792_v44 }
 0x905   : > { %5741 = vmatmul.mubr.msk.f32.gmra.mxu0 %vm3377_vm10, %v3362_v53  ;;  %v3196_v53 = vsel %vm9020_vm2, %v3182_v24, %v7817_v60 }
 0x906   : > { %5743 = vmatprep.mubr.msk.f32.mxu0 %vm6186_vm15, %v6185_v63  ;;  %v3210_v27 = vsel %vm3200_vm3, %v3196_v53, %v7834_v29 }
 0x907   : > { %v2852_v49 = vpop.permute.xlu0 %2851  ;;  %v3224_v54 = vsel %vm9100_vm14, %v3210_v27, %v7846_v36  ;;  %vm9108_vm14 = vmmov %vm9102_vm6 }
 0x908   : > { %v2732_v26 = vpop.permute.xlu1 %2731 }
 0x909   : > { %v7893_v25 = vsel %vm9092_vm12, %v3211_v8, %v2732_v26  ;;  %vm9098_vm12 = vcmask 80896   ;;  %v3238_v8 = vsel %vm9101_vm4, %v3224_v54, %v7858_v17 }
 0x90a   : > { %v3252_v33 = vsel %vm9102_vm6, %v3238_v8, %v7877_v0 }
 0x90b   : > { %v2523_v61 = vpop.permute.xlu0 %2522  ;;  %v3266_v44 = vsel %vm9103_vm5, %v3252_v33, %v2852_v49 }
 0x90c   : > { %v3054_v43 = vpop.permute.xlu1 %3053  ;;  %v3170_v59 = vsel %vm3158_vm0, %v7497_v23, %v2523_v61  ;;  %v3293_v23 = vsel %vm9098_vm12, %v3279_v45, %v2932_v47  ;;  %vm9104_vm12 = vcmask 72704  }
 0x90d   : > { %v3307_v30 = vsel %vm9099_vm13, %v3293_v23, %v2973_v14  ;;  %vm9105_vm13 = vcmask 80896   ;;  %vm9110_vm6 = vmmov %vm9104_vm12 }
 0x90e   : > { %v3321_v3 = vsel %vm3312_vm11, %v3307_v30, %v3013_v19 }
 0x90f   : > { %v2893_v12 = vpop.permute.xlu0 %2892  ;;  %v3335_v50 = vsel %vm3326_vm8, %v3321_v3, %v3054_v43 }
 0x910   : > { %v7900_v2 = vpop.permute.xlu1 %2772  ;;  %v3280_v61 = vsel %vm9104_vm12, %v3266_v44, %v2893_v12  ;;  %vm9112_vm12 = vcmask 89088  }
 0x911   : > { %v7904_v48 = vpop.f32.mrf.mxu0 }
 0x913   : > { %v5724_v20 = vpop.f32.mrf.mxu0  ;;  %v2588_v9 = vpop.permute.xlu0 %2587 }
 0x914   : > { %v3184_v15 = vsel %vm3172_vm1, %v3170_v59, %v2588_v9  ;;  %v3095_v16 = vpop.permute.xlu1 %3094 }
 0x915   : > { %v3349_v4 = vsel %vm3340_vm7, %v3335_v50, %v3095_v16 }
 0x917   : > { %v2934_v10 = vpop.permute.xlu0 %2933 }
 0x918   : > { %v2814_v37 = vpop.permute.xlu1 %2813  ;;  %v3294_v60 = vsel %vm9105_vm13, %v3280_v61, %v2934_v10 }
 0x91b   : > { %v2653_v42 = vpop.permute.xlu0 %2652 }
 0x91c   : > { %v7927_v1 = vsel %vm9020_vm2, %v3184_v15, %v2653_v42  ;;  %v3136_v40 = vpop.permute.xlu1 %3135  ;;  %vm9106_vm2 = vcmask 89088  }
 0x91d   : > { %v3363_v22 = vsel %vm3354_vm9, %v3349_v4, %v3136_v40 }
 0x91e   : > { %5744 = vmatmul.mubr.msk.f32.gmra.mxu0 %vm3377_vm10, %v3363_v22 }
 0x91f   : > { %v2975_v39 = vpop.permute.xlu0 %2974  ;;  %5746 = vmatprep.mubr.msk.f32.mxu0 %vm6186_vm15, %v6185_v63 }
 0x920   : > { %v2854_v47 = vpop.permute.xlu1 %2853  ;;  %v3308_v29 = vsel %vm9106_vm2, %v3294_v60, %v2975_v39  ;;  %vm9107_vm2 = vmmov %vm9101_vm4 }
 0x921   : > { %v3239_v52 = vsel %vm9107_vm2, %v7893_v25, %v7900_v2  ;;  %vm9109_vm4 = vmmov %vm9103_vm5 }
 0x922   : > { %v3253_v16 = vsel %vm9108_vm14, %v3239_v52, %v2814_v37  ;;  %vm9111_vm5 = vmmov %vm9105_vm13  ;;  %vm9113_vm13 = vcmask 39936  }
 0x923   : > { %v2693_v6 = vpop.permute.xlu0 %2692  ;;  %v3267_v57 = vsel %vm9109_vm4, %v3253_v16, %v2854_v47 }
 0x924   : > { %v2525_v58 = vpop.permute.xlu1 %2524  ;;  %v3212_v39 = vsel %vm3200_vm3, %v7927_v1, %v2693_v6 }
 0x925   : > { %v3171_v47 = vsel %vm3158_vm0, %v7577_v32, %v2525_v58  ;;  %vm9115_vm0 = vcmask 72704  }
 0x927   : > { %v3015_v14 = vpop.permute.xlu0 %3014 }
 0x928   : > { %v2895_v13 = vpop.permute.xlu1 %2894  ;;  %v3322_v36 = vsel %vm3312_vm11, %v3308_v29, %v3015_v14 }
 0x929   : > { %v3281_v10 = vsel %vm9110_vm6, %v3267_v57, %v2895_v13  ;;  %vm9114_vm6 = vcmask 23552  }
 0x92a   : > { %v7933_v41 = vpop.f32.mrf.mxu0 }
 0x92b   : > { %v2734_v55 = vpop.permute.xlu0 %2733 }
 0x92c   : > { %v7935_v5 = vpop.permute.xlu1 %2589  ;;  %v5727_v11 = vpop.f32.mrf.mxu0  ;;  %v3226_v14 = vsel %vm9113_vm13, %v3212_v39, %v2734_v55 }
 0x92d   : > { %v3185_v46 = vsel %vm3172_vm1, %v3171_v47, %v7935_v5  ;;  %vm9120_vm1 = vmmov %vm9108_vm14 }
 0x92f   : > { %v3056_v7 = vpop.permute.xlu0 %3055 }
 0x930   : > { %v2936_v62 = vpop.permute.xlu1 %2935  ;;  %v3336_v34 = vsel %vm3326_vm8, %v3322_v36, %v3056_v7 }
 0x931   : > { %v3295_v30 = vsel %vm9111_vm5, %v3281_v10, %v2936_v62  ;;  %vm9116_vm5 = vmmov %vm9113_vm13 }
 0x932   : > { %vm9118_vm13 = vmmov %vm9107_vm2 }
 0x933   : > { %v2775_v38 = vpop.permute.xlu0 %2774 }
 0x934   : > { %v2655_v19 = vpop.permute.xlu1 %2654  ;;  %v3240_v13 = vsel %vm9107_vm2, %v3226_v14, %v2775_v38  ;;  %vm9119_vm2 = vcmask 89088  }
 0x935   : > { %v3199_v6 = vsel %vm9114_vm6, %v3185_v46, %v2655_v19  ;;  %vm9124_vm6 = vmmov %vm9119_vm2 }
 0x937   : > { %v3097_v26 = vpop.permute.xlu0 %3096 }
 0x938   : > { %v2977_v28 = vpop.permute.xlu1 %2976  ;;  %v3350_v17 = vsel %vm3340_vm7, %v3336_v34, %v3097_v26 }
 0x939   : > { %v3309_v3 = vsel %vm9112_vm12, %v3295_v30, %v2977_v28  ;;  %vm9117_vm12 = vcmask 80896  }
 0x93b   : > { %v2816_v43 = vpop.permute.xlu0 %2815 }
 0x93c   : > { %v2695_v51 = vpop.permute.xlu1 %2694  ;;  %v3254_v7 = vsel %vm9108_vm14, %v3240_v13, %v2816_v43  ;;  %vm9122_vm14 = vmmov %vm9115_vm0 }
 0x93d   : > { %v3213_v32 = vsel %vm3200_vm3, %v3199_v6, %v2695_v51  ;;  %vm9121_vm3 = vmmov %vm9109_vm4 }
 0x93f   : > { %v3138_v56 = vpop.permute.xlu0 %3137 }
 0x940   : > { %v3364_v0 = vsel %vm3354_vm9, %v3350_v17, %v3138_v56  ;;  %v3017_v35 = vpop.permute.xlu1 %3016 }
 0x941   : > { %5747 = vmatmul.mubr.msk.f32.gmra.mxu0 %vm3377_vm10, %v3364_v0  ;;  %v3323_v50 = vsel %vm3312_vm11, %v3309_v3, %v3017_v35 }
 0x942   : > { %5749 = vmatprep.mubr.msk.f32.mxu0 %vm6186_vm15, %v6185_v63 }
 0x943   : > { %v2856_v49 = vpop.permute.xlu0 %2855 }
 0x944   : > { %v2897_v12 = vpop.permute.xlu1 %2896  ;;  %v3268_v1 = vsel %vm9109_vm4, %v3254_v7, %v2856_v49  ;;  %vm9123_vm4 = vmmov %vm9117_vm12 }
 0x945   : > { %v3282_v55 = vsel %vm9115_vm0, %v3268_v1, %v2897_v12 }
 0x947   : > { %v2736_v21 = vpop.permute.xlu0 %2735 }
 0x948   : > { %v2777_v59 = vpop.permute.xlu1 %2776  ;;  %v3227_v24 = vsel %vm9116_vm5, %v3213_v32, %v2736_v21  ;;  %vm9132_vm5 = vcmask 1043456  }
 0x949   : > { %v3241_v27 = vsel %vm9118_vm13, %v3227_v24, %v2777_v59  ;;  %vm9134_vm13 = vmmov %vm9132_vm5 }
 0x94b   : > { %v3058_v20 = vpop.permute.xlu0 %3057 }
 0x94c   : > { %v3099_v9 = vpop.permute.xlu1 %3098  ;;  %v3337_v25 = vsel %vm3326_vm8, %v3323_v50, %v3058_v20 }
 0x94d   : > { %v7966_v15 = vpop.f32.mrf.mxu0  ;;  %v3351_v4 = vsel %vm3340_vm7, %v3337_v25, %v3099_v9  ;;  %v5253_v25 = vld [vmem:[%s9126_s19] ss:$0 sm:$0xff] }
 0x94e   : > { %v3499_v24 = vadd.f32 %v5253_v25, %v7966_v15 }
 0x94f   : > { %v5730_v18 = vpop.f32.mrf.mxu0  ;;  %v2938_v45 = vpop.permute.xlu0 %2937 }
 0x950   : > { %v2979_v23 = vpop.permute.xlu1 %2978  ;;  %v3296_v38 = vsel %vm9117_vm12, %v3282_v55, %v2938_v45  ;;  %vm9133_vm12 = vmmov %vm9132_vm5 }
 0x951   : > { %v3310_v8 = vsel %vm9119_vm2, %v3296_v38, %v2979_v23  ;;  %vm9135_vm2 = vmmov %vm9132_vm5 }
 0x953   : > { %v2818_v42 = vpop.permute.xlu0 %2817 }
 0x954   : > { %v2858_v2 = vpop.permute.xlu1 %2857  ;;  %v3255_v5 = vsel %vm9120_vm1, %v3241_v27, %v2818_v42 }
 0x955   : > { %v3269_v28 = vsel %vm9121_vm3, %v3255_v5, %v2858_v2  ;;  %v3484_v5 = vadd.f32 %v5253_v25, %v7843_v31  ;;  %v3563_v31 = vld [vmem:[%s9125_s13 + $0x18] sm:$0xff] }
 0x957   : > { %v3140_v37 = vpop.permute.xlu0 %3139  ;;  %v3547_v15 = vmax.f32 %v3484_v5, 0.0  ;;  %v3621_v5 = vld [vmem:[%s9125_s13 + $0x1e8] sm:$0xff] }
 0x958   : > { %v3365_v40 = vsel %vm3354_vm9, %v3351_v4, %v3140_v37  ;;  %v2899_v22 = vpop.permute.xlu1 %2898 }
 0x959   : > { %5750 = vmatmul.mubr.msk.f32.gmra.mxu0 %vm3377_vm10, %v3365_v40  ;;  %v3283_v60 = vsel %vm9122_vm14, %v3269_v28, %v2899_v22  ;;  %v3565_v28 = vld [vmem:[%s9125_s13 + $0x28] sm:$0xff] }
 0x95a   : > { %5752 = vmatprep.mubr.msk.f32.mxu0 %vm6186_vm15, %v6185_v63 }
 0x95b   : > { %v3019_v11 = vpop.permute.xlu0 %3018 }
 0x95c   : > { %v2940_v62 = vpop.permute.xlu1 %2939  ;;  %v3324_v26 = vsel %vm3312_vm11, %v3310_v8, %v3019_v11  ;;  %v3550_v8 = vmax.f32 %v3499_v24, 0.0  ;;  %v3615_v24 = vld [vmem:[%s9125_s13 + $0x1b8] sm:$0xff] }
 0x95d   : > { %v3297_v36 = vsel %vm9123_vm4, %v3283_v60, %v2940_v62  ;;  %v3568_v60 = vld [vmem:[%s9125_s13 + $0x40] sm:$0xff] }
 0x95f   : > { %v3060_v58 = vpop.permute.xlu0 %3059 }
 0x960   : > { %v2981_v53 = vpop.permute.xlu1 %2980  ;;  %v3338_v19 = vsel %vm3326_vm8, %v3324_v26, %v3060_v58 }
 0x961   : > { %v3311_v34 = vsel %vm9124_vm6, %v3297_v36, %v2981_v53  ;;  %v3494_v53 = vadd.f32 %v5253_v25, %v7933_v41  ;;  %v3561_v41 = vld [vmem:[%s9125_s13 + $0x8] sm:$0xff]  ;;  %v3572_v36 = vld [vmem:[%s9125_s13 + $0x60] sm:$0xff] }
 0x963   : > { %v3101_v54 = vpop.permute.xlu0 %3100  ;;  %v3549_v26 = vmax.f32 %v3494_v53, 0.0  ;;  %v3617_v53 = vld [vmem:[%s9125_s13 + $0x1c8] sm:$0xff] }
 0x964   : > { %v3352_v44 = vsel %vm3340_vm7, %v3338_v19, %v3101_v54  ;;  %v3021_v43 = vpop.permute.xlu1 %3020  ;;  %v3489_v54 = vadd.f32 %v5253_v25, %v7904_v48  ;;  %v3562_v48 = vld [vmem:[%s9125_s13 + $0x10] sm:$0xff] }
 0x965   : > { %v3325_v17 = vsel %vm3312_vm11, %v3311_v34, %v3021_v43  ;;  %v3569_v43 = vld [vmem:[%s9125_s13 + $0x48] sm:$0xff] }
 0x966   : > { %v8000_v33 = vpop.f32.mrf.mxu0  ;;  %v3548_v19 = vmax.f32 %v3489_v54, 0.0  ;;  %v3573_v34 = vld [vmem:[%s9125_s13 + $0x68] sm:$0xff]  ;;  %v3619_v54 = vld [vmem:[%s9125_s13 + $0x1d8] sm:$0xff] }
 0x967   : > { %v3142_v61 = vpop.permute.xlu0 %3141  ;;  %v3504_v58 = vadd.f32 %v5253_v25, %v8000_v33  ;;  %v3564_v33 = vld [vmem:[%s9125_s13 + $0x20] sm:$0xff] }
 0x968   : > { %v3366_v29 = vsel %vm3354_vm9, %v3352_v44, %v3142_v61  ;;  %v5733_v51 = vpop.f32.mrf.mxu0  ;;  %v3103_v35 = vpop.permute.xlu1 %3102  ;;  %v3566_v44 = vld [vmem:[%s9125_s13 + $0x30] sm:$0xff]  ;;  %v3567_v61 = vld [vmem:[%s9125_s13 + $0x38] sm:$0xff] }
 0x969   : > { %5753 = vmatmul.mubr.msk.f32.gmra.mxu0 %vm3377_vm10, %v3366_v29  ;;  %v3551_v27 = vmax.f32 %v3504_v58, 0.0  ;;  %v3570_v29 = vld [vmem:[%s9125_s13 + $0x50] sm:$0xff]  ;;  %v3571_v51 = vld [vmem:[%s9125_s13 + $0x58] sm:$0xff]  ;;  %v3613_v58 = vld [vmem:[%s9125_s13 + $0x1a8] sm:$0xff] }
 0x96a   : > { %5755 = vmatprep.mubr.msk.f32.mxu0 %vm6186_vm15, %v6185_v63  ;;  %v3560_v63 = vld [vmem:[%s9125_s13] sm:$0xff]  ;;  %vm3628_vm15 = vcmask 801792  }
 0x96b   : > { %v3062_v56 = vpop.permute.xlu0 %3061  ;;  %5784 = vmatprep.mubr.msk.f32.mxu1 %vm3628_vm15, %v3560_v63  ;;  %v3587_v63 = vld [vmem:[%s9125_s13 + $0xd8] sm:$0xff] }
 0x96c   : > { %v3339_v0 = vsel %vm3326_vm8, %v3325_v17, %v3062_v56  ;;  %v3574_v17 = vld [vmem:[%s9125_s13 + $0x70] sm:$0xff]  ;;  %v3575_v56 = vld [vmem:[%s9125_s13 + $0x78] sm:$0xff] }
 0x96d   : > { %v3353_v49 = vsel %vm3340_vm7, %v3339_v0, %v3103_v35  ;;  %vm9127_vm7 = vcmask 1041408   ;;  %v3576_v0 = vld [vmem:[%s9125_s13 + $0x80] sm:$0xff]  ;;  %v3577_v35 = vld [vmem:[%s9125_s13 + $0x88] sm:$0xff] }
 0x96e   : > { %vm9128_vm8 = vmmov %vm9127_vm7 }
 0x96f   : > { %v3144_v12 = vpop.permute.xlu0 %3143  ;;  %vm9136_vm1 = vmmov %vm9127_vm7 }
 0x970   : > { %v3367_v21 = vsel %vm3354_vm9, %v3353_v49, %v3144_v12  ;;  %v3578_v49 = vld [vmem:[%s9125_s13 + $0x90] sm:$0xff]  ;;  %v3579_v12 = vld [vmem:[%s9125_s13 + $0x98] sm:$0xff]  ;;  %vm9129_vm9 = vcmask 1045504   ;;  %vm9137_vm3 = vmmov %vm9136_vm1 }
 0x971   : > { %5756 = vmatmul.mubr.msk.f32.gmra.mxu0 %vm3377_vm10, %v3367_v21  ;;  %v3580_v21 = vld [vmem:[%s9125_s13 + $0xa0] sm:$0xff]  ;;  %vm9130_vm11 = vmmov %vm9129_vm9 }
 0x972   : > { %vm9131_vm0 = vmmov %vm9129_vm9 }
 0x973   : > { %vm9138_vm14 = vmmov %vm9136_vm1 }
 0x974   : > { %vm9139_vm4 = vmmov %vm9136_vm1 }
 0x975   : > { %vm9140_vm6 = vmmov %vm9131_vm0 }
 0x989   : > { %v3508_v59 = vpop.f32.mrf.mxu0 }
 0x98a   : > { %v3509_v6 = vadd.f32 %v5253_v25, %v3508_v59  ;;  %v3581_v59 = vld [vmem:[%s9125_s13 + $0xa8] sm:$0xff] }
 0x98b   : > { %v5736_v20 = vpop.f32.mrf.mxu0 }
 0x98c   : > { %v3552_v38 = vmax.f32 %v3509_v6, 0.0  ;;  %v3582_v20 = vld [vmem:[%s9125_s13 + $0xb0] sm:$0xff]  ;;  %v3611_v6 = vld [vmem:[%s9125_s13 + $0x198] sm:$0xff] }
 0x9a2   : > { %v3513_v9 = vpop.f32.mrf.mxu0 }
 0x9a3   : > { %v3514_v46 = vadd.f32 %v5253_v25, %v3513_v9  ;;  %v3583_v9 = vld [vmem:[%s9125_s13 + $0xb8] sm:$0xff] }
 0x9a4   : > { %v5739_v52 = vpop.f32.mrf.mxu0 }
 0x9a5   : > { %v3553_v55 = vmax.f32 %v3514_v46, 0.0  ;;  %v3584_v52 = vld [vmem:[%s9125_s13 + $0xc0] sm:$0xff]  ;;  %v3609_v46 = vld [vmem:[%s9125_s13 + $0x188] sm:$0xff] }
 0x9c5   : > { %v3518_v16 = vpop.f32.mrf.mxu0 }
 0x9c6   : > { %v3519_v7 = vadd.f32 %v5253_v25, %v3518_v16  ;;  %v3585_v16 = vld [vmem:[%s9125_s13 + $0xc8] sm:$0xff] }
 0x9c7   : > { %v5742_v57 = vpop.f32.mrf.mxu0 }
 0x9c8   : > { %v3554_v32 = vmax.f32 %v3519_v7, 0.0  ;;  %v3586_v57 = vld [vmem:[%s9125_s13 + $0xd0] sm:$0xff]  ;;  %v3607_v7 = vld [vmem:[%s9125_s13 + $0x178] sm:$0xff] }
 0x9de   : > { %v3523_v18 = vpop.f32.mrf.mxu0 }
 0x9df   : > { %v3524_v13 = vadd.f32 %v5253_v25, %v3523_v18  ;;  %v3588_v18 = vld [vmem:[%s9125_s13 + $0xe0] sm:$0xff] }
 0x9e0   : > { %v5745_v45 = vpop.f32.mrf.mxu0 }
 0x9e1   : > { %v3555_v1 = vmax.f32 %v3524_v13, 0.0  ;;  %v3589_v45 = vld [vmem:[%s9125_s13 + $0xe8] sm:$0xff] }
 0x9e2   : > { %v3605_v13 = vld [vmem:[%s9125_s13 + $0x168] sm:$0xff] }
 0xa01   : > { %v3528_v10 = vpop.f32.mrf.mxu0 }
 0xa02   : > { %v3529_v47 = vadd.f32 %v5253_v25, %v3528_v10  ;;  %v3590_v10 = vld [vmem:[%s9125_s13 + $0xf0] sm:$0xff] }
 0xa03   : > { %v5748_v23 = vpop.f32.mrf.mxu0 }
 0xa04   : > { %v3556_v62 = vmax.f32 %v3529_v47, 0.0  ;;  %v3591_v23 = vld [vmem:[%s9125_s13 + $0xf8] sm:$0xff] }
 0xa05   : > { %v3603_v47 = vld [vmem:[%s9125_s13 + $0x158] sm:$0xff] }
 0xa19   : > { %v3533_v30 = vpop.f32.mrf.mxu0 }
 0xa1a   : > { %v3534_v22 = vadd.f32 %v5253_v25, %v3533_v30  ;;  %v3592_v30 = vld [vmem:[%s9125_s13 + $0x100] sm:$0xff] }
 0xa1b   : > { %v5751_v3 = vpop.f32.mrf.mxu0 }
 0xa1c   : > { %v3557_v11 = vmax.f32 %v3534_v22, 0.0  ;;  %v3593_v3 = vld [vmem:[%s9125_s13 + $0x108] sm:$0xff] }
 0xa1d   : > { %v3601_v22 = vld [vmem:[%s9125_s13 + $0x148] sm:$0xff] }
 0xa29   : > { %v3538_v50 = vpop.f32.mrf.mxu0 }
 0xa2a   : > { %v3539_v4 = vadd.f32 %v5253_v25, %v3538_v50  ;;  %v3594_v50 = vld [vmem:[%s9125_s13 + $0x110] sm:$0xff] }
 0xa2b   : > { %v5754_v42 = vpop.f32.mrf.mxu0 }
 0xa2c   : > { %v3558_v14 = vmax.f32 %v3539_v4, 0.0  ;;  %v3595_v42 = vld [vmem:[%s9125_s13 + $0x118] sm:$0xff]  ;;  %v3598_v4 = vld [vmem:[%s9125_s13 + $0x130] sm:$0xff] }
 0xa31   : > { %v3543_v2 = vpop.f32.mrf.mxu0 }
 0xa32   : > { %v3544_v37 = vadd.f32 %v5253_v25, %v3543_v2  ;;  %v3596_v25 = vld [vmem:[%s9125_s13 + $0x120] sm:$0xff]  ;;  %v3597_v2 = vld [vmem:[%s9125_s13 + $0x128] sm:$0xff] }
 0xa33   : > { %v5757_v40 = vpop.f32.mrf.mxu0 }
 0xa34   : > { %v3559_v39 = vmax.f32 %v3544_v37, 0.0  ;;  %v3599_v37 = vld [vmem:[%s9125_s13 + $0x138] sm:$0xff]  ;;  %v3600_v40 = vld [vmem:[%s9125_s13 + $0x140] sm:$0xff] }
 0xa36   : > { %5758 = vmatprep.subr.msk.mxu1 %vm9127_vm7, %v3559_v39  ;;  %vm9142_vm7 = vmmov %vm9131_vm0 }
 0xa37   : > { %5759 = vmatpush3.msk.msra.mxu1 %vm9128_vm8, %v3559_v39  ;;  %v3602_v39 = vld [vmem:[%s9125_s13 + $0x150] sm:$0xff]  ;;  %vm9143_vm8 = vmmov %vm9135_vm2 }
 0xa38   : > { %5760 = vmatprep.subr.mxu1 %v3558_v14 }
 0xa39   : > { %5761 = vmatpush3.msra.mxu1 %v3558_v14  ;;  %v3604_v14 = vld [vmem:[%s9125_s13 + $0x160] sm:$0xff] }
 0xa3a   : > { %5762 = vmatprep.subr.mxu1 %v3557_v11 }
 0xa3b   : > { %5763 = vmatpush3.msra.mxu1 %v3557_v11  ;;  %v3606_v11 = vld [vmem:[%s9125_s13 + $0x170] sm:$0xff] }
 0xa3c   : > { %5764 = vmatprep.subr.mxu1 %v3556_v62 }
 0xa3d   : > { %5765 = vmatpush3.msra.mxu1 %v3556_v62  ;;  %v3608_v62 = vld [vmem:[%s9125_s13 + $0x180] sm:$0xff] }
 0xa3e   : > { %5766 = vmatprep.subr.mxu1 %v3555_v1 }
 0xa3f   : > { %5767 = vmatpush3.msra.mxu1 %v3555_v1  ;;  %v3610_v1 = vld [vmem:[%s9125_s13 + $0x190] sm:$0xff] }
 0xa40   : > { %5768 = vmatprep.subr.mxu1 %v3554_v32 }
 0xa41   : > { %5769 = vmatpush3.msra.mxu1 %v3554_v32  ;;  %v3612_v32 = vld [vmem:[%s9125_s13 + $0x1a0] sm:$0xff] }
 0xa42   : > { %5770 = vmatprep.subr.mxu1 %v3553_v55 }
 0xa43   : > { %5771 = vmatpush3.msra.mxu1 %v3553_v55  ;;  %v3614_v55 = vld [vmem:[%s9125_s13 + $0x1b0] sm:$0xff] }
 0xa44   : > { %5772 = vmatprep.subr.mxu1 %v3552_v38 }
 0xa45   : > { %5773 = vmatpush3.msra.mxu1 %v3552_v38  ;;  %v3616_v38 = vld [vmem:[%s9125_s13 + $0x1c0] sm:$0xff] }
 0xa46   : > { %5774 = vmatprep.subr.mxu1 %v3551_v27 }
 0xa47   : > { %5775 = vmatpush3.msra.mxu1 %v3551_v27  ;;  %v3618_v27 = vld [vmem:[%s9125_s13 + $0x1d0] sm:$0xff] }
 0xa48   : > { %5776 = vmatprep.subr.mxu1 %v3550_v8 }
 0xa49   : > { %5777 = vmatpush3.msra.mxu1 %v3550_v8  ;;  %v3620_v8 = vld [vmem:[%s9125_s13 + $0x1e0] sm:$0xff] }
 0xa4a   : > { %5778 = vmatprep.subr.mxu1 %v3549_v26 }
 0xa4b   : > { %5779 = vmatpush3.msra.mxu1 %v3549_v26  ;;  %v3622_v26 = vld [vmem:[%s9125_s13 + $0x1f0] sm:$0xff] }
 0xa4c   : > { %5780 = vmatprep.subr.mxu1 %v3548_v19 }
 0xa4d   : > { %5781 = vmatpush3.msra.mxu1 %v3548_v19  ;;  %v3623_v19 = vld [vmem:[%s9125_s13 + $0x1f8] sm:$0xff] }
 0xa4e   : > { %5782 = vmatprep.subr.mxu1 %v3547_v15 }
 0xa4f   : > { %5783 = vmatpush3.msra.mxu1 %v3547_v15  ;;  %v3624_v15 = vld [vmem:[%s9125_s13 + $0x200] sm:$0xff] }
 0xa50   : > { %5785 = vmatmul.mubr.msk.f32.vlgmr.msra.gmra.mxu1 %vm3628_vm15, %v3561_v41  ;;  %v3625_v41 = vld [vmem:[%s9125_s13 + $0x208] sm:$0xff] }
 0xa51   : > { %5787 = vmatprep.mubr.msk.f32.mxu1 %vm3628_vm15, %v3562_v48  ;;  %v3626_v48 = vld [vmem:[%s9125_s13 + $0x210] sm:$0xff] }
 0xa54   : > { %5788 = vmatmul.mubr.msk.f32.gmra.mxu1 %vm3628_vm15, %v3563_v31  ;;  %v3627_v31 = vld [vmem:[%s9125_s13 + $0x218] sm:$0xff] }
 0xa55   : > { %5790 = vmatprep.mubr.msk.f32.mxu1 %vm3628_vm15, %v3564_v33 }
 0xa58   : > { %5791 = vmatmul.mubr.msk.f32.gmra.mxu1 %vm3628_vm15, %v3565_v28 }
 0xa59   : > { %5793 = vmatprep.mubr.msk.f32.mxu1 %vm3628_vm15, %v3566_v44 }
 0xa5c   : > { %5794 = vmatmul.mubr.msk.f32.gmra.mxu1 %vm3628_vm15, %v3567_v61 }
 0xa5d   : > { %5796 = vmatprep.mubr.msk.f32.mxu1 %vm3628_vm15, %v3568_v60 }
 0xa60   : > { %5797 = vmatmul.mubr.msk.f32.gmra.mxu1 %vm3628_vm15, %v3569_v43 }
 0xa61   : > { %5799 = vmatprep.mubr.msk.f32.mxu1 %vm3628_vm15, %v3570_v29 }
 0xa64   : > { %5800 = vmatmul.mubr.msk.f32.gmra.mxu1 %vm3628_vm15, %v3571_v51 }
 0xa65   : > { %5802 = vmatprep.mubr.msk.f32.mxu1 %vm3628_vm15, %v3572_v36 }
 0xa68   : > { %5803 = vmatmul.mubr.msk.f32.gmra.mxu1 %vm3628_vm15, %v3573_v34 }
 0xa69   : > { %5805 = vmatprep.mubr.msk.f32.mxu1 %vm3628_vm15, %v3574_v17 }
 0xa6c   : > { %5806 = vmatmul.mubr.msk.f32.gmra.mxu1 %vm3628_vm15, %v3575_v56 }
 0xa6d   : > { %5808 = vmatprep.mubr.msk.f32.mxu1 %vm3628_vm15, %v3576_v0 }
 0xa70   : > { %5809 = vmatmul.mubr.msk.f32.gmra.mxu1 %vm3628_vm15, %v3577_v35 }
 0xa71   : > { %5811 = vmatprep.mubr.msk.f32.mxu1 %vm3628_vm15, %v3578_v49 }
 0xa74   : > { %5812 = vmatmul.mubr.msk.f32.gmra.mxu1 %vm3628_vm15, %v3579_v12 }
 0xa75   : > { %5814 = vmatprep.mubr.msk.f32.mxu1 %vm3628_vm15, %v3580_v21 }
 0xa78   : > { %5815 = vmatmul.mubr.msk.f32.gmra.mxu1 %vm3628_vm15, %v3581_v59 }
 0xa79   : > { %5817 = vmatprep.mubr.msk.f32.mxu1 %vm3628_vm15, %v3582_v20 }
 0xa7c   : > { %5818 = vmatmul.mubr.msk.f32.gmra.mxu1 %vm3628_vm15, %v3583_v9 }
 0xa7d   : > { %5820 = vmatprep.mubr.msk.f32.mxu1 %vm3628_vm15, %v3584_v52 }
 0xa80   : > { %5821 = vmatmul.mubr.msk.f32.gmra.mxu1 %vm3628_vm15, %v3585_v16 }
 0xa81   : > { %5823 = vmatprep.mubr.msk.f32.mxu1 %vm3628_vm15, %v3586_v57 }
 0xa84   : > { %5824 = vmatmul.mubr.msk.f32.gmra.mxu1 %vm3628_vm15, %v3587_v63 }
 0xa85   : > { %5826 = vmatprep.mubr.msk.f32.mxu1 %vm3628_vm15, %v3588_v18 }
 0xa88   : > { %5827 = vmatmul.mubr.msk.f32.gmra.mxu1 %vm3628_vm15, %v3589_v45 }
 0xa89   : > { %5829 = vmatprep.mubr.msk.f32.mxu1 %vm3628_vm15, %v3590_v10 }
 0xa8c   : > { %5830 = vmatmul.mubr.msk.f32.gmra.mxu1 %vm3628_vm15, %v3591_v23 }
 0xa8d   : > { %5832 = vmatprep.mubr.msk.f32.mxu1 %vm3628_vm15, %v3592_v30 }
 0xa90   : > { %5833 = vmatmul.mubr.msk.f32.gmra.mxu1 %vm3628_vm15, %v3593_v3 }
 0xa91   : > { %5835 = vmatprep.mubr.msk.f32.mxu1 %vm3628_vm15, %v3594_v50 }
 0xa94   : > { %5836 = vmatmul.mubr.msk.f32.gmra.mxu1 %vm3628_vm15, %v3595_v42 }
 0xa95   : > { %5838 = vmatprep.mubr.msk.f32.mxu1 %vm3628_vm15, %v3596_v25 }
 0xa98   : > { %5839 = vmatmul.mubr.msk.f32.gmra.mxu1 %vm3628_vm15, %v3597_v2 }
 0xa99   : > { %5841 = vmatprep.mubr.msk.f32.mxu1 %vm3628_vm15, %v3598_v4 }
 0xa9c   : > { %5842 = vmatmul.mubr.msk.f32.gmra.mxu1 %vm3628_vm15, %v3599_v37 }
 0xa9d   : > { %5844 = vmatprep.mubr.msk.f32.mxu1 %vm3628_vm15, %v3600_v40 }
 0xaa0   : > { %5845 = vmatmul.mubr.msk.f32.gmra.mxu1 %vm3628_vm15, %v3601_v22 }
 0xaa1   : > { %5847 = vmatprep.mubr.msk.f32.mxu1 %vm3628_vm15, %v3602_v39 }
 0xaa4   : > { %5848 = vmatmul.mubr.msk.f32.gmra.mxu1 %vm3628_vm15, %v3603_v47 }
 0xaa5   : > { %5850 = vmatprep.mubr.msk.f32.mxu1 %vm3628_vm15, %v3604_v14 }
 0xaa8   : > { %5851 = vmatmul.mubr.msk.f32.gmra.mxu1 %vm3628_vm15, %v3605_v13 }
 0xaa9   : > { %5853 = vmatprep.mubr.msk.f32.mxu1 %vm3628_vm15, %v3606_v11 }
 0xaac   : > { %5854 = vmatmul.mubr.msk.f32.gmra.mxu1 %vm3628_vm15, %v3607_v7 }
 0xaad   : > { %5856 = vmatprep.mubr.msk.f32.mxu1 %vm3628_vm15, %v3608_v62 }
 0xab0   : > { %5857 = vmatmul.mubr.msk.f32.gmra.mxu1 %vm3628_vm15, %v3609_v46 }
 0xab1   : > { %5859 = vmatprep.mubr.msk.f32.mxu1 %vm3628_vm15, %v3610_v1 }
 0xab4   : > { %5860 = vmatmul.mubr.msk.f32.gmra.mxu1 %vm3628_vm15, %v3611_v6 }
 0xab5   : > { %5862 = vmatprep.mubr.msk.f32.mxu1 %vm3628_vm15, %v3612_v32 }
 0xab8   : > { %5863 = vmatmul.mubr.msk.f32.gmra.mxu1 %vm3628_vm15, %v3613_v58 }
 0xab9   : > { %5865 = vmatprep.mubr.msk.f32.mxu1 %vm3628_vm15, %v3614_v55 }
 0xabc   : > { %5866 = vmatmul.mubr.msk.f32.gmra.mxu1 %vm3628_vm15, %v3615_v24 }
 0xabd   : > { %5868 = vmatprep.mubr.msk.f32.mxu1 %vm3628_vm15, %v3616_v38 }
 0xac0   : > { %5869 = vmatmul.mubr.msk.f32.gmra.mxu1 %vm3628_vm15, %v3617_v53 }
 0xac1   : > { %5871 = vmatprep.mubr.msk.f32.mxu1 %vm3628_vm15, %v3618_v27 }
 0xac4   : > { %5872 = vmatmul.mubr.msk.f32.gmra.mxu1 %vm3628_vm15, %v3619_v54 }
 0xac5   : > { %5874 = vmatprep.mubr.msk.f32.mxu1 %vm3628_vm15, %v3620_v8 }
 0xac8   : > { %5875 = vmatmul.mubr.msk.f32.gmra.mxu1 %vm3628_vm15, %v3621_v5 }
 0xac9   : > { %5877 = vmatprep.mubr.msk.f32.mxu1 %vm3628_vm15, %v3622_v26 }
 0xacc   : > { %5878 = vmatmul.mubr.msk.f32.gmra.mxu1 %vm3628_vm15, %v3623_v19 }
 0xacd   : > { %5880 = vmatprep.mubr.msk.f32.mxu1 %vm3628_vm15, %v3624_v15 }
 0xad0   : > { %5881 = vmatmul.mubr.msk.f32.gmra.mxu1 %vm3628_vm15, %v3625_v41 }
 0xad1   : > { %5883 = vmatprep.mubr.msk.f32.mxu1 %vm3628_vm15, %v3626_v48 }
 0xad4   : > { %5884 = vmatmul.mubr.msk.f32.gmra.mxu1 %vm3628_vm15, %v3627_v31  ;;  %vm9141_vm15 = vmmov %vm9131_vm0 }
 0xb10   : > { %v8298_v33 = vpop.f32.mrf.mxu1 }
 0xb12   : > { %v8300_v28 = vpop.f32.mrf.mxu1 }
 0xb14   : > { %v8302_v44 = vpop.f32.mrf.mxu1 }
 0xb16   : > { %v8304_v61 = vpop.f32.mrf.mxu1 }
 0xb18   : > { %v8306_v60 = vpop.f32.mrf.mxu1 }
 0xb19   : > { %v4247_v36 = vrot.slane %v8306_v60, 2 }
 0xb1a   : > { %v8308_v43 = vpop.f32.mrf.mxu1 }
 0xb1c   : > { %v5795_v29 = vpop.f32.mrf.mxu1 }
 0xb1d   : > { %v4251_v34 = vrot.slane %v5795_v29, 2 }
 0xb1e   : > { %v3932_v51 = vpop.f32.mrf.mxu1 }
 0xb1f   : > { %v4249_v17 = vrot.slane %v3932_v51, 2 }
 0xb20   : > { %v5798_v56 = vpop.f32.mrf.mxu1 }
 0xb21   : > { %v8314_v0 = vsel %vm9129_vm9, %v4247_v36, %v4249_v17  ;;  %v8317_v35 = vsel %vm9130_vm11, %v4249_v17, %v4251_v34  ;;  %v4275_v12 = vrot.slane %v5798_v56, 4  ;;  %vm9144_vm9 = vmmov %vm9135_vm2 }
 0xb22   : > { %v8319_v49 = vpop.f32.mrf.mxu1  ;;  %vm9145_vm11 = vmmov %vm9135_vm2 }
 0xb23   : > { %v4253_v21 = vrot.slane %v8319_v49, 2  ;;  %v4274_v59 = vrot.slane %v8319_v49, 4 }
 0xb24   : > { %v5801_v20 = vpop.f32.mrf.mxu1 }
 0xb25   : > { %v8326_v9 = vsel %vm9131_vm0, %v4251_v34, %v4253_v21  ;;  %v8329_v52 = vsel %vm9132_vm5, %v4274_v59, %v4275_v12  ;;  %v4279_v57 = vrot.slane %v5801_v20, 4  ;;  %vm9146_vm0 = vmmov %vm9135_vm2 }
 0xb26   : > { %v3952_v16 = vpop.f32.mrf.mxu1  ;;  %vm9147_vm5 = vmmov %vm9136_vm1 }
 0xb27   : > { %v4277_v63 = vrot.slane %v3952_v16, 4 }
 0xb28   : > { %v5804_v18 = vpop.f32.mrf.mxu1 }
 0xb29   : > { %v8332_v45 = vsel %vm9133_vm12, %v4275_v12, %v4277_v63  ;;  %v8335_v10 = vsel %vm9134_vm13, %v4277_v63, %v4279_v57  ;;  %v4303_v30 = vrot.slane %v5804_v18, 6  ;;  %vm9148_vm12 = vmmov %vm9136_vm1 }
 0xb2a   : > { %v8337_v23 = vpop.f32.mrf.mxu1  ;;  %vm9149_vm13 = vmmov %vm9136_vm1 }
 0xb2b   : > { %v4281_v3 = vrot.slane %v8337_v23, 4  ;;  %v4302_v50 = vrot.slane %v8337_v23, 6 }
 0xb2c   : > { %v5807_v42 = vpop.f32.mrf.mxu1 }
 0xb2d   : > { %v8344_v25 = vsel %vm9135_vm2, %v4279_v57, %v4281_v3  ;;  %v8347_v2 = vsel %vm9136_vm1, %v4302_v50, %v4303_v30  ;;  %v4307_v37 = vrot.slane %v5807_v42, 6  ;;  %vm9150_vm2 = vmmov %vm9136_vm1 }
 0xb2e   : > { %v3972_v4 = vpop.f32.mrf.mxu1  ;;  %vm9152_vm1 = vmmov %vm9140_vm6 }
 0xb2f   : > { %v4305_v40 = vrot.slane %v3972_v4, 6 }
 0xb30   : > { %v8349_v22 = vpop.f32.mrf.mxu1 }
 0xb31   : > { %v8352_v39 = vsel %vm9137_vm3, %v4303_v30, %v4305_v40  ;;  %v8355_v47 = vsel %vm9138_vm14, %v4305_v40, %v4307_v37  ;;  %vm9153_vm3 = vmmov %vm9152_vm1 }
 0xb32   : > { %v8357_v14 = vpop.f32.mrf.mxu1  ;;  %vm9154_vm14 = vmmov %vm9152_vm1 }
 0xb33   : > { %v4309_v13 = vrot.slane %v8357_v14, 6 }
 0xb34   : > { %v8360_v11 = vpop.f32.mrf.mxu1 }
 0xb35   : > { %v8365_v7 = vsel %vm9139_vm4, %v4307_v37, %v4309_v13  ;;  %vm9155_vm4 = vmmov %vm9152_vm1 }
 0xb36   : > { %v8367_v62 = vpop.f32.mrf.mxu1 }
 0xb38   : > { %v8369_v46 = vpop.f32.mrf.mxu1 }
 0xb3a   : > { %v8371_v1 = vpop.f32.mrf.mxu1 }
 0xb3c   : > { %v5819_v6 = vpop.f32.mrf.mxu1 }
 0xb3d   : > { %v4353_v58 = vrot.slane %v5819_v6, 2 }
 0xb3e   : > { %v8373_v32 = vpop.f32.mrf.mxu1 }
 0xb3f   : > { %v4351_v55 = vrot.slane %v8373_v32, 2 }
 0xb40   : > { %v8376_v24 = vpop.f32.mrf.mxu1 }
 0xb41   : > { %v8381_v38 = vsel %vm9140_vm6, %v4351_v55, %v4353_v58  ;;  %v4357_v27 = vrot.slane %v8376_v24, 2  ;;  %v4378_v15 = vrot.slane %v8376_v24, 4  ;;  %vm9156_vm6 = vmmov %vm9146_vm0 }
 0xb42   : > { %v4022_v53 = vpop.f32.mrf.mxu1 }
 0xb43   : > { %v4355_v54 = vrot.slane %v4022_v53, 2 }
 0xb44   : > { %v5825_v8 = vpop.f32.mrf.mxu1 }
 0xb45   : > { %v8385_v5 = vsel %vm9141_vm15, %v4353_v58, %v4355_v54  ;;  %v8390_v26 = vsel %vm9142_vm7, %v4355_v54, %v4357_v27  ;;  %v4381_v41 = vrot.slane %v5825_v8, 4  ;;  %vm9157_vm15 = vmmov %vm9146_vm0 }
 0xb46   : > { %v4032_v19 = vpop.f32.mrf.mxu1  ;;  %vm9158_vm7 = vmmov %vm9146_vm0 }
 0xb47   : > { %v4379_v48 = vrot.slane %v4032_v19, 4  ;;  %v4726_v19 = vld [vmem:[%s9151_s30 + $0xf8] sm:$0xff] }
 0xb48   : > { %v8393_v31 = vpop.f32.mrf.mxu1  ;;  %5566 = vmatprep.subr.mxu0 %v4726_v19  ;;  %v4724_v19 = vld [vmem:[%s9151_s30 + $0xe8] sm:$0xff] }
 0xb49   : > { %v8396_v29 = vsel %vm9143_vm8, %v4378_v15, %v4379_v48  ;;  %v8399_v51 = vsel %vm9144_vm9, %v4379_v48, %v4381_v41  ;;  %v4385_v17 = vrot.slane %v8393_v31, 4  ;;  %v4406_v57 = vrot.slane %v8393_v31, 6  ;;  %vm9159_vm8 = vmmov %vm9150_vm2 }
 0xb4a   : > { %v4042_v34 = vpop.f32.mrf.mxu1  ;;  %v4246_v48 = vrot.slane %v8308_v43, 2  ;;  %vm9160_vm9 = vmmov %vm9150_vm2 }
 0xb4b   : > { %v4383_v56 = vrot.slane %v4042_v34, 4  ;;  %v4710_v34 = vld [vmem:[%s9151_s30 + $0x78] sm:$0xff] }
 0xb4c   : > { %v5831_v12 = vpop.f32.mrf.mxu1  ;;  %5567 = vmatpush3.msra.mxu0 %v4710_v34 }
 0xb4d   : > { %v8403_v59 = vsel %vm9145_vm11, %v4381_v41, %v4383_v56  ;;  %v8408_v20 = vsel %vm9146_vm0, %v4383_v56, %v4385_v17  ;;  %v4409_v63 = vrot.slane %v5831_v12, 6  ;;  %v4725_v56 = vld [vmem:[%s9151_s30 + $0xf0] sm:$0xff]  ;;  %vm9161_vm11 = vmmov %vm9150_vm2 }
 0xb4e   : > { %v4052_v16 = vpop.f32.mrf.mxu1  ;;  %5568 = vmatprep.subr.mxu0 %v4725_v56  ;;  %vm9162_vm0 = vmmov %vm9152_vm1 }
 0xb4f   : > { %v4407_v18 = vrot.slane %v4052_v16, 6 }
 0xb50   : > { %v8411_v30 = vpop.f32.mrf.mxu1 }
 0xb51   : > { %v8414_v50 = vsel %vm9147_vm5, %v4406_v57, %v4407_v18  ;;  %v8417_v42 = vsel %vm9148_vm12, %v4407_v18, %v4409_v63  ;;  %v9021_v37 = vrot.slane %v8411_v30, 6  ;;  %v4248_v18 = vsel %vm9152_vm1, %v4246_v48, %v4247_v36  ;;  %vm9163_vm5 = vmmov %vm9162_vm0 }
 0xb52   : > { %v4062_v4 = vpop.f32.mrf.mxu1  ;;  %vm9164_vm12 = vmmov %vm9162_vm0 }
 0xb53   : > { %v4411_v40 = vrot.slane %v4062_v4, 6 }
 0xb54   : > { %v8420_v6 = vpop.f32.mrf.mxu1 }
 0xb55   : > { %v8423_v58 = vsel %vm9149_vm13, %v4409_v63, %v4411_v40  ;;  %v8428_v53 = vsel %vm9150_vm2, %v4411_v40, %v9021_v37  ;;  %v4709_v40 = vld [vmem:[%s9151_s30 + $0x70] sm:$0xff]  ;;  %vm9165_vm13 = vmmov %vm9162_vm0 }
 0xb56   : > { %v8430_v54 = vpop.f32.mrf.mxu1  ;;  %5569 = vmatpush3.msra.mxu0 %v4709_v40  ;;  %vm9166_vm2 = vmmov %vm9156_vm6 }
 0xb57   : > { %5570 = vmatprep.subr.mxu0 %v4724_v19  ;;  %vm9167_vm1 = vmmov %vm9166_vm2 }
 0xb58   : > { %v8432_v8 = vpop.f32.mrf.mxu1 }
 0xb5a   : > { %v8437_v15 = vpop.f32.mrf.mxu1 }
 0xb5c   : > { %v5843_v41 = vpop.f32.mrf.mxu1 }
 0xb5d   : > { %v4436_v16 = vrot.slane %v5843_v41, 2  ;;  %v4708_v41 = vld [vmem:[%s9151_s30 + $0x68] sm:$0xff] }
 0xb5e   : > { %v8446_v12 = vpop.f32.mrf.mxu1  ;;  %5571 = vmatpush3.msra.mxu0 %v4708_v41 }
 0xb5f   : > { %v4435_v57 = vrot.slane %v8446_v12, 2 }
 0xb60   : > { %v8449_v63 = vpop.f32.mrf.mxu1 }
 0xb61   : > { %v4437_v4 = vsel %vm9153_vm3, %v4435_v57, %v4436_v16  ;;  %v4440_v60 = vrot.slane %v8449_v63, 2  ;;  %vm9168_vm3 = vmmov %vm9167_vm1 }
 0xb62   : > { %v5957_v34 = vpack.i.bf16 %v4248_v18, %v4437_v4  ;;  %v4102_v56 = vpop.f32.mrf.mxu1  ;;  %v4723_v18 = vld [vmem:[%s9151_s30 + $0xe0] sm:$0xff] }
 0xb63   : > { %v4438_v36 = vrot.slane %v4102_v56, 2  ;;  %v4707_v4 = vld [vmem:[%s9151_s30 + $0x60] sm:$0xff]  ;;  %5572 = vmatprep.subr.mxu0 %v4723_v18 }
 0xb64   : > { %5958 = vrot.lane.b32.xlu1 %v5957_v34, %s6189_s0  ;;  %v5849_v48 = vpop.f32.mrf.mxu1  ;;  %5573 = vmatpush3.msra.mxu0 %v4707_v4 }
 0xb65   : > { %v4441_v57 = vsel %vm9154_vm14, %v4438_v36, %v4440_v60  ;;  %v4439_v37 = vsel %vm9155_vm4, %v4436_v16, %v4438_v36  ;;  %v4464_v41 = vrot.slane %v5849_v48, 4  ;;  %vm9169_vm14 = vmmov %vm9167_vm1 }
 0xb66   : > { %v5967_v40 = vpack.i.bf16 %v8317_v35, %v4441_v57  ;;  %v5962_v19 = vpack.i.bf16 %v8314_v0, %v4439_v37  ;;  %v8478_v34 = vpop.f32.mrf.mxu1  ;;  %v4722_v35 = vld [vmem:[%s9151_s30 + $0xd8] sm:$0xff]  ;;  %vm9170_vm4 = vmmov %vm9159_vm8 }
 0xb67   : > { %v4463_v56 = vrot.slane %v8478_v34, 4  ;;  %v4706_v0 = vld [vmem:[%s9151_s30 + $0x58] sm:$0xff]  ;;  %5574 = vmatprep.subr.mxu0 %v4722_v35 }
 0xb68   : > { %5968 = vrot.lane.b32.xlu0 %v5967_v40, %s6189_s0  ;;  %5963 = vrot.lane.b32.xlu1 %v5962_v19, %s6189_s0  ;;  %v8483_v16 = vpop.f32.mrf.mxu1 }
 0xb69   : > { %v4465_v36 = vsel %vm9156_vm6, %v4463_v56, %v4464_v41  ;;  %v4468_v57 = vrot.slane %v8483_v16, 4  ;;  %5575 = vmatpush3.msra.mxu0 %v4706_v0  ;;  %v4705_v56 = vld [vmem:[%s9151_s30 + $0x50] sm:$0xff]  ;;  %vm9171_vm6 = vmmov %vm9162_vm0 }
 0xb6a   : > { %v5972_v37 = vpack.i.bf16 %v8329_v52, %v4465_v36  ;;  %v4122_v48 = vpop.f32.mrf.mxu1  ;;  %v4721_v52 = vld [vmem:[%s9151_s30 + $0xd0] sm:$0xff] }
 0xb6b   : > { %v4466_v18 = vrot.slane %v4122_v48, 4  ;;  %5576 = vmatprep.subr.mxu0 %v4721_v52 }
 0xb6c   : > { %5973 = vrot.lane.b32.xlu0 %v5972_v37, %s6190_s17  ;;  %v5855_v4 = vpop.f32.mrf.mxu1  ;;  %5577 = vmatpush3.msra.mxu0 %v4705_v56 }
 0xb6d   : > { %v4469_v40 = vsel %vm9157_vm15, %v4466_v18, %v4468_v57  ;;  %v4467_v19 = vsel %vm9158_vm7, %v4464_v41, %v4466_v18  ;;  %v4492_v37 = vrot.slane %v5855_v4, 6  ;;  %v4720_v18 = vld [vmem:[%s9151_s30 + $0xc8] sm:$0xff]  ;;  %vm9172_vm15 = vmmov %vm9170_vm4 }
 0xb6e   : > { %v5982_v36 = vpack.i.bf16 %v8335_v10, %v4469_v40  ;;  %v5977_v35 = vpack.i.bf16 %v8332_v45, %v4467_v19  ;;  %v8507_v0 = vpop.f32.mrf.mxu1  ;;  %v4704_v45 = vld [vmem:[%s9151_s30 + $0x48] sm:$0xff]  ;;  %5578 = vmatprep.subr.mxu0 %v4720_v18  ;;  %v4719_v19 = vld [vmem:[%s9151_s30 + $0xc0] sm:$0xff]  ;;  %vm9173_vm7 = vmmov %vm9170_vm4 }
 0xb6f   : > { %v4491_v48 = vrot.slane %v8507_v0, 6  ;;  %5579 = vmatpush3.msra.mxu0 %v4704_v45 }
 0xb70   : > { %5983 = vrot.lane.b32.xlu0 %v5982_v36, %s6190_s17  ;;  %5978 = vrot.lane.b32.xlu1 %v5977_v35, %s6190_s17  ;;  %v8512_v41 = vpop.f32.mrf.mxu1  ;;  %v4703_v35 = vld [vmem:[%s9151_s30 + $0x40] sm:$0xff] }
 0xb71   : > { %v4493_v10 = vsel %vm9159_vm8, %v4491_v48, %v4492_v37  ;;  %5580 = vmatprep.subr.mxu0 %v4719_v19  ;;  %v4496_v56 = vrot.slane %v8512_v41, 6  ;;  %v4702_v48 = vld [vmem:[%s9151_s30 + $0x38] sm:$0xff]  ;;  %vm9174_vm8 = vmmov %vm9170_vm4 }
 0xb72   : > { %v5987_v4 = vpack.i.bf16 %v8347_v2, %v4493_v10  ;;  %v4142_v40 = vpop.f32.mrf.mxu1  ;;  %v4718_v2 = vld [vmem:[%s9151_s30 + $0xb8] sm:$0xff]  ;;  %5581 = vmatpush3.msra.mxu0 %v4703_v35  ;;  %v4717_v10 = vld [vmem:[%s9151_s30 + $0xb0] sm:$0xff] }
 0xb73   : > { %v4494_v52 = vrot.slane %v4142_v40, 6  ;;  %5582 = vmatprep.subr.mxu0 %v4718_v2 }
 0xb74   : > { %5988 = vrot.lane.b32.xlu1 %v5987_v4, %s6191_s25  ;;  %v5861_v36 = vpop.f32.mrf.mxu1  ;;  %5583 = vmatpush3.msra.mxu0 %v4702_v48  ;;  %v4716_v48 = vld [vmem:[%s9151_s30 + $0xa8] sm:$0xff] }
 0xb75   : > { %v4495_v18 = vsel %vm9160_vm9, %v4492_v37, %v4494_v52  ;;  %v5992_v45 = vpack.i.bf16 %v8349_v22, %v5861_v36  ;;  %v4497_v4 = vsel %vm9161_vm11, %v4494_v52, %v4496_v56  ;;  %v4701_v37 = vld [vmem:[%s9151_s30 + $0x30] sm:$0xff]  ;;  %5584 = vmatprep.subr.mxu0 %v4717_v10  ;;  %vm9175_vm9 = vmmov %vm9162_vm0 }
 0xb76   : > { %v5997_v40 = vpack.i.bf16 %v8352_v39, %v4495_v18  ;;  %v8545_v19 = vpop.f32.mrf.mxu1  ;;  %v6002_v36 = vpack.i.bf16 %v8355_v47, %v4497_v4  ;;  %5585 = vmatpush3.msra.mxu0 %v4701_v37  ;;  %v4700_v47 = vld [vmem:[%s9151_s30 + $0x28] sm:$0xff]  ;;  %v4698_v4 = vld [vmem:[%s9151_s30 + $0x18] sm:$0xff]  ;;  %v4350_v37 = vrot.slane %v8369_v46, 2  ;;  %vm9176_vm11 = vmmov %vm9167_vm1 }
 0xb77   : > { %5993 = vrot.lane.b32.xlu0 %v5992_v45, %s6192_s5  ;;  %5586 = vmatprep.subr.mxu0 %v4716_v48  ;;  %v4714_v45 = vld [vmem:[%s9151_s30 + $0x98] sm:$0xff] }
 0xb78   : > { %5998 = vrot.lane.b32.xlu1 %v5997_v40, %s6191_s25  ;;  %v5864_v22 = vpop.f32.mrf.mxu1  ;;  %5587 = vmatpush3.msra.mxu0 %v4700_v47 }
 0xb79   : > { %v6007_v2 = vpack.i.bf16 %v8360_v11, %v5864_v22  ;;  %v4699_v11 = vld [vmem:[%s9151_s30 + $0x20] sm:$0xff] }
 0xb7a   : > { %v4162_v52 = vpop.f32.mrf.mxu1 }
 0xb7b   : > { %v6012_v39 = vpack.i.bf16 %v8367_v62, %v4162_v52  ;;  %6003 = vrot.lane.b32.xlu0 %v6002_v36, %s6191_s25  ;;  %v4715_v62 = vld [vmem:[%s9151_s30 + $0xa0] sm:$0xff] }
 0xb7c   : > { %v8555_v35 = vpop.f32.mrf.mxu1  ;;  %5588 = vmatprep.subr.mxu0 %v4715_v62  ;;  %v4713_v62 = vld [vmem:[%s9151_s30 + $0x90] sm:$0xff] }
 0xb7d   : > { %6013 = vrot.lane.b32.xlu1 %v6012_v39, %s6192_s5  ;;  %5589 = vmatpush3.msra.mxu0 %v4699_v11  ;;  %v4539_v22 = vrot.slane %v8555_v35, 2  ;;  %v4697_v11 = vld [vmem:[%s9151_s30 + $0x10] sm:$0xff]  ;;  %v6112_v49 = vpack.i.bf16 %v8369_v46, %v8555_v35 }
 0xb7e   : > { %v8568_v18 = vpop.f32.mrf.mxu1  ;;  %5590 = vmatprep.subr.mxu0 %v4714_v45 }
 0xb7f   : > { %6008 = vrot.lane.b32.xlu0 %v6007_v2, %s6192_s5  ;;  %5591 = vmatpush3.msra.mxu0 %v4698_v4  ;;  %v4352_v2 = vsel %vm9162_vm0, %v4350_v37, %v4351_v55  ;;  %v4712_v55 = vld [vmem:[%s9151_s30 + $0x88] sm:$0xff]  ;;  %vm9177_vm0 = vmmov %vm9170_vm4 }
 0xb80   : > { %v5870_v10 = vpop.f32.mrf.mxu1  ;;  %5592 = vmatprep.subr.mxu0 %v4713_v62 }
 0xb81   : > { %v4542_v36 = vrot.slane %v5870_v10, 2  ;;  %5593 = vmatpush3.msra.mxu0 %v4697_v11  ;;  %v4711_v11 = vld [vmem:[%s9151_s30 + $0x80] sm:$0xff] }
 0xb82   : > { %v4182_v40 = vpop.f32.mrf.mxu1  ;;  %5594 = vmatprep.subr.mxu0 %v4712_v55 }
 0xb83   : > { %v4540_v52 = vrot.slane %v4182_v40, 2  ;;  %v4696_v40 = vld [vmem:[%s9151_s30 + $0x8] sm:$0xff] }
 0xb84   : > { %v8582_v39 = vpop.f32.mrf.mxu1  ;;  %5595 = vmatpush3.msra.mxu0 %v4696_v40 }
 0xb85   : > { %v4543_v48 = vsel %vm9163_vm5, %v4540_v52, %v4542_v36  ;;  %v4541_v47 = vsel %vm9164_vm12, %v4539_v22, %v4540_v52  ;;  %5596 = vmatprep.subr.mxu0 %v4711_v11  ;;  %v4442_v11 = vrot.slane %v8478_v34, 2  ;;  %vm4624_vm5 = vcmask 261120  }
 0xb86   : > { %v6022_v45 = vpack.i.bf16 %v8381_v38, %v4543_v48  ;;  %v6017_v10 = vpack.i.bf16 %v4352_v2, %v4541_v47  ;;  %v8596_v4 = vpop.f32.mrf.mxu1  ;;  %v4470_v2 = vrot.slane %v8507_v0, 4  ;;  %v4567_v48 = vrot.slane %v8582_v39, 4 }
 0xb87   : > { %v4544_v32 = vrot.slane %v8596_v4, 2  ;;  %v4443_v34 = vsel %vm9171_vm6, %v4440_v60, %v4442_v11  ;;  %v4546_v60 = vrot.slane %v8582_v39, 2  ;;  %vm4630_vm12 = vcmask 392192  }
 0xb88   : > { %6023 = vrot.lane.b32.xlu1 %v6022_v45, %s6193_s24  ;;  %6018 = vrot.lane.b32.xlu0 %v6017_v10, %s6193_s24  ;;  %v5876_v38 = vpop.f32.mrf.mxu1  ;;  %v4695_v45 = vld [vmem:[%s9151_s30] sm:$0xff] }
 0xb89   : > { %v4545_v37 = vsel %vm9165_vm13, %v4542_v36, %v4544_v32  ;;  %v4570_v47 = vrot.slane %v5876_v38, 4  ;;  %5597 = vmatpush3.msra.mxu0 %v4695_v45  ;;  %vm4636_vm13 = vcmask 523264  }
 0xb8a   : > { %v6027_v22 = vpack.i.bf16 %v8385_v5, %v4545_v37  ;;  %v4202_v52 = vpop.f32.mrf.mxu1  ;;  %v4471_v37 = vsel %vm9168_vm3, %v4468_v57, %v4470_v2  ;;  %vm4654_vm3 = vcmask 916480  }
 0xb8b   : > { %v4568_v62 = vrot.slane %v4202_v52, 4 }
 0xb8c   : > { %6028 = vrot.lane.b32.xlu1 %v6027_v22, %s6193_s24  ;;  %v8620_v36 = vpop.f32.mrf.mxu1 }
 0xb8d   : > { %v4571_v5 = vsel %vm9166_vm2, %v4568_v62, %v4570_v47  ;;  %v4569_v10 = vsel %vm9167_vm1, %v4567_v48, %v4568_v62  ;;  %v4595_v16 = vrot.slane %v8620_v36, 6  ;;  %vm4642_vm2 = vcmask 654336  }
 0xb8e   : > { %v6037_v55 = vpack.i.bf16 %v8399_v51, %v4571_v5  ;;  %v6032_v40 = vpack.i.bf16 %v8396_v29, %v4569_v10  ;;  %v4212_v38 = vpop.f32.mrf.mxu1  ;;  %v6057_v51 = vpack.i.bf16 %v8344_v25, %v4471_v37  ;;  %v6052_v37 = vpack.i.bf16 %v8326_v9, %v4443_v34 }
 0xb8f   : > { %v4572_v22 = vrot.slane %v4212_v38, 4  ;;  %vm4648_vm1 = vcmask 785408  }
 0xb90   : > { %6038 = vrot.lane.b32.xlu1 %v6037_v55, %s6194_s1  ;;  %6033 = vrot.lane.b32.xlu0 %v6032_v40, %s6194_s1  ;;  %v5882_v52 = vpop.f32.mrf.mxu1  ;;  %v4498_v55 = vrot.slane %v8545_v19, 6  ;;  %v4574_v19 = vrot.slane %v8620_v36, 4 }
 0xb91   : > { %v4573_v48 = vsel %vm9169_vm14, %v4570_v47, %v4572_v22  ;;  %v4598_v5 = vrot.slane %v5882_v52, 6  ;;  %v6067_v47 = vpack.i.bf16 %v8371_v1, %v8568_v18 }
 0xb92   : > { %v6042_v29 = vpack.i.bf16 %v8403_v59, %v4573_v48  ;;  %v4222_v62 = vpop.f32.mrf.mxu1  ;;  %v4575_v41 = vsel %vm9176_vm11, %v4572_v22, %v4574_v19  ;;  %v6122_v23 = vpack.i.bf16 %v4385_v17, %v4574_v19 }
 0xb93   : > { %v4596_v45 = vrot.slane %v4222_v62, 6  ;;  %v6087_v39 = vpack.i.bf16 %v8408_v20, %v4575_v41  ;;  %v6107_v20 = vpack.i.bf16 %v4309_v13, %v4498_v55 }
 0xb94   : > { %6058 = vrot.lane.b32.xlu1 %v6057_v51, %s6190_s17  ;;  %6043 = vrot.lane.b32.xlu0 %v6042_v29, %s6194_s1  ;;  %v5885_v57 = vpop.f32.mrf.mxu1 }
 0xb95   : > { %v4597_v10 = vsel %vm9170_vm4, %v4595_v16, %v4596_v45  ;;  %v4599_v40 = vsel %vm9172_vm15, %v4596_v45, %v4598_v5  ;;  %vm9183_vm4 = vmmov %vm9171_vm6 }
 0xb96   : > { %v6047_v25 = vpack.i.bf16 %v8414_v50, %v4597_v10  ;;  %v4232_v59 = vpop.f32.mrf.mxu1  ;;  %v6077_v1 = vpack.i.bf16 %v8417_v42, %v4599_v40  ;;  %v4499_v50 = vsel %vm9173_vm7, %v4496_v56, %v4498_v55  ;;  %v4547_v42 = vsel %vm9175_vm9, %v4544_v32, %v4546_v60  ;;  %vm9184_vm6 = vmmov %vm9183_vm4 }
 0xb97   : > { %v4600_v38 = vrot.slane %v4232_v59, 6  ;;  %v6062_v18 = vpack.i.bf16 %v8365_v7, %v4499_v50  ;;  %v4602_v56 = vrot.slane %v5885_v57, 6  ;;  %v6072_v52 = vpack.i.bf16 %v8390_v26, %v4547_v42  ;;  %vm9185_vm15 = vmmov %vm9177_vm0 }
 0xb98   : > { %6068 = vrot.lane.b32.xlu1 %v6067_v47, %s6192_s5  ;;  %6048 = vrot.lane.b32.xlu0 %v6047_v25, %s6195_s28  ;;  %v6092_v7 = vpack.i.bf16 %v4253_v21, %v4442_v11  ;;  %v6102_v26 = vpack.i.bf16 %v4281_v3, %v4470_v2  ;;  %v6117_v21 = vpack.i.bf16 %v4357_v27, %v4546_v60  ;;  %v9178_v3 = vrot.slane %v8411_v30, 6  ;;  %vm9186_vm7 = vmmov %vm9177_vm0 }
 0xb99   : > { %v4601_v63 = vsel %vm9174_vm8, %v4598_v5, %v4600_v38  ;;  %v4603_v36 = vsel %vm9177_vm0, %v4600_v38, %v4602_v56  ;;  %vm9187_vm8 = vmmov %vm9183_vm4 }
 0xb9a   : > { %v6082_v9 = vpack.i.bf16 %v8423_v58, %v4601_v63  ;;  %v6097_v58 = vpack.i.bf16 %v8428_v53, %v4603_v36  ;;  %v6127_v14 = vpack.i.bf16 %v9178_v3, %v4602_v56 }
 0xb9c   : > { %6078 = vrot.lane.b32.xlu1 %v6077_v1, %s6195_s28  ;;  %6053 = vrot.lane.b32.xlu0 %v6052_v37, %s6189_s0 }
 0xba0   : > { %6063 = vrot.lane.b32.xlu0 %v6062_v18, %s6191_s25  ;;  %6083 = vrot.lane.b32.xlu1 %v6082_v9, %s6195_s28 }
 0xba4   : > { %6073 = vrot.lane.b32.xlu0 %v6072_v52, %s6193_s24  ;;  %6088 = vrot.lane.b32.xlu1 %v6087_v39, %s6194_s1 }
 0xba8   : > { %6098 = vrot.lane.b32.xlu0 %v6097_v58, %s6195_s28  ;;  %6093 = vrot.lane.b32.xlu1 %v6092_v7, %s6189_s0 }
 0xbac   : > { %6103 = vrot.lane.b32.xlu0 %v6102_v26, %s6190_s17  ;;  %6108 = vrot.lane.b32.xlu1 %v6107_v20, %s6191_s25 }
 0xbb0   : > { %6113 = vrot.lane.b32.xlu0 %v6112_v49, %s6192_s5  ;;  %6118 = vrot.lane.b32.xlu1 %v6117_v21, %s6193_s24  ;;  %s9180_s24 = sld [smem:[#allocation11_spill]] }
 0xbb4   : > { %6123 = vrot.lane.b32.xlu0 %v6122_v23, %s6194_s1  ;;  %6128 = vrot.lane.b32.xlu1 %v6127_v14, %s6195_s28 }
 0xbd6   : > { %v5959_v13 = vpop.permute.xlu1 %5958 }
 0xbd7   : > { %v5961_v22 = vunpack.i.h.bf16 %v5959_v13  ;;  %v5960_v48 = vunpack.i.l.bf16 %v5959_v13 }
 0xbd9   : > { %v4619_v10 = vsel %vm3377_vm10, %v8300_v28, %v5961_v22  ;;  %v4660_v47 = vsel %vm3377_vm10, %v8430_v54, %v5960_v48 }
 0xbda   : > { %v5969_v53 = vpop.permute.xlu0 %5968  ;;  %v5964_v46 = vpop.permute.xlu1 %5963 }
 0xbdb   : > { %v5971_v51 = vunpack.i.h.bf16 %v5969_v53  ;;  %v5970_v29 = vunpack.i.l.bf16 %v5969_v53  ;;  %v5966_v62 = vunpack.i.h.bf16 %v5964_v46  ;;  %v5965_v11 = vunpack.i.l.bf16 %v5964_v46 }
 0xbdd   : > { %v4621_v34 = vsel %vm3377_vm10, %v8304_v61, %v5971_v51  ;;  %v4662_v55 = vsel %vm3377_vm10, %v8437_v15, %v5970_v29  ;;  %v4620_v37 = vsel %vm3377_vm10, %v8298_v33, %v5966_v62  ;;  %v4661_v28 = vsel %vm3377_vm10, %v8420_v6, %v5965_v11 }
 0xbde   : > { %v5974_v0 = vpop.permute.xlu0 %5973 }
 0xbdf   : > { %v5976_v57 = vunpack.i.h.bf16 %v5974_v0  ;;  %v5975_v5 = vunpack.i.l.bf16 %v5974_v0 }
 0xbe1   : > { %v4625_v61 = vsel %vm4624_vm5, %v4619_v10, %v5976_v57  ;;  %v4665_v60 = vsel %vm4624_vm5, %v4660_v47, %v5975_v5 }
 0xbe2   : > { %v5979_v24 = vpop.permute.xlu1 %5978  ;;  %v5984_v27 = vpop.permute.xlu0 %5983 }
 0xbe3   : > { %v5986_v25 = vunpack.i.h.bf16 %v5984_v27  ;;  %v5985_v59 = vunpack.i.l.bf16 %v5984_v27  ;;  %v5981_v40 = vunpack.i.h.bf16 %v5979_v24  ;;  %v5980_v38 = vunpack.i.l.bf16 %v5979_v24 }
 0xbe5   : > { %v4627_v18 = vsel %vm4624_vm5, %v4621_v34, %v5986_v25  ;;  %v4667_v9 = vsel %vm4624_vm5, %v4662_v55, %v5985_v59  ;;  %v4626_v6 = vsel %vm4624_vm5, %v4620_v37, %v5981_v40  ;;  %v4666_v41 = vsel %vm4624_vm5, %v4661_v28, %v5980_v38 }
 0xbe6   : > { %v5989_v35 = vpop.permute.xlu1 %5988 }
 0xbe7   : > { %v5991_v1 = vunpack.i.h.bf16 %v5989_v35  ;;  %v5990_v54 = vunpack.i.l.bf16 %v5989_v35 }
 0xbe9   : > { %v5994_v4 = vpop.permute.xlu0 %5993  ;;  %v4631_v39 = vsel %vm4630_vm12, %v4625_v61, %v5991_v1  ;;  %v4670_v36 = vsel %vm4630_vm12, %v4665_v60, %v5990_v54 }
 0xbea   : > { %v5999_v32 = vpop.permute.xlu1 %5998  ;;  %v5996_v15 = vunpack.i.h.bf16 %v5994_v4  ;;  %v5995_v19 = vunpack.i.l.bf16 %v5994_v4 }
 0xbeb   : > { %v6001_v33 = vunpack.i.h.bf16 %v5999_v32  ;;  %v6000_v42 = vunpack.i.l.bf16 %v5999_v32 }
 0xbec   : > { %v4637_v49 = vsel %vm4636_vm13, %v4631_v39, %v5996_v15  ;;  %v4675_v21 = vsel %vm4636_vm13, %v4670_v36, %v5995_v19 }
 0xbed   : > { %v8699_v2 = vpop.permute.xlu0 %6003  ;;  %v4632_v14 = vsel %vm4630_vm12, %v4626_v6, %v6001_v33  ;;  %v4671_v13 = vsel %vm4630_vm12, %v4666_v41, %v6000_v42 }
 0xbee   : > { %v6006_v56 = vunpack.i.h.bf16 %v8699_v2  ;;  %v6005_v52 = vunpack.i.l.bf16 %v8699_v2 }
 0xbef   : > { %v8701_v31 = vpop.permute.xlu1 %6013 }
 0xbf0   : > { %v6016_v7 = vunpack.i.h.bf16 %v8701_v31  ;;  %v6015_v58 = vunpack.i.l.bf16 %v8701_v31  ;;  %v4633_v0 = vsel %vm4630_vm12, %v4627_v18, %v6006_v56  ;;  %v4672_v24 = vsel %vm4630_vm12, %v4667_v9, %v6005_v52 }
 0xbf1   : > { %v8703_v17 = vpop.permute.xlu0 %6008 }
 0xbf2   : > { %v6011_v27 = vunpack.i.h.bf16 %v8703_v17  ;;  %v6010_v35 = vunpack.i.l.bf16 %v8703_v17  ;;  %v4638_v4 = vsel %vm4636_vm13, %v4632_v14, %v6016_v7  ;;  %v4676_v32 = vsel %vm4636_vm13, %v4671_v13, %v6015_v58 }
 0xbf4   : > { %v4639_v10 = vsel %vm4636_vm13, %v4633_v0, %v6011_v27 }
 0xbfa   : > { %v8705_v30 = vpop.permute.xlu1 %6023  ;;  %v8707_v16 = vpop.permute.xlu0 %6018 }
 0xbfb   : > { %v6021_v23 = vunpack.i.h.bf16 %v8707_v16  ;;  %v6020_v3 = vunpack.i.l.bf16 %v8707_v16  ;;  %v6026_v2 = vunpack.i.h.bf16 %v8705_v30  ;;  %v6025_v31 = vunpack.i.l.bf16 %v8705_v30 }
 0xbfc   : > { %v4677_v30 = vsel %vm4636_vm13, %v4672_v24, %v6010_v35 }
 0xbfd   : > { %v4643_v51 = vsel %vm4642_vm2, %v4637_v49, %v6021_v23  ;;  %v4680_v11 = vsel %vm4642_vm2, %v4675_v21, %v6020_v3  ;;  %v4681_v38 = vsel %vm4642_vm2, %v4676_v32, %v6025_v31  ;;  %v4644_v37 = vsel %vm4642_vm2, %v4638_v4, %v6026_v2 }
 0xbfe   : > { %v8709_v45 = vpop.permute.xlu1 %6028 }
 0xbff   : > { %v6031_v59 = vunpack.i.h.bf16 %v8709_v45  ;;  %v6030_v34 = vunpack.i.l.bf16 %v8709_v45 }
 0xc01   : > { %v4682_v56 = vsel %vm4642_vm2, %v4677_v30, %v6030_v34  ;;  %v4645_v52 = vsel %vm4642_vm2, %v4639_v10, %v6031_v59 }
 0xc02   : > { %v8723_v50 = vpop.permute.xlu1 %6038  ;;  %v6034_v63 = vpop.permute.xlu0 %6033 }
 0xc03   : > { %v6036_v53 = vunpack.i.h.bf16 %v6034_v63  ;;  %v6035_v46 = vunpack.i.l.bf16 %v6034_v63  ;;  %v6041_v16 = vunpack.i.h.bf16 %v8723_v50  ;;  %v6040_v17 = vunpack.i.l.bf16 %v8723_v50 }
 0xc05   : > { %v4649_v57 = vsel %vm4648_vm1, %v4643_v51, %v6036_v53  ;;  %v4685_v5 = vsel %vm4648_vm1, %v4680_v11, %v6035_v46  ;;  %v4686_v60 = vsel %vm4648_vm1, %v4681_v38, %v6040_v17  ;;  %v4650_v45 = vsel %vm4648_vm1, %v4644_v37, %v6041_v16 }
 0xc06   : > { %v8737_v26 = vpop.permute.xlu1 %6058  ;;  %v8739_v20 = vpop.permute.xlu0 %6043 }
 0xc07   : > { %v6046_v63 = vunpack.i.h.bf16 %v8739_v20  ;;  %v6045_v61 = vunpack.i.l.bf16 %v8739_v20  ;;  %v6061_v33 = vunpack.i.h.bf16 %v8737_v26  ;;  %v6060_v42 = vunpack.i.l.bf16 %v8737_v26 }
 0xc09   : > { %v4687_v20 = vsel %vm4648_vm1, %v4682_v56, %v6045_v61  ;;  %v4651_v26 = vsel %vm4648_vm1, %v4645_v52, %v6046_v63 }
 0xc0a   : > { %v8755_v22 = vpop.permute.xlu1 %6068  ;;  %v6049_v48 = vpop.permute.xlu0 %6048 }
 0xc0b   : > { %v6051_v29 = vunpack.i.h.bf16 %v6049_v48  ;;  %v6050_v62 = vunpack.i.l.bf16 %v6049_v48  ;;  %v6071_v14 = vunpack.i.h.bf16 %v8755_v22  ;;  %v6070_v13 = vunpack.i.l.bf16 %v8755_v22 }
 0xc0d   : > { %v4690_v47 = vsel %vm4654_vm3, %v4685_v5, %v6050_v62  ;;  %v4655_v25 = vsel %vm4654_vm3, %v4649_v57, %v6051_v29 }
 0xc0e   : > { %v6079_v55 = vpop.permute.xlu1 %6078  ;;  %v6054_v40 = vpop.permute.xlu0 %6053  ;;  %4798 = vmatprep.mubr.f32.mxu0 %v4690_v47 }
 0xc0f   : > { %v6081_v28 = vunpack.i.h.bf16 %v6079_v55  ;;  %v6080_v1 = vunpack.i.l.bf16 %v6079_v55  ;;  %v6056_v54 = vunpack.i.h.bf16 %v6054_v40  ;;  %v6055_v50 = vunpack.i.l.bf16 %v6054_v40  ;;  %4799 = vmatmul.mubr.f32.vlgmr.msra.gmra.mxu0 %v4655_v25 }
 0xc11   : > { %v4622_v15 = vsel %vm3377_vm10, %v8302_v44, %v6056_v54  ;;  %v4663_v19 = vsel %vm3377_vm10, %v8432_v8, %v6055_v50  ;;  %v4691_v18 = vsel %vm4654_vm3, %v4686_v60, %v6080_v1  ;;  %v4656_v9 = vsel %vm4654_vm3, %v4650_v45, %v6081_v28 }
 0xc12   : > { %v6064_v6 = vpop.permute.xlu0 %6063  ;;  %4803 = vmatprep.mubr.f32.mxu0 %v4691_v18  ;;  %v6084_v41 = vpop.permute.xlu1 %6083  ;;  %v4628_v8 = vsel %vm4624_vm5, %v4622_v15, %v6061_v33  ;;  %v4668_v58 = vsel %vm4624_vm5, %v4663_v19, %v6060_v42 }
 0xc13   : > { %v6066_v39 = vunpack.i.h.bf16 %v6064_v6  ;;  %v6065_v44 = vunpack.i.l.bf16 %v6064_v6  ;;  %v6086_v36 = vunpack.i.h.bf16 %v6084_v41  ;;  %v6085_v7 = vunpack.i.l.bf16 %v6084_v41  ;;  %4804 = vmatmul.mubr.f32.gmra.mxu0 %v4656_v9 }
 0xc15   : > { %v4634_v49 = vsel %vm4630_vm12, %v4628_v8, %v6066_v39  ;;  %v4673_v21 = vsel %vm4630_vm12, %v4668_v58, %v6065_v44  ;;  %v4692_v23 = vsel %vm4654_vm3, %v4687_v20, %v6085_v7  ;;  %v4657_v3 = vsel %vm4654_vm3, %v4651_v26, %v6086_v36  ;;  %v4945_v36 = vld [vmem:[%s9179_s4 + $0xf8] sm:$0xff]  ;;  %v4944_v8 = vld [vmem:[%s9179_s4 + $0xf0] sm:$0xff]  ;;  %v4943_v20 = vld [vmem:[%s9179_s4 + $0xe8] sm:$0xff] }
 0xc16   : > { %v6074_v53 = vpop.permute.xlu0 %6073  ;;  %v6089_v46 = vpop.permute.xlu1 %6088  ;;  %4808 = vmatprep.mubr.f32.mxu0 %v4692_v23  ;;  %v4678_v4 = vsel %vm4636_vm13, %v4673_v21, %v6070_v13  ;;  %v4640_v32 = vsel %vm4636_vm13, %v4634_v49, %v6071_v14  ;;  %v4929_v7 = vld [vmem:[%s9179_s4 + $0x78] sm:$0xff]  ;;  %5613 = vmatprep.subr.mxu0 %v4945_v36  ;;  %v4928_v58 = vld [vmem:[%s9179_s4 + $0x70] sm:$0xff]  ;;  %v4927_v26 = vld [vmem:[%s9179_s4 + $0x68] sm:$0xff] }
 0xc17   : > { %v6076_v0 = vunpack.i.h.bf16 %v6074_v53  ;;  %v6075_v24 = vunpack.i.l.bf16 %v6074_v53  ;;  %4809 = vmatmul.mubr.f32.gmra.mxu0 %v4657_v3  ;;  %v6091_v27 = vunpack.i.h.bf16 %v6089_v46  ;;  %v6090_v35 = vunpack.i.l.bf16 %v6089_v46  ;;  %v4942_v49 = vld [vmem:[%s9179_s4 + $0xe0] sm:$0xff]  ;;  %v4941_v23 = vld [vmem:[%s9179_s4 + $0xd8] sm:$0xff]  ;;  %v4940_v14 = vld [vmem:[%s9179_s4 + $0xd0] sm:$0xff] }
 0xc18   : > { %5614 = vmatpush3.msra.mxu0 %v4929_v7  ;;  %v4926_v21 = vld [vmem:[%s9179_s4 + $0x60] sm:$0xff]  ;;  %v4925_v3 = vld [vmem:[%s9179_s4 + $0x58] sm:$0xff]  ;;  %v4924_v13 = vld [vmem:[%s9179_s4 + $0x50] sm:$0xff] }
 0xc19   : > { %v4683_v2 = vsel %vm4642_vm2, %v4678_v4, %v6075_v24  ;;  %v4646_v31 = vsel %vm4642_vm2, %v4640_v32, %v6076_v0  ;;  %5615 = vmatprep.subr.mxu0 %v4944_v8  ;;  %v4939_v53 = vld [vmem:[%s9179_s4 + $0xc8] sm:$0xff]  ;;  %v4938_v0 = vld [vmem:[%s9179_s4 + $0xc0] sm:$0xff]  ;;  %v4936_v4 = vld [vmem:[%s9179_s4 + $0xb0] sm:$0xff] }
 0xc1a   : > { %v6099_v48 = vpop.permute.xlu0 %6098  ;;  %v6094_v51 = vpop.permute.xlu1 %6093  ;;  %v4688_v16 = vsel %vm4648_vm1, %v4683_v2, %v6090_v35  ;;  %v4652_v17 = vsel %vm4648_vm1, %v4646_v31, %v6091_v27  ;;  %5616 = vmatpush3.msra.mxu0 %v4928_v58  ;;  %v4923_v46 = vld [vmem:[%s9179_s4 + $0x48] sm:$0xff]  ;;  %v4922_v24 = vld [vmem:[%s9179_s4 + $0x40] sm:$0xff]  ;;  %v4937_v27 = vld [vmem:[%s9179_s4 + $0xb8] sm:$0xff] }
 0xc1b   : > { %v6101_v29 = vunpack.i.h.bf16 %v6099_v48  ;;  %v6100_v22 = vunpack.i.l.bf16 %v6099_v48  ;;  %v6096_v62 = vunpack.i.h.bf16 %v6094_v51  ;;  %v6095_v11 = vunpack.i.l.bf16 %v6094_v51  ;;  %5617 = vmatprep.subr.mxu0 %v4943_v20  ;;  %v4921_v35 = vld [vmem:[%s9179_s4 + $0x38] sm:$0xff]  ;;  %v4920_v32 = vld [vmem:[%s9179_s4 + $0x30] sm:$0xff]  ;;  %v4935_v2 = vld [vmem:[%s9179_s4 + $0xa8] sm:$0xff] }
 0xc1c   : > { %5618 = vmatpush3.msra.mxu0 %v4927_v26  ;;  %v4919_v31 = vld [vmem:[%s9179_s4 + $0x28] sm:$0xff]  ;;  %v4934_v48 = vld [vmem:[%s9179_s4 + $0xa0] sm:$0xff] }
 0xc1d   : > { %v4693_v57 = vsel %vm4654_vm3, %v4688_v16, %v6100_v22  ;;  %v4658_v5 = vsel %vm4654_vm3, %v4652_v17, %v6101_v29  ;;  %v4623_v59 = vsel %vm3377_vm10, %v8308_v43, %v6096_v62  ;;  %v4664_v34 = vsel %vm3377_vm10, %v8446_v12, %v6095_v11  ;;  %5619 = vmatprep.subr.mxu0 %v4942_v49  ;;  %v4918_v51 = vld [vmem:[%s9179_s4 + $0x20] sm:$0xff]  ;;  %vm9181_vm10 = vmmov %vm9176_vm11 }
 0xc1e   : > { %v6104_v10 = vpop.permute.xlu0 %6103  ;;  %v6109_v30 = vpop.permute.xlu1 %6108  ;;  %4813 = vmatprep.mubr.f32.mxu0 %v4693_v57  ;;  %5620 = vmatpush3.msra.mxu0 %v4926_v21  ;;  %v8894_v16 = vld [vmem:[%s9180_s24] ss:$0 sm:$0xff]  ;;  %vm9182_vm14 = vmmov %vm9181_vm10 }
 0xc1f   : > { %v6106_v47 = vunpack.i.h.bf16 %v6104_v10  ;;  %v6105_v25 = vunpack.i.l.bf16 %v6104_v10  ;;  %4814 = vmatmul.mubr.f32.gmra.mxu0 %v4658_v5  ;;  %v6111_v55 = vunpack.i.h.bf16 %v6109_v30  ;;  %v6110_v40 = vunpack.i.l.bf16 %v6109_v30  ;;  %5621 = vmatprep.subr.mxu0 %v4941_v23  ;;  %vm9188_vm9 = vmmov %vm9181_vm10 }
 0xc20   : > { %5622 = vmatpush3.msra.mxu0 %v4925_v3  ;;  %vm9189_vm11 = vmmov %vm9177_vm0 }
 0xc21   : > { %v4629_v38 = vsel %vm4624_vm5, %v4623_v59, %v6106_v47  ;;  %v4669_v37 = vsel %vm4624_vm5, %v4664_v34, %v6105_v25  ;;  %5623 = vmatprep.subr.mxu0 %v4940_v14  ;;  %v4933_v47 = vld [vmem:[%s9179_s4 + $0x98] sm:$0xff] }
 0xc22   : > { %v6114_v28 = vpop.permute.xlu0 %6113  ;;  %v6119_v1 = vpop.permute.xlu1 %6118  ;;  %v4635_v63 = vsel %vm4630_vm12, %v4629_v38, %v6111_v55  ;;  %v4674_v61 = vsel %vm4630_vm12, %v4669_v37, %v6110_v40  ;;  %5624 = vmatpush3.msra.mxu0 %v4924_v13  ;;  %v4917_v59 = vld [vmem:[%s9179_s4 + $0x18] sm:$0xff]  ;;  %v4932_v40 = vld [vmem:[%s9179_s4 + $0x90] sm:$0xff] }
 0xc23   : > { %v6116_v54 = vunpack.i.h.bf16 %v6114_v28  ;;  %v6115_v50 = vunpack.i.l.bf16 %v6114_v28  ;;  %v6121_v60 = vunpack.i.h.bf16 %v6119_v1  ;;  %v6120_v45 = vunpack.i.l.bf16 %v6119_v1  ;;  %5625 = vmatprep.subr.mxu0 %v4939_v53  ;;  %v4916_v38 = vld [vmem:[%s9179_s4 + $0x10] sm:$0xff]  ;;  %v4931_v1 = vld [vmem:[%s9179_s4 + $0x88] sm:$0xff] }
 0xc24   : > { %5626 = vmatpush3.msra.mxu0 %v4923_v46 }
 0xc25   : > { %v4641_v43 = vsel %vm4636_vm13, %v4635_v63, %v6116_v54  ;;  %v4679_v12 = vsel %vm4636_vm13, %v4674_v61, %v6115_v50  ;;  %5627 = vmatprep.subr.mxu0 %v4938_v0  ;;  %v4915_v54 = vld [vmem:[%s9179_s4 + $0x8] sm:$0xff] }
 0xc26   : > { %v6124_v15 = vpop.permute.xlu0 %6123  ;;  %v6129_v19 = vpop.permute.xlu1 %6128  ;;  %v4684_v6 = vsel %vm4642_vm2, %v4679_v12, %v6120_v45  ;;  %v4647_v41 = vsel %vm4642_vm2, %v4641_v43, %v6121_v60  ;;  %5628 = vmatpush3.msra.mxu0 %v4922_v24  ;;  %v4930_v60 = vld [vmem:[%s9179_s4 + $0x80] sm:$0xff] }
 0xc27   : > { %v6126_v18 = vunpack.i.h.bf16 %v6124_v15  ;;  %v6125_v9 = vunpack.i.l.bf16 %v6124_v15  ;;  %v6131_v33 = vunpack.i.h.bf16 %v6129_v19  ;;  %v6130_v42 = vunpack.i.l.bf16 %v6129_v19  ;;  %5629 = vmatprep.subr.mxu0 %v4937_v27  ;;  %v4914_v45 = vld [vmem:[%s9179_s4] sm:$0xff] }
 0xc28   : > { %5630 = vmatpush3.msra.mxu0 %v4921_v35 }
 0xc29   : > { %v4689_v56 = vsel %vm4648_vm1, %v4684_v6, %v6125_v9  ;;  %v4653_v52 = vsel %vm4648_vm1, %v4647_v41, %v6126_v18  ;;  %5631 = vmatprep.subr.mxu0 %v4936_v4 }
 0xc2a   : > { %v4694_v39 = vsel %vm4654_vm3, %v4689_v56, %v6130_v42  ;;  %v4659_v44 = vsel %vm4654_vm3, %v4653_v52, %v6131_v33  ;;  %5632 = vmatpush3.msra.mxu0 %v4920_v32 }
 0xc2b   : > { %4818 = vmatprep.mubr.f32.mxu0 %v4694_v39  ;;  %5633 = vmatprep.subr.mxu0 %v4935_v2 }
 0xc2c   : > { %4819 = vmatmul.mubr.f32.gmra.mxu0 %v4659_v44 }
 0xc2d   : > { %5634 = vmatpush3.msra.mxu0 %v4919_v31 }
 0xc2e   : > { %5635 = vmatprep.subr.mxu0 %v4934_v48 }
 0xc2f   : > { %5636 = vmatpush3.msra.mxu0 %v4918_v51 }
 0xc30   : > { %5637 = vmatprep.subr.mxu0 %v4933_v47 }
 0xc31   : > { %5638 = vmatpush3.msra.mxu0 %v4917_v59 }
 0xc32   : > { %5639 = vmatprep.subr.mxu0 %v4932_v40 }
 0xc33   : > { %5640 = vmatpush3.msra.mxu0 %v4916_v38 }
 0xc34   : > { %5641 = vmatprep.subr.mxu0 %v4931_v1 }
 0xc35   : > { %5642 = vmatpush3.msra.mxu0 %v4915_v54 }
 0xc36   : > { %5643 = vmatprep.subr.mxu0 %v4930_v60 }
 0xc37   : > { %5644 = vmatpush3.msra.mxu0 %v4914_v45 }
 0xccf   : > { %v5598_v29 = vpop.f32.mrf.mxu0 }
 0xcd1   : > { %v5599_v22 = vpop.f32.mrf.mxu0 }
 0xcd2   : > { %v5600_v62 = vadd.f32 %v5599_v22, %v5598_v29 }
 0xcd3   : > { %v5601_v11 = vpop.f32.mrf.mxu0 }
 0xcd4   : > { %v4801_v5 = vadd.f32 %v5600_v62, %v8894_v16 }
 0xcd5   : > { %v5602_v17 = vpop.f32.mrf.mxu0 }
 0xcd6   : > { %v5603_v57 = vadd.f32 %v5602_v17, %v5601_v11  ;;  %v8912_v37 = vmax.f32 %v4801_v5, 0.0 }
 0xcd7   : > { %v5604_v10 = vpop.f32.mrf.mxu0 }
 0xcd8   : > { %v4806_v30 = vadd.f32 %v5603_v57, %v8894_v16  ;;  %v4846_v43 = vrot.slane %v8912_v37, 4  ;;  %v4832_v15 = vrot.slane %v8912_v37, 2  ;;  %v4861_v7 = vrot.slane %v8912_v37, 6 }
 0xcd9   : > { %v5605_v25 = vpop.f32.mrf.mxu0 }
 0xcda   : > { %v8904_v34 = vmax.f32 %v4806_v30, 0.0  ;;  %v5606_v55 = vadd.f32 %v5605_v25, %v5604_v10 }
 0xcdc   : > { %v4811_v28 = vadd.f32 %v5606_v55, %v8894_v16  ;;  %v4847_v50 = vrot.slane %v8904_v34, 4  ;;  %v4833_v63 = vrot.slane %v8904_v34, 2  ;;  %v4862_v33 = vrot.slane %v8904_v34, 6 }
 0xcde   : > { %v8923_v61 = vmax.f32 %v4811_v28, 0.0  ;;  %v4848_v6 = vsel %vm9181_vm10, %v4846_v43, %v4847_v50  ;;  %v4834_v52 = vsel %vm9183_vm4, %v4832_v15, %v4833_v63  ;;  %v4863_v26 = vsel %vm9186_vm7, %v4861_v7, %v4862_v33 }
 0xcdf   : > { %v5607_v12 = vpop.f32.mrf.mxu0 }
 0xce0   : > { %v4849_v19 = vrot.slane %v8923_v61, 4  ;;  %v4835_v18 = vrot.slane %v8923_v61, 2  ;;  %v4864_v9 = vrot.slane %v8923_v61, 6 }
 0xce1   : > { %v5608_v42 = vpop.f32.mrf.mxu0 }
 0xce2   : > { %v5609_v41 = vadd.f32 %v5608_v42, %v5607_v12  ;;  %v4850_v56 = vsel %vm9182_vm14, %v4847_v50, %v4849_v19  ;;  %v4836_v39 = vsel %vm9184_vm6, %v4833_v63, %v4835_v18  ;;  %v4865_v58 = vsel %vm9185_vm15, %v4862_v33, %v4864_v9 }
 0xce3   : > { %v6137_v44 = vpack.i.bf16 %v4848_v6, %v4850_v56  ;;  %v6132_v36 = vpack.i.bf16 %v4834_v52, %v4836_v39  ;;  %v6142_v49 = vpack.i.bf16 %v4863_v26, %v4865_v58 }
 0xce4   : > { %v4816_v8 = vadd.f32 %v5609_v41, %v8894_v16 }
 0xce5   : > { %6138 = vrot.lane.b32.xlu1 %v6137_v44, %s6192_s5  ;;  %6133 = vrot.lane.b32.xlu0 %v6132_v36, %s6190_s17 }
 0xce6   : > { %v4827_v20 = vmax.f32 %v4816_v8, 0.0 }
 0xce8   : > { %v4877_v21 = vrot.slane %v4827_v20, 2  ;;  %v4885_v23 = vrot.slane %v4827_v20, 4  ;;  %v4866_v14 = vrot.slane %v4827_v20, 6 }
 0xce9   : > { %6143 = vrot.lane.b32.xlu0 %v6142_v49, %s6194_s1 }
 0xcea   : > { %v4878_v3 = vsel %vm9187_vm8, %v4835_v18, %v4877_v21  ;;  %v4886_v53 = vsel %vm9188_vm9, %v4849_v19, %v4885_v23  ;;  %v4867_v0 = vsel %vm9189_vm11, %v4864_v9, %v4866_v14  ;;  %v6147_v27 = vpack.i.bf16 %v4835_v18, %v4877_v21 }
 0xceb   : > { %4879 = vrot.lane.b32.xlu1 %v4878_v3, %s6190_s17  ;;  %v6152_v4 = vpack.i.bf16 %v4849_v19, %v4885_v23 }
 0xcec   : > { %v5610_v13 = vpop.f32.mrf.mxu0 }
 0xced   : > { %4887 = vrot.lane.b32.xlu0 %v4886_v53, %s6192_s5 }
 0xcee   : > { %v5611_v46 = vpop.f32.mrf.mxu0 }
 0xcef   : > { %v5612_v24 = vadd.f32 %v5611_v46, %v5610_v13  ;;  %4872 = vrot.lane.b32.xlu1 %v4867_v0, %s6194_s1 }
 0xcf1   : > { %v4821_v35 = vadd.f32 %v5612_v24, %v8894_v16  ;;  %6148 = vrot.lane.b32.xlu0 %v6147_v27, %s6190_s17 }
 0xcf3   : > { %v4828_v32 = vmax.f32 %v4821_v35, 0.0  ;;  %6153 = vrot.lane.b32.xlu1 %v6152_v4, %s6192_s5 }
 0xcf5   : > { %v4894_v2 = vrot.slane %v4828_v32, 6 }
 0xcf7   : > { %v4895_v31 = vsel %vm9177_vm0, %v4866_v14, %v4894_v2 }
 0xcf8   : > { %4896 = vrot.lane.b32.xlu0 %v4895_v31, %s6194_s1  ;;  %s9190_s1 = sld [smem:[#allocation13_spill]] }
 0xcfe   : > { %v5337_v6 = vld [vmem:[%s9190_s1] ss:$0 sm:$0xff] }
 0xd57   : > { %v6139_v48 = vpop.permute.xlu1 %6138  ;;  %v6134_v51 = vpop.permute.xlu0 %6133 }
 0xd58   : > { %v6136_v29 = vunpack.i.h.bf16 %v6134_v51  ;;  %v6135_v22 = vunpack.i.l.bf16 %v6134_v51  ;;  %v6141_v62 = vunpack.i.h.bf16 %v6139_v48  ;;  %v6140_v11 = vunpack.i.l.bf16 %v6139_v48 }
 0xd5a   : > { %v4899_v16 = vsel %vm4624_vm5, %v8912_v37, %v6136_v29  ;;  %v4900_v17 = vsel %vm4624_vm5, %v8904_v34, %v6135_v22 }
 0xd5b   : > { %v6144_v57 = vpop.permute.xlu0 %6143  ;;  %v4903_v47 = vsel %vm4636_vm13, %v4900_v17, %v6140_v11  ;;  %v4902_v25 = vsel %vm4636_vm13, %v4899_v16, %v6141_v62 }
 0xd5c   : > { %v6146_v5 = vunpack.i.h.bf16 %v6144_v57  ;;  %v6145_v10 = vunpack.i.l.bf16 %v6144_v57 }
 0xd5d   : > { %v4880_v30 = vpop.permute.xlu1 %4879 }
 0xd5e   : > { %v4908_v59 = vsel %vm4624_vm5, %v8923_v61, %v4880_v30  ;;  %v4906_v55 = vsel %vm4648_vm1, %v4903_v47, %v6145_v10  ;;  %v4905_v40 = vsel %vm4648_vm1, %v4902_v25, %v6146_v5 }
 0xd5f   : > { %v4888_v38 = vpop.permute.xlu0 %4887  ;;  %5017 = vmatprep.mubr.f32.mxu0 %v4906_v55 }
 0xd60   : > { %v4910_v37 = vsel %vm4636_vm13, %v4908_v59, %v4888_v38  ;;  %5018 = vmatmul.mubr.f32.vlgmr.msra.gmra.mxu0 %v4905_v40 }
 0xd61   : > { %v4873_v34 = vpop.permute.xlu1 %4872 }
 0xd62   : > { %v4912_v28 = vsel %vm4648_vm1, %v4910_v37, %v4873_v34 }
 0xd63   : > { %v6149_v1 = vpop.permute.xlu0 %6148  ;;  %5022 = vmatprep.mubr.f32.mxu0 %v4912_v28 }
 0xd64   : > { %v6151_v54 = vunpack.i.h.bf16 %v6149_v1  ;;  %v6150_v50 = vunpack.i.l.bf16 %v6149_v1  ;;  %5023 = vmatmul.mubr.f32.gmra.mxu0 %v4906_v55 }
 0xd65   : > { %v6154_v63 = vpop.permute.xlu1 %6153 }
 0xd66   : > { %v6156_v60 = vunpack.i.h.bf16 %v6154_v63  ;;  %v6155_v45 = vunpack.i.l.bf16 %v6154_v63  ;;  %v4901_v43 = vsel %vm4624_vm5, %v8923_v61, %v6151_v54  ;;  %v4909_v12 = vsel %vm4624_vm5, %v4827_v20, %v6150_v50 }
 0xd67   : > { %vm5062_vm5 = vcmask 517120  }
 0xd68   : > { %v4904_v15 = vsel %vm4636_vm13, %v4901_v43, %v6156_v60  ;;  %v4911_v18 = vsel %vm4636_vm13, %v4909_v12, %v6155_v45 }
 0xd69   : > { %v4907_v33 = vsel %vm4648_vm1, %v4904_v15, %v4873_v34 }
 0xd6a   : > { %v4897_v19 = vpop.permute.xlu0 %4896 }
 0xd6b   : > { %v4913_v9 = vsel %vm4648_vm1, %v4911_v18, %v4897_v19 }
 0xd6c   : > { %5027 = vmatprep.mubr.f32.mxu0 %v4913_v9 }
 0xd6d   : > { %5028 = vmatmul.mubr.f32.gmra.mxu0 %v4907_v33 }
 0xe20   : > { %v5645_v42 = vpop.f32.mrf.mxu0 }
 0xe22   : > { %v5646_v41 = vpop.f32.mrf.mxu0 }
 0xe23   : > { %v5647_v61 = vadd.f32 %v5646_v41, %v5645_v42 }
 0xe24   : > { %v5648_v56 = vpop.f32.mrf.mxu0 }
 0xe25   : > { %v5020_v52 = vadd.f32 %v5647_v61, %v5337_v6 }
 0xe26   : > { %v5649_v39 = vpop.f32.mrf.mxu0 }
 0xe27   : > { %v5033_v44 = vmax.f32 %v5020_v52, 0.0  ;;  %v5650_v36 = vadd.f32 %v5649_v39, %v5648_v56 }
 0xe29   : > { %v5037_v7 = vrot.slane %v5033_v44, 2  ;;  %v5025_v8 = vadd.f32 %v5650_v36, %v5337_v6  ;;  %v5040_v20 = vrot.slane %v5033_v44, 4  ;;  %v5043_v49 = vrot.slane %v5033_v44, 6 }
 0xe2b   : > { %v5039_v58 = vmax.f32 %v5033_v44, %v5037_v7  ;;  %v5034_v21 = vmax.f32 %v5025_v8, 0.0 }
 0xe2d   : > { %v5042_v26 = vmax.f32 %v5039_v58, %v5040_v20  ;;  %v5651_v23 = vpop.f32.mrf.mxu0  ;;  %v5048_v46 = vrot.slane %v5034_v21, 2  ;;  %v5051_v27 = vrot.slane %v5034_v21, 4  ;;  %v5054_v32 = vrot.slane %v5034_v21, 6 }
 0xe2f   : > { %v5045_v3 = vmax.f32 %v5042_v26, %v5043_v49  ;;  %v5652_v14 = vpop.f32.mrf.mxu0 }
 0xe30   : > { %v5653_v13 = vadd.f32 %v5652_v14, %v5651_v23 }
 0xe31   : > { %v5046_v53 = vmax.f32 %v5045_v3, %v5034_v21 }
 0xe32   : > { %v5030_v0 = vadd.f32 %v5653_v13, %v5337_v6 }
 0xe33   : > { %v5050_v24 = vmax.f32 %v5046_v53, %v5048_v46 }
 0xe34   : > { %v5035_v35 = vmax.f32 %v5030_v0, 0.0 }
 0xe35   : > { %v5053_v4 = vmax.f32 %v5050_v24, %v5051_v27 }
 0xe36   : > { %v5059_v48 = vrot.slane %v5035_v35, 2 }
 0xe37   : > { %v5056_v2 = vmax.f32 %v5053_v4, %v5054_v32 }
 0xe39   : > { %v5057_v31 = vmax.f32 %v5056_v2, %v5035_v35 }
 0xe3b   : > { %v5061_v51 = vmax.f32 %v5057_v31, %v5059_v48 }
 0xe3d   : > { %5063 = vst.msk [vmem:[%s6344_s15] sm:$0x3] %vm5062_vm5, %v5061_v51 }
 0xe3e PF: > { %s9191_s16 = sld [smem:[#allocation2_spill]] }
 0xe44   : > { %s28_s27 = sadd.s32 1, %s9191_s16  }
 0xe45   : > { %p25_p7 = scmp.ge.s32.totalorder %s28_s27, 5  }
 0xe47   :  { %27 = sbr.rel (!%p25_p7) target bundleno = 12 (0xc), region = 148 }

</bundles_post_ra>
